<compile_context>
chip_gen: v5e
topology: v5e:2x2
jax: 0.10.0
libtpu: 0.0.40
codegen_flags: <defaults>
</compile_context>

<pallas_src>
import functools

import jax
import jax.numpy as jnp
from jax.experimental import pallas as pl
from jax.experimental.pallas import tpu as pltpu

HID = 512          # hidden width of every MLP trunk in the torch module
F32 = jnp.float32
BF16 = jnp.bfloat16


def _softplus(v):
    # numerically stable softplus built only from exp/log (mosaic-safe, f32)
    return jnp.maximum(v, 0.0) + jnp.log(1.0 + jnp.exp(-jnp.abs(v)))


def _softmax_lastdim(v):
    # Exact reciprocal (divide): these probabilities must sum to 1 (they feed
    # log-likelihood terms downstream); rows are only y_dim lanes wide.
    m = jnp.max(v, axis=-1, keepdims=True)
    e = jnp.exp(v - m)
    return e / jnp.sum(e, axis=-1, keepdims=True)


def _mm(a, w_ref):
    # MXU matmul: bf16 operands, f32 accumulation.
    return jnp.dot(a.astype(w_ref.dtype), w_ref[...], preferred_element_type=F32)


def gmvae_kernel(z_dim, y_dim, seg_pads,
                 # scalar (SMEM)
                 inv_temp_ref,
                 # batched inputs
                 x_ref, gnoise_ref, znoise_ref,
                 # VMEM-resident weights (bf16) / biases (f32)
                 wx_ref, b1_ref, w2_ref, b2_ref, wl_ref, bl_ref,
                 wy_ref, by_ref, w5_ref, b5_ref, whead_ref, bhead_ref,
                 wg1_ref, bg1_ref, wg2_ref, bg2_ref, wg3_ref, bg3_ref,
                 # outputs
                 small_ref, xrec_ref):
    inv_t = inv_temp_ref[0]
    x = x_ref[...]                                      # (tb, x_dim) bf16

    # Fused first layers of both x-consuming branches: x @ [w1 | w4x] -> (tb, 2*HID)
    xw = jnp.dot(x, wx_ref[...], preferred_element_type=F32)
    h1 = jnp.maximum(xw[:, :HID] + b1_ref[...], 0.0)    # q(y|x) layer 1
    h2x = xw[:, HID:]                                   # x-part of q(z|x,y) layer 1

    # ---------------- q(y|x): Linear/ReLU/Linear/ReLU/GumbelSoftmax ----------------
    h1 = jnp.maximum(_mm(h1, w2_ref) + b2_ref[...], 0.0)
    logits = _mm(h1, wl_ref) + bl_ref[...]
    prob = _softmax_lastdim(logits)
    y = _softmax_lastdim((logits + gnoise_ref[...]) * inv_t)   # soft gumbel (hard=0)

    # -------- fused y matmul: y @ [w4y | wymu | wyvar] -> (tb, HID + 2*z_dim) -------
    yb = y.astype(BF16)
    yw = jnp.dot(yb, wy_ref[...], preferred_element_type=F32) + by_ref[...]

    # ---------------- q(z|x,y): Linear(concat(x,y))/ReLU/Linear/ReLU/Gaussian -------
    h2 = jnp.maximum(h2x + yw[:, :HID], 0.0)            # split at 512 is 128-aligned
    h2 = jnp.maximum(_mm(h2, w5_ref) + b5_ref[...], 0.0)
    muvar = _mm(h2, whead_ref) + bhead_ref[...]          # fused [mu | var_pre] head
    col2z = jax.lax.broadcasted_iota(jnp.int32, muvar.shape, 1)
    muvar = jnp.where(col2z >= z_dim, _softplus(muvar), muvar)   # softplus in place
    mu = muvar[:, :z_dim]
    var = muvar[:, z_dim:]
    z = mu + znoise_ref[...] * jnp.sqrt(var + 1e-10)

    # ---------------- p(z|y): [y_mu | y_var_pre] came out of the fused y matmul -----
    ymv = yw[:, HID:]                                    # (tb, 2*z_dim)
    ymv = jnp.where(col2z >= z_dim, _softplus(ymv), ymv)

    # ---------------- p(x|z): Linear/ReLU/Linear/ReLU/Linear ------------------------
    g = jnp.maximum(_mm(z, wg1_ref) + bg1_ref[...], 0.0)
    g = jnp.maximum(_mm(g, wg2_ref) + bg2_ref[...], 0.0)
    x_rec = _mm(g, wg3_ref) + bg3_ref[...]

    # Packed, lane-dense store of all small heads on 128-aligned segment boundaries.
    def _pad(a, p):
        if p == 0:
            return a
        return jnp.concatenate([a, jnp.zeros((a.shape[0], p), F32)], axis=-1)

    small_ref[...] = jnp.concatenate([
        _pad(muvar, seg_pads[0]),                         # [mu | var]
        _pad(z, seg_pads[1]),                             # z
        _pad(ymv, seg_pads[2]),                           # [y_mu | y_var]
        _pad(jnp.concatenate([logits, prob, y], axis=-1), seg_pads[3]),
    ], axis=-1)
    xrec_ref[...] = x_rec.astype(xrec_ref.dtype)          # bf16 writeback (biggest output)


def init_params(key, x_dim, z_dim, y_dim):
    """Xavier-normal weights (std = sqrt(2/(fan_in+fan_out))), zero biases.
    Weights stored as (in, out) f32."""
    def lin(k, fin, fout):
        std = (2.0 / (fin + fout)) ** 0.5
        w = jax.random.normal(k, (fin, fout), F32) * std
        b = jnp.zeros((1, fout), F32)
        return w, b

    ks = jax.random.split(key, 12)
    w1, b1 = lin(ks[0], x_dim, HID)
    w2, b2 = lin(ks[1], HID, HID)
    wl, bl = lin(ks[2], HID, y_dim)
    w4, b4 = lin(ks[3], x_dim + y_dim, HID)
    w4x, w4y = w4[:x_dim], w4[x_dim:]
    w5, b5 = lin(ks[4], HID, HID)
    wmu, bmu = lin(ks[5], HID, z_dim)
    wvar, bvar = lin(ks[6], HID, z_dim)
    wymu, bymu = lin(ks[7], y_dim, z_dim)
    wyvar, byvar = lin(ks[8], y_dim, z_dim)
    wg1, bg1 = lin(ks[9], z_dim, HID)
    wg2, bg2 = lin(ks[10], HID, HID)
    wg3, bg3 = lin(ks[11], HID, x_dim)

    return [w1, b1, w2, b2, wl, bl,
            w4x, w4y, b4, w5, b5, wmu, bmu, wvar, bvar,
            wymu, bymu, wyvar, byvar,
            wg1, bg1, wg2, bg2, wg3, bg3]


def fuse_params(params):
    """Fuse x first layers, mu/var head, and ALL y-consuming matmuls; cast to bf16."""
    (w1, b1, w2, b2, wl, bl,
     w4x, w4y, b4, w5, b5, wmu, bmu, wvar, bvar,
     wymu, bymu, wyvar, byvar,
     wg1, bg1, wg2, bg2, wg3, bg3) = params
    wx = jnp.concatenate([w1, w4x], axis=1).astype(BF16)                # (x_dim, 2*HID)
    whead = jnp.concatenate([wmu, wvar], axis=1).astype(BF16)           # (HID, 2*z)
    bhead = jnp.concatenate([bmu, bvar], axis=1)
    wy = jnp.concatenate([w4y, wymu, wyvar], axis=1).astype(BF16)       # (y_dim, HID+2*z)
    by = jnp.concatenate([b4, bymu, byvar], axis=1)                     # (1, HID+2*z)
    return [wx, b1, w2.astype(BF16), b2, wl.astype(BF16), bl,
            wy, by, w5.astype(BF16), b5, whead, bhead,
            wg1.astype(BF16), bg1, wg2.astype(BF16), bg2, wg3.astype(BF16), bg3]


def _round_up_128(n):
    return ((n + 127) // 128) * 128


def gmvae_forward(x, fused_params, gumbel_noise, normal_noise, temperature=1.0):
    B = x.shape[0]
    x_flat = x.reshape(B, -1).astype(BF16)
    x_dim = x_flat.shape[1]
    y_dim = gumbel_noise.shape[1]
    z_dim = normal_noise.shape[1]

    # Batch tiling: fill MXU rows, amortize per-grid-step overhead (v6e), and keep
    # >= 2 tiles when possible so v7x's two TensorCores both get a share.
    if B <= 128:
        tile_b = B
    elif B >= 512:
        tile_b = 256
    else:
        tile_b = 128
    n_tiles = pl.cdiv(B, tile_b)
    bp = n_tiles * tile_b

    def pad_batch(a):
        return a if a.shape[0] == bp else jnp.pad(a, ((0, bp - a.shape[0]), (0, 0)))

    x_flat = pad_batch(x_flat)
    gnoise = pad_batch(gumbel_noise.astype(F32))
    znoise = pad_batch(normal_noise.astype(F32))

    # Packed small-output layout: each segment padded to a multiple of 128 lanes so
    # every major concat / slice boundary is 128-aligned (no XLU lane-shift relayout).
    seg_raw = (2 * z_dim, z_dim, 2 * z_dim, 3 * y_dim)
    seg_w = tuple(_round_up_128(w) for w in seg_raw)
    seg_pads = tuple(w - r for w, r in zip(seg_w, seg_raw))
    off = (0, seg_w[0], seg_w[0] + seg_w[1], seg_w[0] + seg_w[1] + seg_w[2])
    small_w = sum(seg_w)

    inv_t = jnp.reshape(1.0 / jnp.asarray(temperature, F32), (1,))

    def batched(width):
        return pl.BlockSpec((tile_b, width), lambda i: (i, 0))

    # Weight block indices are grid-invariant -> loaded once, VMEM-resident.
    weight_specs = [pl.BlockSpec(a.shape, lambda i: (0, 0)) for a in fused_params]
    in_specs = ([pl.BlockSpec(memory_space=pltpu.MemorySpace.SMEM),
                 batched(x_dim), batched(y_dim), batched(z_dim)]
                + weight_specs)

    out_shape = (jax.ShapeDtypeStruct((bp, small_w), F32),
                 jax.ShapeDtypeStruct((bp, x_dim), BF16))   # x_rec in bf16: halve HBM bytes
    out_specs = (batched(small_w), batched(x_dim))

    kernel = functools.partial(gmvae_kernel, z_dim, y_dim, seg_pads)
    small, x_rec = pl.pallas_call(
        kernel,
        grid=(n_tiles,),
        out_shape=out_shape,
        in_specs=in_specs,
        out_specs=out_specs,
        compiler_params=pltpu.CompilerParams(
            dimension_semantics=("parallel",),          # shard batch tiles over 2 TCs (v7x)
            vmem_limit_bytes=32 << 20),                 # fits v5e/v6e/v7x
    )(inv_t, x_flat, gnoise, znoise, *fused_params)

    small = small[:B]
    x_rec = x_rec[:B]
    zc, yc = z_dim, y_dim
    return {
        "mean":        small[:, off[0]:off[0] + zc],
        "var":         small[:, off[0] + zc:off[0] + 2 * zc],
        "gaussian":    small[:, off[1]:off[1] + zc],
        "y_mean":      small[:, off[2]:off[2] + zc],
        "y_var":       small[:, off[2] + zc:off[2] + 2 * zc],
        "logits":      small[:, off[3]:off[3] + yc],
        "prob_cat":    small[:, off[3] + yc:off[3] + 2 * yc],
        "categorical": small[:, off[3] + 2 * yc:off[3] + 3 * yc],
        "x_rec":       x_rec,                            # bf16
    }


def gmvae_reference(x, fused_params, gumbel_noise, normal_noise, temperature=1.0):
    """Pure-JAX mirror of the kernel math for validation."""
    (wx, b1, w2, b2, wl, bl, wy, by, w5, b5, whead, bhead,
     wg1, bg1, wg2, bg2, wg3, bg3) = fused_params
    z_dim = normal_noise.shape[1]
    xf = x.reshape(x.shape[0], -1).astype(BF16)

    def mm(a, w):
        return jnp.dot(a.astype(BF16), w, preferred_element_type=F32)

    xw = mm(xf, wx)
    h1 = jax.nn.relu(xw[:, :HID] + b1)
    h2x = xw[:, HID:]
    h1 = jax.nn.relu(mm(h1, w2) + b2)
    logits = mm(h1, wl) + bl
    prob = jax.nn.softmax(logits, axis=-1)
    y = jax.nn.softmax((logits + gumbel_noise) / temperature, axis=-1)
    yw = mm(y, wy) + by
    h2 = jax.nn.relu(h2x + yw[:, :HID])
    h2 = jax.nn.relu(mm(h2, w5) + b5)
    muvar = mm(h2, whead) + bhead
    mu, var = muvar[:, :z_dim], jax.nn.softplus(muvar[:, z_dim:])
    z = mu + normal_noise * jnp.sqrt(var + 1e-10)
    ymv = yw[:, HID:]
    y_mu, y_var = ymv[:, :z_dim], jax.nn.softplus(ymv[:, z_dim:])
    g = jax.nn.relu(mm(z, wg1) + bg1)
    g = jax.nn.relu(mm(g, wg2) + bg2)
    x_rec = mm(g, wg3) + bg3
    return {"mean": mu, "var": var, "gaussian": z, "logits": logits,
            "prob_cat": prob, "categorical": y, "y_mean": y_mu,
            "y_var": y_var, "x_rec": x_rec}


if __name__ == "__main__":
    # Small, TPU-friendly shapes implied by the forward pass (image -> flatten -> MLP).
    B, C, H, W = 8, 4, 8, 8          # x_dim = C*H*W = 256
    x_dim = C * H * W
    z_dim = 64
    y_dim = 16
    temperature = 1.0

    root = jax.random.PRNGKey(0)
    k_x, k_p, k_g, k_n = jax.random.split(root, 4)

    x = jax.random.normal(k_x, (B, C, H, W), F32)
    params = init_params(k_p, x_dim, z_dim, y_dim)
    fused = fuse_params(params)

    # gumbel noise: -log(-log(U + eps) + eps), eps=1e-20 (as in GumbelSoftmax.sample_gumbel)
    eps = 1e-20
    u = jax.random.uniform(k_g, (B, y_dim), F32)
    gumbel_noise = -jnp.log(-jnp.log(u + eps) + eps)
    normal_noise = jax.random.normal(k_n, (B, z_dim), F32)

    out = gmvae_forward(x, fused, gumbel_noise, normal_noise, temperature)
    out = jax.block_until_ready(out)

    expected = {
        "mean": (B, z_dim), "var": (B, z_dim), "gaussian": (B, z_dim),
        "logits": (B, y_dim), "prob_cat": (B, y_dim), "categorical": (B, y_dim),
        "y_mean": (B, z_dim), "y_var": (B, z_dim), "x_rec": (B, x_dim),
    }
    for k, shp in expected.items():
        assert out[k].shape == shp, (k, out[k].shape, shp)
        assert bool(jnp.all(jnp.isfinite(out[k].astype(F32)))), k

    # softmax outputs sum to 1 (exact reciprocal in-kernel now)
    assert bool(jnp.allclose(jnp.sum(out["prob_cat"], axis=-1), 1.0, atol=1e-3))
    assert bool(jnp.allclose(jnp.sum(out["categorical"], axis=-1), 1.0, atol=1e-3))

    # compare against a pure-JAX reference that uses the same bf16 weights
    ref = gmvae_reference(x, fused, gumbel_noise, normal_noise, temperature)
    for k in expected:
        diff = float(jnp.max(jnp.abs(out[k].astype(F32) - ref[k])))
        assert diff < 3e-2, (k, diff)

    print("KERNEL_OK")
</pallas_src>

<mosaic_0001>
module attributes {stable_mosaic.version = 11 : i64} {
  func.func @gmvae_kernel(%arg0: i32, %arg1: memref<1xf32, #tpu.memory_space<smem>>, %arg2: memref<8x256xbf16, #tpu.memory_space<vmem>>, %arg3: memref<8x16xf32, #tpu.memory_space<vmem>>, %arg4: memref<8x64xf32, #tpu.memory_space<vmem>>, %arg5: memref<256x1024xbf16, #tpu.memory_space<vmem>>, %arg6: memref<1x512xf32, #tpu.memory_space<vmem>>, %arg7: memref<512x512xbf16, #tpu.memory_space<vmem>>, %arg8: memref<1x512xf32, #tpu.memory_space<vmem>>, %arg9: memref<512x16xbf16, #tpu.memory_space<vmem>>, %arg10: memref<1x16xf32, #tpu.memory_space<vmem>>, %arg11: memref<16x640xbf16, #tpu.memory_space<vmem>>, %arg12: memref<1x640xf32, #tpu.memory_space<vmem>>, %arg13: memref<512x512xbf16, #tpu.memory_space<vmem>>, %arg14: memref<1x512xf32, #tpu.memory_space<vmem>>, %arg15: memref<512x128xbf16, #tpu.memory_space<vmem>>, %arg16: memref<1x128xf32, #tpu.memory_space<vmem>>, %arg17: memref<64x512xbf16, #tpu.memory_space<vmem>>, %arg18: memref<1x512xf32, #tpu.memory_space<vmem>>, %arg19: memref<512x512xbf16, #tpu.memory_space<vmem>>, %arg20: memref<1x512xf32, #tpu.memory_space<vmem>>, %arg21: memref<512x256xbf16, #tpu.memory_space<vmem>>, %arg22: memref<1x256xf32, #tpu.memory_space<vmem>>, %arg23: memref<8x512xf32, #tpu.memory_space<vmem>>, %arg24: memref<8x256xbf16, #tpu.memory_space<vmem>>) attributes {dimension_semantics = [#tpu.dimension_semantics<parallel>], iteration_bounds = array<i64: 1>, scalar_prefetch = 0 : i64, scratch_operands = 0 : i64, tpu.core_type = #tpu.core_type<tc>, window_params = [{transform_indices = @transform_0, window_bounds = array<i64: 1>}, {transform_indices = @transform_1, window_bounds = array<i64: 8, 256>}, {transform_indices = @transform_2, window_bounds = array<i64: 8, 16>}, {transform_indices = @transform_3, window_bounds = array<i64: 8, 64>}, {pipeline_mode = #tpu.pipeline_mode<synchronous>, transform_indices = @transform_4, window_bounds = array<i64: 256, 1024>}, {pipeline_mode = #tpu.pipeline_mode<synchronous>, transform_indices = @transform_5, window_bounds = array<i64: 1, 512>}, {pipeline_mode = #tpu.pipeline_mode<synchronous>, transform_indices = @transform_6, window_bounds = array<i64: 512, 512>}, {pipeline_mode = #tpu.pipeline_mode<synchronous>, transform_indices = @transform_7, window_bounds = array<i64: 1, 512>}, {pipeline_mode = #tpu.pipeline_mode<synchronous>, transform_indices = @transform_8, window_bounds = array<i64: 512, 16>}, {pipeline_mode = #tpu.pipeline_mode<synchronous>, transform_indices = @transform_9, window_bounds = array<i64: 1, 16>}, {pipeline_mode = #tpu.pipeline_mode<synchronous>, transform_indices = @transform_10, window_bounds = array<i64: 16, 640>}, {pipeline_mode = #tpu.pipeline_mode<synchronous>, transform_indices = @transform_11, window_bounds = array<i64: 1, 640>}, {pipeline_mode = #tpu.pipeline_mode<synchronous>, transform_indices = @transform_12, window_bounds = array<i64: 512, 512>}, {pipeline_mode = #tpu.pipeline_mode<synchronous>, transform_indices = @transform_13, window_bounds = array<i64: 1, 512>}, {pipeline_mode = #tpu.pipeline_mode<synchronous>, transform_indices = @transform_14, window_bounds = array<i64: 512, 128>}, {pipeline_mode = #tpu.pipeline_mode<synchronous>, transform_indices = @transform_15, window_bounds = array<i64: 1, 128>}, {pipeline_mode = #tpu.pipeline_mode<synchronous>, transform_indices = @transform_16, window_bounds = array<i64: 64, 512>}, {pipeline_mode = #tpu.pipeline_mode<synchronous>, transform_indices = @transform_17, window_bounds = array<i64: 1, 512>}, {pipeline_mode = #tpu.pipeline_mode<synchronous>, transform_indices = @transform_18, window_bounds = array<i64: 512, 512>}, {pipeline_mode = #tpu.pipeline_mode<synchronous>, transform_indices = @transform_19, window_bounds = array<i64: 1, 512>}, {pipeline_mode = #tpu.pipeline_mode<synchronous>, transform_indices = @transform_20, window_bounds = array<i64: 512, 256>}, {pipeline_mode = #tpu.pipeline_mode<synchronous>, transform_indices = @transform_21, window_bounds = array<i64: 1, 256>}, {transform_indices = @transform_22, window_bounds = array<i64: 8, 512>}, {transform_indices = @transform_23, window_bounds = array<i64: 8, 256>}]} {
    %c0 = arith.constant 0 : index
    %0 = memref.load %arg1[%c0] : memref<1xf32, #tpu.memory_space<smem>>
    %c0_0 = arith.constant 0 : index
    %c0_1 = arith.constant 0 : index
    %1 = vector.load %arg2[%c0_0, %c0_1] : memref<8x256xbf16, #tpu.memory_space<vmem>>, vector<8x256xbf16>
    %c0_2 = arith.constant 0 : index
    %c0_3 = arith.constant 0 : index
    %2 = vector.load %arg5[%c0_2, %c0_3] : memref<256x1024xbf16, #tpu.memory_space<vmem>>, vector<256x1024xbf16>
    %cst = arith.constant dense<0.000000e+00> : vector<8x1024xf32>
    %3 = tpu.matmul %1, %2, %cst {dimension_numbers = #tpu.dot_dimension_numbers<[1], [0], [0], [1], [0, 0, 1, 1], [], []>} : vector<8x256xbf16>, vector<256x1024xbf16>, vector<8x1024xf32> -> vector<8x1024xf32>
    %4 = vector.extract_strided_slice %3 {offsets = [0, 0], sizes = [8, 512], strides = [1, 1]} : vector<8x1024xf32> to vector<8x512xf32>
    %c0_4 = arith.constant 0 : index
    %c0_5 = arith.constant 0 : index
    %5 = vector.load %arg6[%c0_4, %c0_5] : memref<1x512xf32, #tpu.memory_space<vmem>>, vector<1x512xf32>
    %6 = vector.broadcast %5 : vector<1x512xf32> to vector<8x512xf32>
    %7 = arith.addf %4, %6 : vector<8x512xf32>
    %cst_6 = arith.constant 0.000000e+00 : f32
    %8 = vector.broadcast %cst_6 : f32 to vector<8x512xf32>
    %9 = arith.maximumf %7, %8 : vector<8x512xf32>
    %10 = vector.extract_strided_slice %3 {offsets = [0, 512], sizes = [8, 512], strides = [1, 1]} : vector<8x1024xf32> to vector<8x512xf32>
    %11 = arith.truncf %9 : vector<8x512xf32> to vector<8x512xbf16>
    %c0_7 = arith.constant 0 : index
    %c0_8 = arith.constant 0 : index
    %12 = vector.load %arg7[%c0_7, %c0_8] : memref<512x512xbf16, #tpu.memory_space<vmem>>, vector<512x512xbf16>
    %cst_9 = arith.constant dense<0.000000e+00> : vector<8x512xf32>
    %13 = tpu.matmul %11, %12, %cst_9 {dimension_numbers = #tpu.dot_dimension_numbers<[1], [0], [0], [1], [0, 0, 1, 1], [], []>} : vector<8x512xbf16>, vector<512x512xbf16>, vector<8x512xf32> -> vector<8x512xf32>
    %c0_10 = arith.constant 0 : index
    %c0_11 = arith.constant 0 : index
    %14 = vector.load %arg8[%c0_10, %c0_11] : memref<1x512xf32, #tpu.memory_space<vmem>>, vector<1x512xf32>
    %15 = vector.broadcast %14 : vector<1x512xf32> to vector<8x512xf32>
    %16 = arith.addf %13, %15 : vector<8x512xf32>
    %cst_12 = arith.constant 0.000000e+00 : f32
    %17 = vector.broadcast %cst_12 : f32 to vector<8x512xf32>
    %18 = arith.maximumf %16, %17 : vector<8x512xf32>
    %19 = arith.truncf %18 : vector<8x512xf32> to vector<8x512xbf16>
    %c0_13 = arith.constant 0 : index
    %c0_14 = arith.constant 0 : index
    %20 = vector.load %arg9[%c0_13, %c0_14] : memref<512x16xbf16, #tpu.memory_space<vmem>>, vector<512x16xbf16>
    %cst_15 = arith.constant dense<0.000000e+00> : vector<8x16xf32>
    %21 = tpu.matmul %19, %20, %cst_15 {dimension_numbers = #tpu.dot_dimension_numbers<[1], [0], [0], [1], [0, 0, 1, 1], [], []>} : vector<8x512xbf16>, vector<512x16xbf16>, vector<8x16xf32> -> vector<8x16xf32>
    %c0_16 = arith.constant 0 : index
    %c0_17 = arith.constant 0 : index
    %22 = vector.load %arg10[%c0_16, %c0_17] : memref<1x16xf32, #tpu.memory_space<vmem>>, vector<1x16xf32>
    %23 = vector.broadcast %22 : vector<1x16xf32> to vector<8x16xf32>
    %24 = arith.addf %21, %23 : vector<8x16xf32>
    %cst_18 = arith.constant dense<0xFF800000> : vector<8xf32>
    %25 = vector.multi_reduction <maximumf>, %24, %cst_18 [1] : vector<8x16xf32> to vector<8xf32>
    %26 = vector.shape_cast %25 : vector<8xf32> to vector<8x1xf32>
    %27 = vector.broadcast %26 : vector<8x1xf32> to vector<8x16xf32>
    %28 = arith.subf %24, %27 : vector<8x16xf32>
    %29 = math.exp %28 : vector<8x16xf32>
    %cst_19 = arith.constant dense<0.000000e+00> : vector<8xf32>
    %30 = vector.multi_reduction <add>, %29, %cst_19 [1] : vector<8x16xf32> to vector<8xf32>
    %31 = vector.shape_cast %30 : vector<8xf32> to vector<8x1xf32>
    %32 = vector.broadcast %31 : vector<8x1xf32> to vector<8x16xf32>
    %33 = arith.divf %29, %32 : vector<8x16xf32>
    %c0_20 = arith.constant 0 : index
    %c0_21 = arith.constant 0 : index
    %34 = vector.load %arg3[%c0_20, %c0_21] : memref<8x16xf32, #tpu.memory_space<vmem>>, vector<8x16xf32>
    %35 = arith.addf %24, %34 : vector<8x16xf32>
    %36 = vector.broadcast %0 : f32 to vector<8x16xf32>
    %37 = arith.mulf %35, %36 : vector<8x16xf32>
    %cst_22 = arith.constant dense<0xFF800000> : vector<8xf32>
    %38 = vector.multi_reduction <maximumf>, %37, %cst_22 [1] : vector<8x16xf32> to vector<8xf32>
    %39 = vector.shape_cast %38 : vector<8xf32> to vector<8x1xf32>
    %40 = vector.broadcast %39 : vector<8x1xf32> to vector<8x16xf32>
    %41 = arith.subf %37, %40 : vector<8x16xf32>
    %42 = math.exp %41 : vector<8x16xf32>
    %cst_23 = arith.constant dense<0.000000e+00> : vector<8xf32>
    %43 = vector.multi_reduction <add>, %42, %cst_23 [1] : vector<8x16xf32> to vector<8xf32>
    %44 = vector.shape_cast %43 : vector<8xf32> to vector<8x1xf32>
    %45 = vector.broadcast %44 : vector<8x1xf32> to vector<8x16xf32>
    %46 = arith.divf %42, %45 : vector<8x16xf32>
    %47 = arith.truncf %46 : vector<8x16xf32> to vector<8x16xbf16>
    %c0_24 = arith.constant 0 : index
    %c0_25 = arith.constant 0 : index
    %48 = vector.load %arg11[%c0_24, %c0_25] : memref<16x640xbf16, #tpu.memory_space<vmem>>, vector<16x640xbf16>
    %cst_26 = arith.constant dense<0.000000e+00> : vector<8x640xf32>
    %49 = tpu.matmul %47, %48, %cst_26 {dimension_numbers = #tpu.dot_dimension_numbers<[1], [0], [0], [1], [0, 0, 1, 1], [], []>} : vector<8x16xbf16>, vector<16x640xbf16>, vector<8x640xf32> -> vector<8x640xf32>
    %c0_27 = arith.constant 0 : index
    %c0_28 = arith.constant 0 : index
    %50 = vector.load %arg12[%c0_27, %c0_28] : memref<1x640xf32, #tpu.memory_space<vmem>>, vector<1x640xf32>
    %51 = vector.broadcast %50 : vector<1x640xf32> to vector<8x640xf32>
    %52 = arith.addf %49, %51 : vector<8x640xf32>
    %53 = vector.extract_strided_slice %52 {offsets = [0, 0], sizes = [8, 512], strides = [1, 1]} : vector<8x640xf32> to vector<8x512xf32>
    %54 = arith.addf %10, %53 : vector<8x512xf32>
    %cst_29 = arith.constant 0.000000e+00 : f32
    %55 = vector.broadcast %cst_29 : f32 to vector<8x512xf32>
    %56 = arith.maximumf %54, %55 : vector<8x512xf32>
    %57 = arith.truncf %56 : vector<8x512xf32> to vector<8x512xbf16>
    %c0_30 = arith.constant 0 : index
    %c0_31 = arith.constant 0 : index
    %58 = vector.load %arg13[%c0_30, %c0_31] : memref<512x512xbf16, #tpu.memory_space<vmem>>, vector<512x512xbf16>
    %cst_32 = arith.constant dense<0.000000e+00> : vector<8x512xf32>
    %59 = tpu.matmul %57, %58, %cst_32 {dimension_numbers = #tpu.dot_dimension_numbers<[1], [0], [0], [1], [0, 0, 1, 1], [], []>} : vector<8x512xbf16>, vector<512x512xbf16>, vector<8x512xf32> -> vector<8x512xf32>
    %c0_33 = arith.constant 0 : index
    %c0_34 = arith.constant 0 : index
    %60 = vector.load %arg14[%c0_33, %c0_34] : memref<1x512xf32, #tpu.memory_space<vmem>>, vector<1x512xf32>
    %61 = vector.broadcast %60 : vector<1x512xf32> to vector<8x512xf32>
    %62 = arith.addf %59, %61 : vector<8x512xf32>
    %cst_35 = arith.constant 0.000000e+00 : f32
    %63 = vector.broadcast %cst_35 : f32 to vector<8x512xf32>
    %64 = arith.maximumf %62, %63 : vector<8x512xf32>
    %65 = arith.truncf %64 : vector<8x512xf32> to vector<8x512xbf16>
    %c0_36 = arith.constant 0 : index
    %c0_37 = arith.constant 0 : index
    %66 = vector.load %arg15[%c0_36, %c0_37] : memref<512x128xbf16, #tpu.memory_space<vmem>>, vector<512x128xbf16>
    %cst_38 = arith.constant dense<0.000000e+00> : vector<8x128xf32>
    %67 = tpu.matmul %65, %66, %cst_38 {dimension_numbers = #tpu.dot_dimension_numbers<[1], [0], [0], [1], [0, 0, 1, 1], [], []>} : vector<8x512xbf16>, vector<512x128xbf16>, vector<8x128xf32> -> vector<8x128xf32>
    %c0_39 = arith.constant 0 : index
    %c0_40 = arith.constant 0 : index
    %68 = vector.load %arg16[%c0_39, %c0_40] : memref<1x128xf32, #tpu.memory_space<vmem>>, vector<1x128xf32>
    %69 = vector.broadcast %68 : vector<1x128xf32> to vector<8x128xf32>
    %70 = arith.addf %67, %69 : vector<8x128xf32>
    %71 = tpu.iota {dimensions = array<i32: 1>} : vector<8x128xi32>
    %c64_i32 = arith.constant 64 : i32
    %72 = vector.broadcast %c64_i32 : i32 to vector<8x128xi32>
    %73 = arith.cmpi sge, %71, %72 : vector<8x128xi32>
    %cst_41 = arith.constant 0.000000e+00 : f32
    %74 = vector.broadcast %cst_41 : f32 to vector<8x128xf32>
    %75 = arith.maximumf %70, %74 : vector<8x128xf32>
    %76 = math.absf %70 : vector<8x128xf32>
    %cst_42 = arith.constant 0.000000e+00 : f32
    %77 = vector.broadcast %cst_42 : f32 to vector<8x128xf32>
    %78 = arith.subf %77, %76 : vector<8x128xf32>
    %79 = math.exp %78 : vector<8x128xf32>
    %cst_43 = arith.constant 1.000000e+00 : f32
    %80 = vector.broadcast %cst_43 : f32 to vector<8x128xf32>
    %81 = arith.addf %80, %79 : vector<8x128xf32>
    %82 = math.log %81 : vector<8x128xf32>
    %83 = arith.addf %75, %82 : vector<8x128xf32>
    %84 = arith.select %73, %83, %70 : vector<8x128xi1>, vector<8x128xf32>
    %85 = vector.extract_strided_slice %84 {offsets = [0, 0], sizes = [8, 64], strides = [1, 1]} : vector<8x128xf32> to vector<8x64xf32>
    %86 = vector.extract_strided_slice %84 {offsets = [0, 64], sizes = [8, 64], strides = [1, 1]} : vector<8x128xf32> to vector<8x64xf32>
    %c0_44 = arith.constant 0 : index
    %c0_45 = arith.constant 0 : index
    %87 = vector.load %arg4[%c0_44, %c0_45] : memref<8x64xf32, #tpu.memory_space<vmem>>, vector<8x64xf32>
    %cst_46 = arith.constant 1.000000e-10 : f32
    %88 = vector.broadcast %cst_46 : f32 to vector<8x64xf32>
    %89 = arith.addf %86, %88 : vector<8x64xf32>
    %90 = math.sqrt %89 : vector<8x64xf32>
    %91 = arith.mulf %87, %90 : vector<8x64xf32>
    %92 = arith.addf %85, %91 : vector<8x64xf32>
    %93 = vector.extract_strided_slice %52 {offsets = [0, 512], sizes = [8, 128], strides = [1, 1]} : vector<8x640xf32> to vector<8x128xf32>
    %c64_i32_47 = arith.constant 64 : i32
    %94 = vector.broadcast %c64_i32_47 : i32 to vector<8x128xi32>
    %95 = arith.cmpi sge, %71, %94 : vector<8x128xi32>
    %cst_48 = arith.constant 0.000000e+00 : f32
    %96 = vector.broadcast %cst_48 : f32 to vector<8x128xf32>
    %97 = arith.maximumf %93, %96 : vector<8x128xf32>
    %98 = math.absf %93 : vector<8x128xf32>
    %cst_49 = arith.constant 0.000000e+00 : f32
    %99 = vector.broadcast %cst_49 : f32 to vector<8x128xf32>
    %100 = arith.subf %99, %98 : vector<8x128xf32>
    %101 = math.exp %100 : vector<8x128xf32>
    %cst_50 = arith.constant 1.000000e+00 : f32
    %102 = vector.broadcast %cst_50 : f32 to vector<8x128xf32>
    %103 = arith.addf %102, %101 : vector<8x128xf32>
    %104 = math.log %103 : vector<8x128xf32>
    %105 = arith.addf %97, %104 : vector<8x128xf32>
    %106 = arith.select %95, %105, %93 : vector<8x128xi1>, vector<8x128xf32>
    %107 = arith.truncf %92 : vector<8x64xf32> to vector<8x64xbf16>
    %c0_51 = arith.constant 0 : index
    %c0_52 = arith.constant 0 : index
    %108 = vector.load %arg17[%c0_51, %c0_52] : memref<64x512xbf16, #tpu.memory_space<vmem>>, vector<64x512xbf16>
    %cst_53 = arith.constant dense<0.000000e+00> : vector<8x512xf32>
    %109 = tpu.matmul %107, %108, %cst_53 {dimension_numbers = #tpu.dot_dimension_numbers<[1], [0], [0], [1], [0, 0, 1, 1], [], []>} : vector<8x64xbf16>, vector<64x512xbf16>, vector<8x512xf32> -> vector<8x512xf32>
    %c0_54 = arith.constant 0 : index
    %c0_55 = arith.constant 0 : index
    %110 = vector.load %arg18[%c0_54, %c0_55] : memref<1x512xf32, #tpu.memory_space<vmem>>, vector<1x512xf32>
    %111 = vector.broadcast %110 : vector<1x512xf32> to vector<8x512xf32>
    %112 = arith.addf %109, %111 : vector<8x512xf32>
    %cst_56 = arith.constant 0.000000e+00 : f32
    %113 = vector.broadcast %cst_56 : f32 to vector<8x512xf32>
    %114 = arith.maximumf %112, %113 : vector<8x512xf32>
    %115 = arith.truncf %114 : vector<8x512xf32> to vector<8x512xbf16>
    %c0_57 = arith.constant 0 : index
    %c0_58 = arith.constant 0 : index
    %116 = vector.load %arg19[%c0_57, %c0_58] : memref<512x512xbf16, #tpu.memory_space<vmem>>, vector<512x512xbf16>
    %cst_59 = arith.constant dense<0.000000e+00> : vector<8x512xf32>
    %117 = tpu.matmul %115, %116, %cst_59 {dimension_numbers = #tpu.dot_dimension_numbers<[1], [0], [0], [1], [0, 0, 1, 1], [], []>} : vector<8x512xbf16>, vector<512x512xbf16>, vector<8x512xf32> -> vector<8x512xf32>
    %c0_60 = arith.constant 0 : index
    %c0_61 = arith.constant 0 : index
    %118 = vector.load %arg20[%c0_60, %c0_61] : memref<1x512xf32, #tpu.memory_space<vmem>>, vector<1x512xf32>
    %119 = vector.broadcast %118 : vector<1x512xf32> to vector<8x512xf32>
    %120 = arith.addf %117, %119 : vector<8x512xf32>
    %cst_62 = arith.constant 0.000000e+00 : f32
    %121 = vector.broadcast %cst_62 : f32 to vector<8x512xf32>
    %122 = arith.maximumf %120, %121 : vector<8x512xf32>
    %123 = arith.truncf %122 : vector<8x512xf32> to vector<8x512xbf16>
    %c0_63 = arith.constant 0 : index
    %c0_64 = arith.constant 0 : index
    %124 = vector.load %arg21[%c0_63, %c0_64] : memref<512x256xbf16, #tpu.memory_space<vmem>>, vector<512x256xbf16>
    %cst_65 = arith.constant dense<0.000000e+00> : vector<8x256xf32>
    %125 = tpu.matmul %123, %124, %cst_65 {dimension_numbers = #tpu.dot_dimension_numbers<[1], [0], [0], [1], [0, 0, 1, 1], [], []>} : vector<8x512xbf16>, vector<512x256xbf16>, vector<8x256xf32> -> vector<8x256xf32>
    %c0_66 = arith.constant 0 : index
    %c0_67 = arith.constant 0 : index
    %126 = vector.load %arg22[%c0_66, %c0_67] : memref<1x256xf32, #tpu.memory_space<vmem>>, vector<1x256xf32>
    %127 = vector.broadcast %126 : vector<1x256xf32> to vector<8x256xf32>
    %128 = arith.addf %125, %127 : vector<8x256xf32>
    %cst_68 = arith.constant 0.000000e+00 : f32
    %129 = vector.broadcast %cst_68 : f32 to vector<8x64xf32>
    %130 = tpu.concatenate %92, %129 in 1 : vector<8x64xf32>, vector<8x64xf32> -> vector<8x128xf32>
    %131 = tpu.concatenate %24, %33, %46 in 1 : vector<8x16xf32>, vector<8x16xf32>, vector<8x16xf32> -> vector<8x48xf32>
    %cst_69 = arith.constant 0.000000e+00 : f32
    %132 = vector.broadcast %cst_69 : f32 to vector<8x80xf32>
    %133 = tpu.concatenate %131, %132 in 1 : vector<8x48xf32>, vector<8x80xf32> -> vector<8x128xf32>
    %134 = tpu.concatenate %84, %130, %106, %133 in 1 : vector<8x128xf32>, vector<8x128xf32>, vector<8x128xf32>, vector<8x128xf32> -> vector<8x512xf32>
    %c0_70 = arith.constant 0 : index
    %c0_71 = arith.constant 0 : index
    %135 = vector.load %arg23[%c0_70, %c0_71] : memref<8x512xf32, #tpu.memory_space<vmem>>, vector<8x512xf32>
    tpu.vector_store %arg23[%c0_70, %c0_71], %134 {strides = array<i32>} : memref<8x512xf32, #tpu.memory_space<vmem>>, vector<8x512xf32>,
    %136 = arith.truncf %128 : vector<8x256xf32> to vector<8x256xbf16>
    %c0_72 = arith.constant 0 : index
    %c0_73 = arith.constant 0 : index
    %137 = vector.load %arg24[%c0_72, %c0_73] : memref<8x256xbf16, #tpu.memory_space<vmem>>, vector<8x256xbf16>
    tpu.vector_store %arg24[%c0_72, %c0_73], %136 {strides = array<i32>} : memref<8x256xbf16, #tpu.memory_space<vmem>>, vector<8x256xbf16>,
    return
  }
  func.func @transform_0(%arg0: i32) -> i32 {
    %c0_i32 = arith.constant 0 : i32
    %c0_i32_0 = arith.constant 0 : i32
    return %c0_i32 : i32
  }
  func.func @transform_1(%arg0: i32) -> (i32, i32) {
    %c0_i32 = arith.constant 0 : i32
    %c0_i32_0 = arith.constant 0 : i32
    return %arg0, %c0_i32 : i32, i32
  }
  func.func @transform_2(%arg0: i32) -> (i32, i32) {
    %c0_i32 = arith.constant 0 : i32
    %c0_i32_0 = arith.constant 0 : i32
    return %arg0, %c0_i32 : i32, i32
  }
  func.func @transform_3(%arg0: i32) -> (i32, i32) {
    %c0_i32 = arith.constant 0 : i32
    %c0_i32_0 = arith.constant 0 : i32
    return %arg0, %c0_i32 : i32, i32
  }
  func.func @transform_4(%arg0: i32) -> (i32, i32) {
    %c0_i32 = arith.constant 0 : i32
    %c0_i32_0 = arith.constant 0 : i32
    %c0_i32_1 = arith.constant 0 : i32
    return %c0_i32, %c0_i32_0 : i32, i32
  }
  func.func @transform_5(%arg0: i32) -> (i32, i32) {
    %c0_i32 = arith.constant 0 : i32
    %c0_i32_0 = arith.constant 0 : i32
    %c0_i32_1 = arith.constant 0 : i32
    return %c0_i32, %c0_i32_0 : i32, i32
  }
  func.func @transform_6(%arg0: i32) -> (i32, i32) {
    %c0_i32 = arith.constant 0 : i32
    %c0_i32_0 = arith.constant 0 : i32
    %c0_i32_1 = arith.constant 0 : i32
    return %c0_i32, %c0_i32_0 : i32, i32
  }
  func.func @transform_7(%arg0: i32) -> (i32, i32) {
    %c0_i32 = arith.constant 0 : i32
    %c0_i32_0 = arith.constant 0 : i32
    %c0_i32_1 = arith.constant 0 : i32
    return %c0_i32, %c0_i32_0 : i32, i32
  }
  func.func @transform_8(%arg0: i32) -> (i32, i32) {
    %c0_i32 = arith.constant 0 : i32
    %c0_i32_0 = arith.constant 0 : i32
    %c0_i32_1 = arith.constant 0 : i32
    return %c0_i32, %c0_i32_0 : i32, i32
  }
  func.func @transform_9(%arg0: i32) -> (i32, i32) {
    %c0_i32 = arith.constant 0 : i32
    %c0_i32_0 = arith.constant 0 : i32
    %c0_i32_1 = arith.constant 0 : i32
    return %c0_i32, %c0_i32_0 : i32, i32
  }
  func.func @transform_10(%arg0: i32) -> (i32, i32) {
    %c0_i32 = arith.constant 0 : i32
    %c0_i32_0 = arith.constant 0 : i32
    %c0_i32_1 = arith.constant 0 : i32
    return %c0_i32, %c0_i32_0 : i32, i32
  }
  func.func @transform_11(%arg0: i32) -> (i32, i32) {
    %c0_i32 = arith.constant 0 : i32
    %c0_i32_0 = arith.constant 0 : i32
    %c0_i32_1 = arith.constant 0 : i32
    return %c0_i32, %c0_i32_0 : i32, i32
  }
  func.func @transform_12(%arg0: i32) -> (i32, i32) {
    %c0_i32 = arith.constant 0 : i32
    %c0_i32_0 = arith.constant 0 : i32
    %c0_i32_1 = arith.constant 0 : i32
    return %c0_i32, %c0_i32_0 : i32, i32
  }
  func.func @transform_13(%arg0: i32) -> (i32, i32) {
    %c0_i32 = arith.constant 0 : i32
    %c0_i32_0 = arith.constant 0 : i32
    %c0_i32_1 = arith.constant 0 : i32
    return %c0_i32, %c0_i32_0 : i32, i32
  }
  func.func @transform_14(%arg0: i32) -> (i32, i32) {
    %c0_i32 = arith.constant 0 : i32
    %c0_i32_0 = arith.constant 0 : i32
    %c0_i32_1 = arith.constant 0 : i32
    return %c0_i32, %c0_i32_0 : i32, i32
  }
  func.func @transform_15(%arg0: i32) -> (i32, i32) {
    %c0_i32 = arith.constant 0 : i32
    %c0_i32_0 = arith.constant 0 : i32
    %c0_i32_1 = arith.constant 0 : i32
    return %c0_i32, %c0_i32_0 : i32, i32
  }
  func.func @transform_16(%arg0: i32) -> (i32, i32) {
    %c0_i32 = arith.constant 0 : i32
    %c0_i32_0 = arith.constant 0 : i32
    %c0_i32_1 = arith.constant 0 : i32
    return %c0_i32, %c0_i32_0 : i32, i32
  }
  func.func @transform_17(%arg0: i32) -> (i32, i32) {
    %c0_i32 = arith.constant 0 : i32
    %c0_i32_0 = arith.constant 0 : i32
    %c0_i32_1 = arith.constant 0 : i32
    return %c0_i32, %c0_i32_0 : i32, i32
  }
  func.func @transform_18(%arg0: i32) -> (i32, i32) {
    %c0_i32 = arith.constant 0 : i32
    %c0_i32_0 = arith.constant 0 : i32
    %c0_i32_1 = arith.constant 0 : i32
    return %c0_i32, %c0_i32_0 : i32, i32
  }
  func.func @transform_19(%arg0: i32) -> (i32, i32) {
    %c0_i32 = arith.constant 0 : i32
    %c0_i32_0 = arith.constant 0 : i32
    %c0_i32_1 = arith.constant 0 : i32
    return %c0_i32, %c0_i32_0 : i32, i32
  }
  func.func @transform_20(%arg0: i32) -> (i32, i32) {
    %c0_i32 = arith.constant 0 : i32
    %c0_i32_0 = arith.constant 0 : i32
    %c0_i32_1 = arith.constant 0 : i32
    return %c0_i32, %c0_i32_0 : i32, i32
  }
  func.func @transform_21(%arg0: i32) -> (i32, i32) {
    %c0_i32 = arith.constant 0 : i32
    %c0_i32_0 = arith.constant 0 : i32
    %c0_i32_1 = arith.constant 0 : i32
    return %c0_i32, %c0_i32_0 : i32, i32
  }
  func.func @transform_22(%arg0: i32) -> (i32, i32) {
    %c0_i32 = arith.constant 0 : i32
    %c0_i32_0 = arith.constant 0 : i32
    return %arg0, %c0_i32 : i32, i32
  }
  func.func @transform_23(%arg0: i32) -> (i32, i32) {
    %c0_i32 = arith.constant 0 : i32
    %c0_i32_0 = arith.constant 0 : i32
    return %arg0, %c0_i32 : i32, i32
  }
}

</mosaic_0001>

<bundles_post_ra>
// kernel: tpu_custom_call.1
= control target key start
LH: loop header
LB: loop body
LE: loop exit
PB: predicated region body
PF: predicated region fallthrough
CT: control target
= control target key end

     0   :  { %s10275_s0 = inlined_call_operand.<no memory space> [shape: f32[1], index: 0, kind: input, shape index: {}]   ;;  %s10276_s1 = inlined_call_operand.hbm [shape: bf16[8,256], index: 1, kind: input, shape index: {}]   ;;  %s10277_s2 = inlined_call_operand.hbm [shape: f32[8,16], index: 2, kind: input, shape index: {}]   ;;  %s10278_s3 = inlined_call_operand.hbm [shape: f32[8,64], index: 3, kind: input, shape index: {}]   ;;  %s10279_s4 = inlined_call_operand.hbm [shape: bf16[256,1024], index: 4, kind: input, shape index: {}]   ;;  %s10280_s5 = inlined_call_operand.hbm [shape: f32[1,512], index: 5, kind: input, shape index: {}]   ;;  %s10281_s6 = inlined_call_operand.hbm [shape: bf16[512,512], index: 6, kind: input, shape index: {}]   ;;  %s10282_s7 = inlined_call_operand.hbm [shape: f32[1,512], index: 7, kind: input, shape index: {}]   ;;  %s10283_s8 = inlined_call_operand.vmem [shape: bf16[512,16], index: 8, kind: input, shape index: {}]   ;;  %s10284_s9 = inlined_call_operand.hbm [shape: f32[1,16], index: 9, kind: input, shape index: {}]   ;;  %s10285_s10 = inlined_call_operand.vmem [shape: bf16[16,640], index: 10, kind: input, shape index: {}]   ;;  %s10286_s11 = inlined_call_operand.vmem [shape: f32[1,640], index: 11, kind: input, shape index: {}]   ;;  %s10287_s12 = inlined_call_operand.hbm [shape: bf16[512,512], index: 12, kind: input, shape index: {}]   ;;  %s10288_s13 = inlined_call_operand.hbm [shape: f32[1,512], index: 13, kind: input, shape index: {}]   ;;  %s10289_s14 = inlined_call_operand.vmem [shape: bf16[512,128], index: 14, kind: input, shape index: {}]   ;;  %s10290_s15 = inlined_call_operand.hbm [shape: f32[1,128], index: 15, kind: input, shape index: {}]   ;;  %s10291_s16 = inlined_call_operand.hbm [shape: bf16[64,512], index: 16, kind: input, shape index: {}]   ;;  %s10292_s17 = inlined_call_operand.hbm [shape: f32[1,512], index: 17, kind: input, shape index: {}]   ;;  %s10293_s18 = inlined_call_operand.hbm [shape: bf16[512,512], index: 18, kind: input, shape index: {}]   ;;  %s10294_s19 = inlined_call_operand.vmem [shape: f32[1,512], index: 19, kind: input, shape index: {}]   ;;  %s10295_s20 = inlined_call_operand.hbm [shape: bf16[512,256], index: 20, kind: input, shape index: {}]   ;;  %s10296_s21 = inlined_call_operand.vmem [shape: f32[1,256], index: 21, kind: input, shape index: {}]   ;;  %s10297_s22 = inlined_call_operand.hbm [shape: f32[8,512], index: 22, kind: output, shape index: {0}]   ;;  %s10298_s23 = inlined_call_operand.hbm [shape: bf16[8,256], index: 23, kind: output, shape index: {1}]  }
   0x1   :  { %10299 = sst [smem:[#allocation40_spill]] %s10275_s0 }
   0x2   :  { %10300 = sst [smem:[#allocation41_spill]] %s10276_s1 }
   0x3   :  { %10301 = sst [smem:[#allocation42_spill]] %s10277_s2 }
   0x4   :  { %10302 = sst [smem:[#allocation43_spill]] %s10278_s3 }
   0x5   :  { %10303 = sst [smem:[#allocation44_spill]] %s10279_s4 }
   0x6   :  { %10304 = sst [smem:[#allocation45_spill]] %s10280_s5 }
   0x7   :  { %10305 = sst [smem:[#allocation46_spill]] %s10281_s6 }
   0x8   :  { %10306 = sst [smem:[#allocation47_spill]] %s10282_s7 }
   0x9   :  { %10307 = sst [smem:[#allocation48_spill]] %s10296_s21 }
   0xa   :  { %10308 = sst [smem:[#allocation49_spill]] %s10298_s23 }
   0xb   :  { %30 = vsyncpa [#allocation4], 0 }
   0xc   :  { %31 = vsyncpa [#allocation7], 0 }
   0xd   :  { %32 = vsyncpa [#allocation10], 0 }
   0xe   :  { %33 = vsyncpa [#allocation13], 0 }
   0xf   :  { %34 = vsyncpa [#allocation16], 0 }
  0x10   :  { %35 = vsyncpa [#allocation19], 0 }
  0x11   :  { %36 = vsyncpa [#allocation22], 0 }
  0x12   :  { %37 = vsyncpa [#allocation25], 0 }
  0x13   :  { %38 = vsyncpa [#allocation5], 0  ;;  %s10309_s24 = sld [smem:[#allocation42_spill]] }
  0x19   :  { %s58_s25 = sshll.u32 %s10309_s24, 4  ;;  %s59_s25 = int_to_ptr.hbm [resolvable:$true] %s58_s25 }
  0x1a   :  { %39 = vsyncpa [#allocation29], 0  ;;  %s9637_s5 = smov [#allocation6]   ;;  %s10310_s6 = sld [smem:[#allocation44_spill]] }
  0x1b   :  { %s60_s1 = sshll.u32 %s9637_s5, 4  ;;  %s9638_s7 = smov [#allocation9]   ;;  %s61_s1 = int_to_ptr.vmem [resolvable:$true] %s60_s1 }
  0x1c   :  { %63 = dma.hbm_to_vmem [thread:$0]  %s59_s25, 128, %s61_s1, [#allocation7]  }
  0x1d   :  { %s81_s28 = sshll.u32 %s9638_s7, 4  ;;  %s9639_s29 = smov 512   ;;  %s82_s28 = int_to_ptr.vmem [resolvable:$true] %s81_s28 }
  0x1e   :  { %s9640_s3 = smov 32   ;;  %s10311_s30 = sld [smem:[#allocation46_spill]] }
  0x1f   :  { %s9641_s5 = smov [#allocation12]   ;;  %s130_s25 = sshll.u32 %s10284_s9, 4  ;;  %s131_s25 = int_to_ptr.hbm [resolvable:$true] %s130_s25 }
  0x20   :  { %s79_s27 = sshll.u32 %s10310_s6, 4  ;;  %s105_s23 = sshll.u32 %s9641_s5, 4  ;;  %s80_s27 = int_to_ptr.hbm [resolvable:$true] %s79_s27  ;;  %s106_s23 = int_to_ptr.vmem [resolvable:$true] %s105_s23 }
  0x21   :  { %87 = dma.hbm_to_vmem [thread:$0]  %s80_s27, 16384, %s82_s28, [#allocation10], %s9639_s29, %s9639_s29, %s9640_s3  }
  0x22   :  { %s9642_s1 = smov 256   ;;  %s9643_s2 = smov 16  }
  0x23   :  { %s9644_s6 = smov [#allocation15]   ;;  %s158_s29 = sshll.u32 %s10288_s13, 4  ;;  %s159_s29 = int_to_ptr.hbm [resolvable:$true] %s158_s29 }
  0x24   :  { %s103_s24 = sshll.u32 %s10311_s30, 4  ;;  %s132_s27 = sshll.u32 %s9644_s6, 4  ;;  %s104_s24 = int_to_ptr.hbm [resolvable:$true] %s103_s24  ;;  %s133_s27 = int_to_ptr.vmem [resolvable:$true] %s132_s27 }
  0x25   :  { %111 = dma.hbm_to_vmem [thread:$0]  %s104_s24, 16384, %s106_s23, [#allocation13], %s9642_s1, %s9642_s1, %s9643_s2  }
  0x26   :  { %135 = dma.hbm_to_vmem [thread:$0]  %s131_s25, 16, %s133_s27, [#allocation16]  }
  0x27   :  { %s181_s9 = sshll.u32 %s10291_s16, 4  ;;  %s9645_s21 = smov [#allocation18]   ;;  %s182_s9 = int_to_ptr.hbm [resolvable:$true] %s181_s9 }
  0x28   :  { %s160_s30 = sshll.u32 %s9645_s21, 4  ;;  %s9646_s23 = smov [#allocation21]   ;;  %s161_s30 = int_to_ptr.vmem [resolvable:$true] %s160_s30 }
  0x29   :  { %163 = dma.hbm_to_vmem [thread:$0]  %s159_s29, 64, %s161_s30, [#allocation19]  }
  0x2a   :  { %s183_s24 = sshll.u32 %s9646_s23, 4  ;;  %s205_s6 = sshll.u32 %s10293_s18, 4  ;;  %s184_s24 = int_to_ptr.vmem [resolvable:$true] %s183_s24  ;;  %s206_s6 = int_to_ptr.hbm [resolvable:$true] %s205_s6 }
  0x2b   :  { %189 = dma.hbm_to_vmem [thread:$0]  %s182_s9, 2048, %s184_s24, [#allocation22], %s9642_s1, %s9642_s1, %s9643_s2  }
  0x2c   :  { %s10312_s16 = sld [smem:[#allocation41_spill]]  ;;  %s9647_s7 = smov [#allocation24]  }
  0x2d   :  { %s207_s28 = sshll.u32 %s9647_s7, 4  ;;  %s9648_s29 = smov [#allocation3]   ;;  %s208_s28 = int_to_ptr.vmem [resolvable:$true] %s207_s28 }
  0x2e   :  { %213 = dma.hbm_to_vmem [thread:$0]  %s206_s6, 16384, %s208_s28, [#allocation25], %s9642_s1, %s9642_s1, %s9643_s2  }
  0x2f   :  { %s49_s18 = sshll.u32 %s9648_s29, 4  ;;  %s10313_s21 = sld [smem:[#allocation43_spill]]  ;;  %s50_s18 = int_to_ptr.vmem [resolvable:$true] %s49_s18 }
  0x30   :  { %s10314_s24 = sld [smem:[#allocation45_spill]]  ;;  %s9649_s26 = smov [#allocation8]  }
  0x31   :  { %s71_s13 = sshll.u32 %s9649_s26, 4  ;;  %s9650_s25 = smov [#allocation11]   ;;  %s72_s13 = int_to_ptr.vmem [resolvable:$true] %s71_s13 }
  0x32   :  { %s47_s27 = sshll.u32 %s10312_s16, 4  ;;  %s95_s6 = sshll.u32 %s9650_s25, 4  ;;  %s48_s27 = int_to_ptr.hbm [resolvable:$true] %s47_s27  ;;  %s96_s6 = int_to_ptr.vmem [resolvable:$true] %s95_s6 }
  0x33   :  { %52 = dma.hbm_to_vmem [thread:$0]  %s48_s27, 128, %s50_s18, [#allocation4]  }
  0x34   :  { %s10315_s28 = sld [smem:[#allocation47_spill]]  ;;  %s144_s18 = sshll.u32 %s10287_s12, 4  ;;  %s145_s18 = int_to_ptr.hbm [resolvable:$true] %s144_s18 }
  0x35   :  { %s69_s30 = sshll.u32 %s10313_s21, 4  ;;  %s9651_s4 = smov [#allocation14]   ;;  %s70_s30 = int_to_ptr.hbm [resolvable:$true] %s69_s30 }
  0x36   :  { %s93_s5 = sshll.u32 %s10314_s24, 4  ;;  %s119_s21 = sshll.u32 %s9651_s4, 4  ;;  %s94_s5 = int_to_ptr.hbm [resolvable:$true] %s93_s5  ;;  %s120_s21 = int_to_ptr.vmem [resolvable:$true] %s119_s21 }
  0x37   :  { %74 = dma.hbm_to_vmem [thread:$0]  %s70_s30, 128, %s72_s13, [#allocation7]  }
  0x38   :  { %98 = dma.hbm_to_vmem [thread:$0]  %s94_s5, 64, %s96_s6, [#allocation10]  }
  0x39   :  { %s9652_s9 = smov [#allocation17]   ;;  %s171_s26 = sshll.u32 %s10290_s15, 4  ;;  %s172_s26 = int_to_ptr.hbm [resolvable:$true] %s171_s26 }
  0x3a   :  { %s117_s29 = sshll.u32 %s10315_s28, 4  ;;  %s146_s30 = sshll.u32 %s9652_s9, 4  ;;  %s118_s29 = int_to_ptr.hbm [resolvable:$true] %s117_s29  ;;  %s147_s30 = int_to_ptr.vmem [resolvable:$true] %s146_s30 }
  0x3b   :  { %122 = dma.hbm_to_vmem [thread:$0]  %s118_s29, 64, %s120_s21, [#allocation13]  }
  0x3c   :  { %152 = dma.hbm_to_vmem [thread:$0]  %s145_s18, 16384, %s147_s30, [#allocation16], %s9642_s1, %s9642_s1, %s9643_s2  }
  0x3d   :  { %s195_s12 = sshll.u32 %s10292_s17, 4  ;;  %s9653_s25 = smov [#allocation20]   ;;  %s196_s12 = int_to_ptr.hbm [resolvable:$true] %s195_s12 }
  0x3e   :  { %s173_s6 = sshll.u32 %s9653_s25, 4  ;;  %s9654_s16 = smov [#allocation23]   ;;  %s174_s6 = int_to_ptr.vmem [resolvable:$true] %s173_s6 }
  0x3f   :  { %176 = dma.hbm_to_vmem [thread:$0]  %s172_s26, 16, %s174_s6, [#allocation19]  }
  0x40   :  { %s197_s7 = sshll.u32 %s9654_s16, 4  ;;  %s220_s15 = sshll.u32 %s10295_s20, 4  ;;  %s198_s7 = int_to_ptr.vmem [resolvable:$true] %s197_s7  ;;  %s221_s15 = int_to_ptr.hbm [resolvable:$true] %s220_s15 }
  0x41   :  { %200 = dma.hbm_to_vmem [thread:$0]  %s196_s12, 64, %s198_s7, [#allocation22]  }
  0x42   :  { %s9655_s0 = smov [#allocation26]   ;;  %s9656_s27 = smov 128  }
  0x43   :  { %s222_s1 = sshll.u32 %s9655_s0, 4  ;;  %s9657_s18 = smov 8   ;;  %s223_s1 = int_to_ptr.vmem [resolvable:$true] %s222_s1 }
  0x44   :  { %228 = dma.hbm_to_vmem [thread:$0]  %s221_s15, 8192, %s223_s1, [#allocation25], %s9656_s27, %s9656_s27, %s9657_s18  }
  0x45   :  { %9617 = dma.done.wait [#allocation4], 128  }
  0x46   :  { %9618 = vsyncadd [#allocation4], 4294967168 }
  0x47   :  { %9619 = dma.done.wait [#allocation7], 256  }
  0x48   :  { %9620 = vsyncadd [#allocation7], 4294967040 }
  0x49   :  { %9621 = dma.done.wait [#allocation10], 16448  }
  0x4a   :  { %9622 = vsyncadd [#allocation10], 4294950848 }
  0x4b   :  { %9623 = dma.done.wait [#allocation13], 16448  }
  0x4c   :  { %9624 = vsyncadd [#allocation13], 4294950848 }
  0x4d   :  { %9625 = dma.done.wait [#allocation16], 16400  }
  0x4e   :  { %9626 = vsyncadd [#allocation16], 4294950896 }
  0x4f   :  { %9627 = dma.done.wait [#allocation19], 80  }
  0x50   :  { %9628 = vsyncadd [#allocation19], 4294967216 }
  0x51   :  { %9629 = dma.done.wait [#allocation22], 2112  }
  0x52   :  { %9630 = vsyncadd [#allocation22], 4294965184 }
  0x53   :  { %9631 = dma.done.wait [#allocation25], 24576  }
  0x54   :  { %9632 = vsyncadd [#allocation25], 4294942720  ;;  %v6077_v0 = vld [vmem:[#allocation9 + $0x1c0] sm:$0xf]  ;;  %v8560_v5 = vld [vmem:[#allocation9 + $0x1c4] sm:$0xf] }
  0x55   :  { %v8564_v1 = vld [vmem:[#allocation9 + $0x1dc] sm:$0xf0]  ;;  %v6079_v6 = vld [vmem:[#allocation9 + $0x1e0] sm:$0xf0]  ;;  %s10316_s0 = sld [smem:[#allocation40_spill]]  ;;  %vm2605_vm0 = vcmask 130048  }
  0x56   :  { %v6333_v2 = vld [vmem:[#allocation9 + $0x3c0] sm:$0xf]  ;;  %v6078_v3 = vor.u32 %v8564_v1, %v6077_v0  ;;  %v6082_v8 = vor.u32 %v8560_v5, %v6079_v6  ;;  %v8624_v9 = vld [vmem:[#allocation9 + $0x3c4] sm:$0xf]  ;;  %vm4239_vm8 = vcmask 523264   ;;  %vm5801_vm13 = vcmask 261120  }
  0x57   :  { %v8628_v4 = vld [vmem:[#allocation9 + $0x3dc] sm:$0xf0]  ;;  %v6335_v10 = vld [vmem:[#allocation9 + $0x3e0] sm:$0xf0]  ;;  %vm5803_vm14 = vcmask 392192   ;;  %s5818_s23 = sshll.u32 %s10297_s22, 4  ;;  %s5819_s23 = int_to_ptr.hbm [resolvable:$true] %s5818_s23 }
  0x58   :  { %v6334_v7 = vor.u32 %v8628_v4, %v6333_v2  ;;  %v6045_v11 = vld [vmem:[#allocation9 + $0x180] sm:$0xf]  ;;  %1069 = vmatpush.bf16.msra.mxu0 %v6078_v3  ;;  %v6338_v12 = vor.u32 %v8624_v9, %v6335_v10  ;;  %1095 = vmatpush.bf16.msra.mxu2 %v6082_v8  ;;  %v8552_v18 = vld [vmem:[#allocation9 + $0x184] sm:$0xf]  ;;  %s10317_s5 = sld [smem:[#allocation48_spill]]  ;;  %s9660_s22 = smov [#allocation28]  }
  0x59   :  { %v8556_v13 = vld [vmem:[#allocation9 + $0x19c] sm:$0xf0]  ;;  %v6047_v19 = vld [vmem:[#allocation9 + $0x1a0] sm:$0xf0]  ;;  %s5827_s13 = sshll.u32 %s9660_s22, 4  ;;  %s10318_s6 = sld [smem:[#allocation49_spill]]  ;;  %s5828_s13 = int_to_ptr.vmem [resolvable:$true] %s5827_s13 }
  0x5a   :  { %v6301_v14 = vld [vmem:[#allocation9 + $0x380] sm:$0xf]  ;;  %1082 = vmatpush.bf16.msra.mxu1 %v6334_v7  ;;  %v6046_v16 = vor.u32 %v8556_v13, %v6045_v11  ;;  %v8616_v20 = vld [vmem:[#allocation9 + $0x384] sm:$0xf]  ;;  %1108 = vmatpush.bf16.msra.mxu3 %v6338_v12  ;;  %v6050_v21 = vor.u32 %v8552_v18, %v6047_v19 }
  0x5b   :  { %v8620_v15 = vld [vmem:[#allocation9 + $0x39c] sm:$0xf0]  ;;  %v6303_v22 = vld [vmem:[#allocation9 + $0x3a0] sm:$0xf0] }
  0x5c   :  { %v6302_v17 = vor.u32 %v8620_v15, %v6301_v14  ;;  %v6013_v23 = vld [vmem:[#allocation9 + $0x140] sm:$0xf]  ;;  %v6306_v25 = vor.u32 %v8616_v20, %v6303_v22  ;;  %v8544_v28 = vld [vmem:[#allocation9 + $0x144] sm:$0xf]  ;;  %1070 = vmatpush.bf16.msra.mxu0 %v6046_v16  ;;  %1096 = vmatpush.bf16.msra.mxu2 %v6050_v21 }
  0x5d   :  { %v8548_v24 = vld [vmem:[#allocation9 + $0x15c] sm:$0xf0]  ;;  %v6015_v30 = vld [vmem:[#allocation9 + $0x160] sm:$0xf0] }
  0x5e   :  { %v6269_v26 = vld [vmem:[#allocation9 + $0x340] sm:$0xf]  ;;  %v6014_v29 = vor.u32 %v8548_v24, %v6013_v23  ;;  %v8608_v31 = vld [vmem:[#allocation9 + $0x344] sm:$0xf]  ;;  %1083 = vmatpush.bf16.msra.mxu1 %v6302_v17  ;;  %v6018_v34 = vor.u32 %v8544_v28, %v6015_v30  ;;  %1109 = vmatpush.bf16.msra.mxu3 %v6306_v25  ;;  %v293_v24 = vld [vmem:[#allocation3] sm:$0xff] }
  0x5f   :  { %v8612_v27 = vld [vmem:[#allocation9 + $0x35c] sm:$0xf0]  ;;  %v6271_v32 = vld [vmem:[#allocation9 + $0x360] sm:$0xf0]  ;;  %v8565_v30 = vld [vmem:[#allocation9 + $0x1e4] sm:$0xf0] }
  0x60   :  { %v6270_v33 = vor.u32 %v8612_v27, %v6269_v26  ;;  %v5981_v35 = vld [vmem:[#allocation9 + $0x100] sm:$0xf]  ;;  %v6274_v38 = vor.u32 %v8608_v31, %v6271_v32  ;;  %v8536_v40 = vld [vmem:[#allocation9 + $0x104] sm:$0xf]  ;;  %1071 = vmatpush.bf16.msra.mxu0 %v6014_v29  ;;  %1097 = vmatpush.bf16.msra.mxu2 %v6018_v34  ;;  %v6085_v29 = vld [vmem:[#allocation9 + $0x1c8] sm:$0xf] }
  0x61   :  { %v8540_v36 = vld [vmem:[#allocation9 + $0x11c] sm:$0xf0]  ;;  %v5983_v41 = vld [vmem:[#allocation9 + $0x120] sm:$0xf0]  ;;  %v6341_v31 = vld [vmem:[#allocation9 + $0x3c8] sm:$0xf] }
  0x62   :  { %v6237_v37 = vld [vmem:[#allocation9 + $0x300] sm:$0xf]  ;;  %v8600_v42 = vld [vmem:[#allocation9 + $0x304] sm:$0xf]  ;;  %v5982_v44 = vor.u32 %v8540_v36, %v5981_v35  ;;  %1084 = vmatpush.bf16.msra.mxu1 %v6270_v33  ;;  %v5986_v46 = vor.u32 %v8536_v40, %v5983_v41  ;;  %1110 = vmatpush.bf16.msra.mxu3 %v6274_v38  ;;  %v8629_v33 = vld [vmem:[#allocation9 + $0x3e4] sm:$0xf0]  ;;  %v423_v36 = vunpack.c.l.b16 %v293_v24  ;;  %v424_v41 = vunpack.c.h.b16 %v293_v24 }
  0x63   :  { %v8604_v39 = vld [vmem:[#allocation9 + $0x31c] sm:$0xf0]  ;;  %v6239_v43 = vld [vmem:[#allocation9 + $0x320] sm:$0xf0]  ;;  %v8561_v34 = vld [vmem:[#allocation9 + $0x1cc] sm:$0xf] }
  0x64   :  { %v6238_v45 = vor.u32 %v8604_v39, %v6237_v37  ;;  %v5949_v47 = vld [vmem:[#allocation9 + $0xc0] sm:$0xf]  ;;  %v6242_v50 = vor.u32 %v8600_v42, %v6239_v43  ;;  %v8528_v52 = vld [vmem:[#allocation9 + $0xc4] sm:$0xf]  ;;  %1072 = vmatpush.bf16.msra.mxu0 %v5982_v44  ;;  %1098 = vmatpush.bf16.msra.mxu2 %v5986_v46  ;;  %v6087_v35 = vld [vmem:[#allocation9 + $0x1e8] sm:$0xf0]  ;;  %v6086_v43 = vor.u32 %v8565_v30, %v6085_v29 }
  0x65   :  { %v8532_v48 = vld [vmem:[#allocation9 + $0xdc] sm:$0xf0]  ;;  %v5951_v53 = vld [vmem:[#allocation9 + $0xe0] sm:$0xf0]  ;;  %v8625_v39 = vld [vmem:[#allocation9 + $0x3cc] sm:$0xf]  ;;  %v6342_v44 = vor.u32 %v8629_v33, %v6341_v31 }
  0x66   :  { %v6205_v49 = vld [vmem:[#allocation9 + $0x2c0] sm:$0xf]  ;;  %v8592_v54 = vld [vmem:[#allocation9 + $0x2c4] sm:$0xf]  ;;  %v5950_v56 = vor.u32 %v8532_v48, %v5949_v47  ;;  %1085 = vmatpush.bf16.msra.mxu1 %v6238_v45  ;;  %v5954_v58 = vor.u32 %v8528_v52, %v5951_v53  ;;  %1111 = vmatpush.bf16.msra.mxu3 %v6242_v50  ;;  %v6343_v40 = vld [vmem:[#allocation9 + $0x3e8] sm:$0xf0]  ;;  %v6090_v45 = vor.u32 %v8561_v34, %v6087_v35 }
  0x67   :  { %v8596_v51 = vld [vmem:[#allocation9 + $0x2dc] sm:$0xf0]  ;;  %v6207_v55 = vld [vmem:[#allocation9 + $0x2e0] sm:$0xf0]  ;;  %v6053_v46 = vld [vmem:[#allocation9 + $0x188] sm:$0xf]  ;;  %v9839_v50 = vpack.c.b16 %v423_v36, %v423_v36 }
  0x68   :  { %v6206_v57 = vor.u32 %v8596_v51, %v6205_v49  ;;  %v5917_v59 = vld [vmem:[#allocation9 + $0x80] sm:$0xf]  ;;  %v6210_v62 = vor.u32 %v8592_v54, %v6207_v55  ;;  %v8520_v0 = vld [vmem:[#allocation9 + $0x84] sm:$0xf]  ;;  %1073 = vmatpush.bf16.msra.mxu0 %v5950_v56  ;;  %1099 = vmatpush.bf16.msra.mxu2 %v5954_v58  ;;  %v8557_v47 = vld [vmem:[#allocation9 + $0x1a4] sm:$0xf0]  ;;  %v6346_v49 = vor.u32 %v8625_v39, %v6343_v40 }
  0x69   :  { %v8524_v60 = vld [vmem:[#allocation9 + $0x9c] sm:$0xf0]  ;;  %v5919_v1 = vld [vmem:[#allocation9 + $0xa0] sm:$0xf0]  ;;  %v6309_v48 = vld [vmem:[#allocation9 + $0x388] sm:$0xf]  ;;  %v9841_v54 = vpack.c.b16 %v424_v41, %v424_v41 }
  0x6a   :  { %v6173_v61 = vld [vmem:[#allocation9 + $0x280] sm:$0xf]  ;;  %v8584_v2 = vld [vmem:[#allocation9 + $0x284] sm:$0xf]  ;;  %v5918_v4 = vor.u32 %v8524_v60, %v5917_v59  ;;  %1086 = vmatpush.bf16.msra.mxu1 %v6206_v57  ;;  %v5922_v6 = vor.u32 %v8520_v0, %v5919_v1  ;;  %1112 = vmatpush.bf16.msra.mxu3 %v6210_v62  ;;  %v8621_v51 = vld [vmem:[#allocation9 + $0x3a4] sm:$0xf0]  ;;  %v6054_v57 = vor.u32 %v8557_v47, %v6053_v46 }
  0x6b   :  { %v8588_v63 = vld [vmem:[#allocation9 + $0x29c] sm:$0xf0]  ;;  %v6175_v3 = vld [vmem:[#allocation9 + $0x2a0] sm:$0xf0]  ;;  %v8553_v52 = vld [vmem:[#allocation9 + $0x18c] sm:$0xf]  ;;  %v6310_v58 = vor.u32 %v8621_v51, %v6309_v48 }
  0x6c   :  { %v6174_v5 = vor.u32 %v8588_v63, %v6173_v61  ;;  %v5885_v7 = vld [vmem:[#allocation9 + $0x40] sm:$0xf]  ;;  %v6178_v10 = vor.u32 %v8584_v2, %v6175_v3  ;;  %v8512_v12 = vld [vmem:[#allocation9 + $0x44] sm:$0xf]  ;;  %1074 = vmatpush.bf16.msra.mxu0 %v5918_v4  ;;  %1100 = vmatpush.bf16.msra.mxu2 %v5922_v6  ;;  %v6055_v53 = vld [vmem:[#allocation9 + $0x1a8] sm:$0xf0] }
  0x6d   :  { %v8516_v8 = vld [vmem:[#allocation9 + $0x5c] sm:$0xf0]  ;;  %v5887_v13 = vld [vmem:[#allocation9 + $0x60] sm:$0xf0]  ;;  %v8617_v55 = vld [vmem:[#allocation9 + $0x38c] sm:$0xf]  ;;  %v6058_v59 = vor.u32 %v8553_v52, %v6055_v53 }
  0x6e   :  { %v6141_v9 = vld [vmem:[#allocation9 + $0x240] sm:$0xf]  ;;  %v8576_v14 = vld [vmem:[#allocation9 + $0x244] sm:$0xf]  ;;  %v5886_v16 = vor.u32 %v8516_v8, %v5885_v7  ;;  %1087 = vmatpush.bf16.msra.mxu1 %v6174_v5  ;;  %v5890_v21 = vor.u32 %v8512_v12, %v5887_v13  ;;  %1113 = vmatpush.bf16.msra.mxu3 %v6178_v10  ;;  %v6311_v56 = vld [vmem:[#allocation9 + $0x3a8] sm:$0xf0] }
  0x6f   :  { %v8580_v11 = vld [vmem:[#allocation9 + $0x25c] sm:$0xf0]  ;;  %v6143_v15 = vld [vmem:[#allocation9 + $0x260] sm:$0xf0]  ;;  %v6021_v60 = vld [vmem:[#allocation9 + $0x148] sm:$0xf]  ;;  %v6314_v63 = vor.u32 %v8617_v55, %v6311_v56 }
  0x70   :  { %v5853_v17 = vld [vmem:[#allocation9] sm:$0xf]  ;;  %v6142_v20 = vor.u32 %v8580_v11, %v6141_v9  ;;  %v8504_v23 = vld [vmem:[#allocation9 + $0x4] sm:$0xf]  ;;  %v6146_v25 = vor.u32 %v8576_v14, %v6143_v15  ;;  %1075 = vmatpush.bf16.msra.mxu0 %v5886_v16  ;;  %1101 = vmatpush.bf16.msra.mxu2 %v5890_v21  ;;  %v8549_v61 = vld [vmem:[#allocation9 + $0x164] sm:$0xf0] }
  0x71   :  { %v8508_v18 = vld [vmem:[#allocation9 + $0x1c] sm:$0xf0]  ;;  %v5855_v26 = vld [vmem:[#allocation9 + $0x20] sm:$0xf0]  ;;  %v6277_v62 = vld [vmem:[#allocation9 + $0x348] sm:$0xf]  ;;  %v6022_v5 = vor.u32 %v8549_v61, %v6021_v60 }
  0x72   :  { %v6109_v19 = vld [vmem:[#allocation9 + $0x200] sm:$0xf]  ;;  %v8568_v27 = vld [vmem:[#allocation9 + $0x204] sm:$0xf]  ;;  %v5854_v32 = vor.u32 %v8508_v18, %v5853_v17  ;;  %1088 = vmatpush.bf16.msra.mxu1 %v6142_v20  ;;  %v5858_v38 = vor.u32 %v8504_v23, %v5855_v26  ;;  %1114 = vmatpush.bf16.msra.mxu3 %v6146_v25  ;;  %v8613_v0 = vld [vmem:[#allocation9 + $0x364] sm:$0xf0] }
  0x73   :  { %v8572_v22 = vld [vmem:[#allocation9 + $0x21c] sm:$0xf0]  ;;  %v6111_v28 = vld [vmem:[#allocation9 + $0x220] sm:$0xf0]  ;;  %v8545_v1 = vld [vmem:[#allocation9 + $0x14c] sm:$0xf]  ;;  %v6278_v6 = vor.u32 %v8613_v0, %v6277_v62 }
  0x74   :  { %v6110_v37 = vor.u32 %v8572_v22, %v6109_v19  ;;  %v6114_v42 = vor.u32 %v8568_v27, %v6111_v28  ;;  %1076 = vmatpush.bf16.msra.mxu0 %v5854_v32  ;;  %1102 = vmatpush.bf16.msra.mxu2 %v5858_v38  ;;  %v6023_v2 = vld [vmem:[#allocation9 + $0x168] sm:$0xf0]  ;;  %v5989_v8 = vld [vmem:[#allocation9 + $0x108] sm:$0xf]  ;;  %s5829_s16 = sshll.u32 %s10318_s6, 4  ;;  %s5830_s16 = int_to_ptr.hbm [resolvable:$true] %s5829_s16 }
  0x75   :  { %v8609_v3 = vld [vmem:[#allocation9 + $0x34c] sm:$0xf]  ;;  %v6026_v7 = vor.u32 %v8545_v1, %v6023_v2  ;;  %v8541_v9 = vld [vmem:[#allocation9 + $0x124] sm:$0xf0] }
  0x76   :  { %1089 = vmatpush.bf16.msra.mxu1 %v6110_v37  ;;  %1115 = vmatpush.bf16.msra.mxu3 %v6114_v42  ;;  %v6279_v4 = vld [vmem:[#allocation9 + $0x368] sm:$0xf0]  ;;  %v6245_v10 = vld [vmem:[#allocation9 + $0x308] sm:$0xf]  ;;  %v5990_v17 = vor.u32 %v8541_v9, %v5989_v8 }
  0x77   :  { %1077 = vmatmul.bf16.vlgmr.msra.gmra.mxu0 %v9839_v50  ;;  %1103 = vmatmul.bf16.vlgmr.msra.gmra.mxu2 %v9839_v50  ;;  %v6282_v11 = vor.u32 %v8609_v3, %v6279_v4  ;;  %v8605_v12 = vld [vmem:[#allocation9 + $0x324] sm:$0xf0]  ;;  %v8537_v13 = vld [vmem:[#allocation9 + $0x10c] sm:$0xf]  ;;  %v6093_v3 = vld [vmem:[#allocation9 + $0x1d0] sm:$0xf] }
  0x78   :  { %1121 = vmatpush.bf16.msrb.mxu0 %v6086_v43  ;;  %1147 = vmatpush.bf16.msrb.mxu2 %v6090_v45  ;;  %v5991_v14 = vld [vmem:[#allocation9 + $0x128] sm:$0xf0]  ;;  %v6246_v18 = vor.u32 %v8605_v12, %v6245_v10  ;;  %v5957_v20 = vld [vmem:[#allocation9 + $0xc8] sm:$0xf]  ;;  %v8566_v4 = vld [vmem:[#allocation9 + $0x1ec] sm:$0xf0] }
  0x79   :  { %1090 = vmatmul.bf16.vlgmr.msra.gmra.mxu1 %v9841_v54  ;;  %1116 = vmatmul.bf16.vlgmr.msra.gmra.mxu3 %v9841_v54  ;;  %v8601_v15 = vld [vmem:[#allocation9 + $0x30c] sm:$0xf]  ;;  %v5994_v19 = vor.u32 %v8537_v13, %v5991_v14  ;;  %v8533_v21 = vld [vmem:[#allocation9 + $0xe4] sm:$0xf0]  ;;  %v6061_v12 = vld [vmem:[#allocation9 + $0x190] sm:$0xf] }
  0x7a   :  { %1134 = vmatpush.bf16.msrb.mxu1 %v6342_v44  ;;  %1160 = vmatpush.bf16.msrb.mxu3 %v6346_v49  ;;  %v6247_v16 = vld [vmem:[#allocation9 + $0x328] sm:$0xf0]  ;;  %v6213_v22 = vld [vmem:[#allocation9 + $0x2c8] sm:$0xf]  ;;  %v5958_v29 = vor.u32 %v8533_v21, %v5957_v20  ;;  %v8562_v13 = vld [vmem:[#allocation9 + $0x1d4] sm:$0xf] }
  0x7b   :  { %v6250_v23 = vor.u32 %v8601_v15, %v6247_v16  ;;  %v8597_v24 = vld [vmem:[#allocation9 + $0x2e4] sm:$0xf0]  ;;  %v8529_v25 = vld [vmem:[#allocation9 + $0xcc] sm:$0xf]  ;;  %v6095_v14 = vld [vmem:[#allocation9 + $0x1f0] sm:$0xf0] }
  0x7c   :  { %1122 = vmatpush.bf16.msrb.mxu0 %v6054_v57  ;;  %1148 = vmatpush.bf16.msrb.mxu2 %v6058_v59  ;;  %v5959_v26 = vld [vmem:[#allocation9 + $0xe8] sm:$0xf0]  ;;  %v6214_v30 = vor.u32 %v8597_v24, %v6213_v22  ;;  %v5925_v32 = vld [vmem:[#allocation9 + $0x88] sm:$0xf]  ;;  %v8558_v16 = vld [vmem:[#allocation9 + $0x1ac] sm:$0xf0]  ;;  %v6098_v21 = vor.u32 %v8562_v13, %v6095_v14 }
  0x7d   :  { %v8593_v27 = vld [vmem:[#allocation9 + $0x2cc] sm:$0xf]  ;;  %v5962_v31 = vor.u32 %v8529_v25, %v5959_v26  ;;  %v8525_v33 = vld [vmem:[#allocation9 + $0xa4] sm:$0xf0]  ;;  %v8622_v20 = vld [vmem:[#allocation9 + $0x3ac] sm:$0xf0]  ;;  %v6062_v22 = vor.u32 %v8558_v16, %v6061_v12 }
  0x7e   :  { %1135 = vmatpush.bf16.msrb.mxu1 %v6310_v58  ;;  %1161 = vmatpush.bf16.msrb.mxu3 %v6314_v63  ;;  %v6215_v28 = vld [vmem:[#allocation9 + $0x2e8] sm:$0xf0]  ;;  %v6181_v34 = vld [vmem:[#allocation9 + $0x288] sm:$0xf]  ;;  %v5926_v41 = vor.u32 %v8525_v33, %v5925_v32  ;;  %v8554_v24 = vld [vmem:[#allocation9 + $0x194] sm:$0xf] }
  0x7f   :  { %v6218_v35 = vor.u32 %v8593_v27, %v6215_v28  ;;  %v8589_v36 = vld [vmem:[#allocation9 + $0x2a4] sm:$0xf0]  ;;  %v8521_v37 = vld [vmem:[#allocation9 + $0x8c] sm:$0xf]  ;;  %v6063_v25 = vld [vmem:[#allocation9 + $0x1b0] sm:$0xf0] }
  0x80   :  { %1123 = vmatpush.bf16.msrb.mxu0 %v6022_v5  ;;  %1149 = vmatpush.bf16.msrb.mxu2 %v6026_v7  ;;  %v5927_v38 = vld [vmem:[#allocation9 + $0xa8] sm:$0xf0]  ;;  %v5893_v42 = vld [vmem:[#allocation9 + $0x48] sm:$0xf]  ;;  %v6182_v43 = vor.u32 %v8589_v36, %v6181_v34  ;;  %v8630_v7 = vld [vmem:[#allocation9 + $0x3ec] sm:$0xf0]  ;;  %v6066_v33 = vor.u32 %v8554_v24, %v6063_v25 }
  0x81   :  { %v8585_v39 = vld [vmem:[#allocation9 + $0x28c] sm:$0xf]  ;;  %v5930_v44 = vor.u32 %v8521_v37, %v5927_v38  ;;  %v8517_v45 = vld [vmem:[#allocation9 + $0x64] sm:$0xf0]  ;;  %v8550_v28 = vld [vmem:[#allocation9 + $0x16c] sm:$0xf0] }
  0x82   :  { %1136 = vmatpush.bf16.msrb.mxu1 %v6278_v6  ;;  %1162 = vmatpush.bf16.msrb.mxu3 %v6282_v11  ;;  %v6183_v40 = vld [vmem:[#allocation9 + $0x2a8] sm:$0xf0]  ;;  %v6149_v46 = vld [vmem:[#allocation9 + $0x248] sm:$0xf]  ;;  %v5894_v55 = vor.u32 %v8517_v45, %v5893_v42  ;;  %v6349_v6 = vld [vmem:[#allocation9 + $0x3d0] sm:$0xf]  ;;  %v6094_v11 = vor.u32 %v8566_v4, %v6093_v3 }
  0x83   :  { %v8581_v47 = vld [vmem:[#allocation9 + $0x264] sm:$0xf0]  ;;  %v6186_v48 = vor.u32 %v8585_v39, %v6183_v40  ;;  %v8513_v49 = vld [vmem:[#allocation9 + $0x4c] sm:$0xf]  ;;  %v6350_v15 = vor.u32 %v8630_v7, %v6349_v6  ;;  %v8614_v32 = vld [vmem:[#allocation9 + $0x36c] sm:$0xf0] }
  0x84   :  { %1124 = vmatpush.bf16.msrb.mxu0 %v5990_v17  ;;  %1150 = vmatpush.bf16.msrb.mxu2 %v5994_v19  ;;  %v5895_v51 = vld [vmem:[#allocation9 + $0x68] sm:$0xf0]  ;;  %v5861_v56 = vld [vmem:[#allocation9 + $0x8] sm:$0xf]  ;;  %v6150_v57 = vor.u32 %v8581_v47, %v6149_v46  ;;  %v8626_v17 = vld [vmem:[#allocation9 + $0x3d4] sm:$0xf] }
  0x85   :  { %v8577_v52 = vld [vmem:[#allocation9 + $0x24c] sm:$0xf]  ;;  %v5898_v58 = vor.u32 %v8513_v49, %v5895_v51  ;;  %v8509_v59 = vld [vmem:[#allocation9 + $0x24] sm:$0xf0]  ;;  %v6317_v19 = vld [vmem:[#allocation9 + $0x390] sm:$0xf] }
  0x86   :  { %1137 = vmatpush.bf16.msrb.mxu1 %v6246_v18  ;;  %1163 = vmatpush.bf16.msrb.mxu3 %v6250_v23  ;;  %v6151_v53 = vld [vmem:[#allocation9 + $0x268] sm:$0xf0]  ;;  %v6117_v60 = vld [vmem:[#allocation9 + $0x208] sm:$0xf]  ;;  %v5862_v5 = vor.u32 %v8509_v59, %v5861_v56  ;;  %v6351_v18 = vld [vmem:[#allocation9 + $0x3f0] sm:$0xf0]  ;;  %v6318_v27 = vor.u32 %v8622_v20, %v6317_v19 }
  0x87   :  { %v8573_v61 = vld [vmem:[#allocation9 + $0x224] sm:$0xf0]  ;;  %v6154_v62 = vor.u32 %v8577_v52, %v6151_v53  ;;  %v8505_v63 = vld [vmem:[#allocation9 + $0xc] sm:$0xf]  ;;  %v6029_v23 = vld [vmem:[#allocation9 + $0x150] sm:$0xf]  ;;  %v6354_v26 = vor.u32 %v8626_v17, %v6351_v18 }
  0x88   :  { %1125 = vmatpush.bf16.msrb.mxu0 %v5958_v29  ;;  %1151 = vmatpush.bf16.msrb.mxu2 %v5962_v31  ;;  %v5863_v0 = vld [vmem:[#allocation9 + $0x28] sm:$0xf0]  ;;  %v6118_v8 = vor.u32 %v8573_v61, %v6117_v60  ;;  %v8618_v29 = vld [vmem:[#allocation9 + $0x394] sm:$0xf]  ;;  %v6285_v31 = vld [vmem:[#allocation9 + $0x350] sm:$0xf]  ;;  %v6030_v34 = vor.u32 %v8550_v28, %v6029_v23 }
  0x89   :  { %v8569_v1 = vld [vmem:[#allocation9 + $0x20c] sm:$0xf]  ;;  %v5866_v9 = vor.u32 %v8505_v63, %v5863_v0  ;;  %v8546_v36 = vld [vmem:[#allocation9 + $0x154] sm:$0xf]  ;;  %v6286_v39 = vor.u32 %v8614_v32, %v6285_v31  ;;  %v8542_v40 = vld [vmem:[#allocation9 + $0x12c] sm:$0xf0] }
  0x8a   :  { %1138 = vmatpush.bf16.msrb.mxu1 %v6214_v30  ;;  %1164 = vmatpush.bf16.msrb.mxu3 %v6218_v35  ;;  %v6119_v2 = vld [vmem:[#allocation9 + $0x228] sm:$0xf0]  ;;  %v6319_v30 = vld [vmem:[#allocation9 + $0x3b0] sm:$0xf0]  ;;  %v5997_v35 = vld [vmem:[#allocation9 + $0x110] sm:$0xf] }
  0x8b   :  { %v6122_v10 = vor.u32 %v8569_v1, %v6119_v2  ;;  %v6031_v37 = vld [vmem:[#allocation9 + $0x170] sm:$0xf0]  ;;  %v6322_v38 = vor.u32 %v8618_v29, %v6319_v30  ;;  %v5998_v46 = vor.u32 %v8542_v40, %v5997_v35  ;;  %v5965_v47 = vld [vmem:[#allocation9 + $0xd0] sm:$0xf]  ;;  %v6101_v31 = vld [vmem:[#allocation9 + $0x1d8] sm:$0xf] }
  0x8c   :  { %1126 = vmatpush.bf16.msrb.mxu0 %v5926_v41  ;;  %1152 = vmatpush.bf16.msrb.mxu2 %v5930_v44  ;;  %v8610_v41 = vld [vmem:[#allocation9 + $0x354] sm:$0xf]  ;;  %v8606_v44 = vld [vmem:[#allocation9 + $0x32c] sm:$0xf0]  ;;  %v6034_v45 = vor.u32 %v8546_v36, %v6031_v37  ;;  %v8567_v32 = vld [vmem:[#allocation9 + $0x1f4] sm:$0xf0] }
  0x8d   :  { %v6287_v42 = vld [vmem:[#allocation9 + $0x370] sm:$0xf0]  ;;  %v8534_v53 = vld [vmem:[#allocation9 + $0xec] sm:$0xf0]  ;;  %v6069_v37 = vld [vmem:[#allocation9 + $0x198] sm:$0xf] }
  0x8e   :  { %1139 = vmatpush.bf16.msrb.mxu1 %v6182_v43  ;;  %1165 = vmatpush.bf16.msrb.mxu3 %v6186_v48  ;;  %v6253_v43 = vld [vmem:[#allocation9 + $0x310] sm:$0xf]  ;;  %v8538_v48 = vld [vmem:[#allocation9 + $0x114] sm:$0xf]  ;;  %v6290_v51 = vor.u32 %v8610_v41, %v6287_v42  ;;  %v5966_v60 = vor.u32 %v8534_v53, %v5965_v47  ;;  %v8563_v40 = vld [vmem:[#allocation9 + $0x1dc] sm:$0xf] }
  0x8f   :  { %v5999_v49 = vld [vmem:[#allocation9 + $0x130] sm:$0xf0]  ;;  %v6254_v52 = vor.u32 %v8606_v44, %v6253_v43  ;;  %v5933_v61 = vld [vmem:[#allocation9 + $0x90] sm:$0xf]  ;;  %v6102_v43 = vor.u32 %v8567_v32, %v6101_v31  ;;  %v6103_v44 = vld [vmem:[#allocation9 + $0x1f8] sm:$0xf0] }
  0x90   :  { %1127 = vmatpush.bf16.msrb.mxu0 %v5894_v55  ;;  %1153 = vmatpush.bf16.msrb.mxu2 %v5898_v58  ;;  %v8602_v55 = vld [vmem:[#allocation9 + $0x314] sm:$0xf]  ;;  %v8598_v58 = vld [vmem:[#allocation9 + $0x2ec] sm:$0xf0]  ;;  %v6002_v59 = vor.u32 %v8538_v48, %v5999_v49  ;;  %v8559_v48 = vld [vmem:[#allocation9 + $0x1b4] sm:$0xf0] }
  0x91   :  { %v6255_v56 = vld [vmem:[#allocation9 + $0x330] sm:$0xf0]  ;;  %v8526_v2 = vld [vmem:[#allocation9 + $0xac] sm:$0xf0]  ;;  %v8627_v49 = vld [vmem:[#allocation9 + $0x3dc] sm:$0xf] }
  0x92   :  { %1140 = vmatpush.bf16.msrb.mxu1 %v6150_v57  ;;  %1166 = vmatpush.bf16.msrb.mxu3 %v6154_v62  ;;  %v6221_v57 = vld [vmem:[#allocation9 + $0x2d0] sm:$0xf]  ;;  %v8530_v62 = vld [vmem:[#allocation9 + $0xd4] sm:$0xf]  ;;  %v6258_v0 = vor.u32 %v8602_v55, %v6255_v56  ;;  %v8623_v53 = vld [vmem:[#allocation9 + $0x3b4] sm:$0xf0]  ;;  %v6106_v56 = vor.u32 %v8563_v40, %v6103_v44 }
  0x93   :  { %v5967_v63 = vld [vmem:[#allocation9 + $0xf0] sm:$0xf0]  ;;  %v6222_v1 = vor.u32 %v8598_v58, %v6221_v57  ;;  %v8590_v6 = vld [vmem:[#allocation9 + $0x2ac] sm:$0xf0]  ;;  %v6070_v58 = vor.u32 %v8559_v48, %v6069_v37  ;;  %v5941_v31 = vld [vmem:[#allocation9 + $0x98] sm:$0xf] }
  0x94   :  { %1128 = vmatpush.bf16.msrb.mxu0 %v5862_v5  ;;  %1154 = vmatpush.bf16.msrb.mxu2 %v5866_v9  ;;  %v8594_v3 = vld [vmem:[#allocation9 + $0x2d4] sm:$0xf]  ;;  %v6189_v5 = vld [vmem:[#allocation9 + $0x290] sm:$0xf]  ;;  %v5970_v7 = vor.u32 %v8530_v62, %v5967_v63  ;;  %v8531_v32 = vld [vmem:[#allocation9 + $0xdc] sm:$0xf] }
  0x95   :  { %v6223_v4 = vld [vmem:[#allocation9 + $0x2f0] sm:$0xf0]  ;;  %v5901_v9 = vld [vmem:[#allocation9 + $0x50] sm:$0xf]  ;;  %v6190_v13 = vor.u32 %v8590_v6, %v6189_v5  ;;  %v8595_v37 = vld [vmem:[#allocation9 + $0x2dc] sm:$0xf] }
  0x96   :  { %1141 = vmatpush.bf16.msrb.mxu1 %v6118_v8  ;;  %1167 = vmatpush.bf16.msrb.mxu3 %v6122_v10  ;;  %v5934_v8 = vor.u32 %v8526_v2, %v5933_v61  ;;  %v8522_v10 = vld [vmem:[#allocation9 + $0x94] sm:$0xf]  ;;  %v6226_v12 = vor.u32 %v8594_v3, %v6223_v4  ;;  %v8518_v14 = vld [vmem:[#allocation9 + $0x6c] sm:$0xf0]  ;;  %v6071_v61 = vld [vmem:[#allocation9 + $0x1b8] sm:$0xf0] }
  0x97   :  { %1129 = vmatmul.bf16.vlgmr.msrb.gmra.mxu0 %v9839_v50  ;;  %1155 = vmatmul.bf16.vlgmr.msrb.gmra.mxu2 %v9839_v50  ;;  %v6191_v16 = vld [vmem:[#allocation9 + $0x2b0] sm:$0xf0]  ;;  %v6157_v17 = vld [vmem:[#allocation9 + $0x250] sm:$0xf]  ;;  %v6327_v2 = vld [vmem:[#allocation9 + $0x3b8] sm:$0xf0] }
  0x98   :  { %1173 = vmatpush.bf16.msra.mxu0 %v6094_v11  ;;  %1199 = vmatpush.bf16.msra.mxu2 %v6098_v21  ;;  %v5935_v11 = vld [vmem:[#allocation9 + $0xb0] sm:$0xf0]  ;;  %v8582_v18 = vld [vmem:[#allocation9 + $0x26c] sm:$0xf0]  ;;  %v5902_v21 = vor.u32 %v8518_v14, %v5901_v9  ;;  %v6293_v3 = vld [vmem:[#allocation9 + $0x358] sm:$0xf] }
  0x99   :  { %1142 = vmatmul.bf16.vlgmr.msrb.gmra.mxu1 %v9841_v54  ;;  %1168 = vmatmul.bf16.vlgmr.msrb.gmra.mxu3 %v9841_v54  ;;  %v5869_v19 = vld [vmem:[#allocation9 + $0x10] sm:$0xf]  ;;  %v5938_v20 = vor.u32 %v8522_v10, %v5935_v11  ;;  %v8514_v23 = vld [vmem:[#allocation9 + $0x54] sm:$0xf]  ;;  %v8615_v4 = vld [vmem:[#allocation9 + $0x374] sm:$0xf0] }
  0x9a   :  { %1186 = vmatpush.bf16.msra.mxu1 %v6350_v15  ;;  %1212 = vmatpush.bf16.msra.mxu3 %v6354_v26  ;;  %v8586_v15 = vld [vmem:[#allocation9 + $0x294] sm:$0xf]  ;;  %v6158_v26 = vor.u32 %v8582_v18, %v6157_v17  ;;  %v8574_v30 = vld [vmem:[#allocation9 + $0x22c] sm:$0xf0]  ;;  %v6039_v9 = vld [vmem:[#allocation9 + $0x178] sm:$0xf0]  ;;  %v6294_v11 = vor.u32 %v8615_v4, %v6293_v3 }
  0x9b   :  { %v5903_v24 = vld [vmem:[#allocation9 + $0x70] sm:$0xf0]  ;;  %v6194_v25 = vor.u32 %v8586_v15, %v6191_v16  ;;  %v6295_v14 = vld [vmem:[#allocation9 + $0x378] sm:$0xf0]  ;;  %v6261_v15 = vld [vmem:[#allocation9 + $0x318] sm:$0xf] }
  0x9c   :  { %1174 = vmatpush.bf16.msra.mxu0 %v6062_v22  ;;  %1200 = vmatpush.bf16.msra.mxu2 %v6066_v33  ;;  %v8510_v22 = vld [vmem:[#allocation9 + $0x2c] sm:$0xf0]  ;;  %v8578_v28 = vld [vmem:[#allocation9 + $0x254] sm:$0xf]  ;;  %v6357_v33 = vld [vmem:[#allocation9 + $0x3d8] sm:$0xf]  ;;  %v5906_v35 = vor.u32 %v8514_v23, %v5903_v24 }
  0x9d   :  { %v6159_v29 = vld [vmem:[#allocation9 + $0x270] sm:$0xf0]  ;;  %v5870_v36 = vor.u32 %v8510_v22, %v5869_v19  ;;  %v8607_v16 = vld [vmem:[#allocation9 + $0x334] sm:$0xf0]  ;;  %v8523_v44 = vld [vmem:[#allocation9 + $0x9c] sm:$0xf] }
  0x9e   :  { %1187 = vmatpush.bf16.msra.mxu1 %v6318_v27  ;;  %1213 = vmatpush.bf16.msra.mxu3 %v6322_v38  ;;  %v6125_v27 = vld [vmem:[#allocation9 + $0x210] sm:$0xf]  ;;  %v8506_v38 = vld [vmem:[#allocation9 + $0x14] sm:$0xf]  ;;  %v6162_v41 = vor.u32 %v8578_v28, %v6159_v29  ;;  %v5973_v19 = vld [vmem:[#allocation9 + $0xd8] sm:$0xf]  ;;  %v6262_v23 = vor.u32 %v8607_v16, %v6261_v15 }
  0x9f   :  { %v6126_v42 = vor.u32 %v8574_v30, %v6125_v27  ;;  %v8535_v24 = vld [vmem:[#allocation9 + $0xf4] sm:$0xf0]  ;;  %v6477_v3 = vld [vmem:[#allocation12 + $0xe0] sm:$0xf]  ;;  %v8662_v4 = vld [vmem:[#allocation12 + $0xec] sm:$0xf0] }
  0xa0   :  { %1175 = vmatpush.bf16.msra.mxu0 %v6030_v34  ;;  %1201 = vmatpush.bf16.msra.mxu2 %v6034_v45  ;;  %v8631_v34 = vld [vmem:[#allocation9 + $0x3f4] sm:$0xf0]  ;;  %v8570_v45 = vld [vmem:[#allocation9 + $0x214] sm:$0xf]  ;;  %v5974_v30 = vor.u32 %v8535_v24, %v5973_v19  ;;  %v6478_v15 = vor.u32 %v8662_v4, %v6477_v3 }
  0xa1   :  { %v6358_v47 = vor.u32 %v8631_v34, %v6357_v33  ;;  %v6229_v27 = vld [vmem:[#allocation9 + $0x2d8] sm:$0xf]  ;;  %v5975_v33 = vld [vmem:[#allocation9 + $0xf8] sm:$0xf0]  ;;  %v8726_v16 = vld [vmem:[#allocation12 + $0x2ec] sm:$0xf0] }
  0xa2   :  { %1188 = vmatpush.bf16.msra.mxu1 %v6286_v39  ;;  %1214 = vmatpush.bf16.msra.mxu3 %v6290_v51  ;;  %v5871_v39 = vld [vmem:[#allocation9 + $0x30] sm:$0xf0]  ;;  %v6359_v51 = vld [vmem:[#allocation9 + $0x3f8] sm:$0xf0]  ;;  %v8599_v28 = vld [vmem:[#allocation9 + $0x2f4] sm:$0xf0] }
  0xa3   :  { %v5874_v55 = vor.u32 %v8506_v38, %v5871_v39  ;;  %v6362_v62 = vor.u32 %v8627_v49, %v6359_v51  ;;  %v6231_v38 = vld [vmem:[#allocation9 + $0x2f8] sm:$0xf0]  ;;  %v6197_v39 = vld [vmem:[#allocation9 + $0x298] sm:$0xf]  ;;  %v8690_v24 = vld [vmem:[#allocation12 + $0x1cc] sm:$0xf0] }
  0xa4   :  { %1176 = vmatpush.bf16.msra.mxu0 %v5998_v46  ;;  %1202 = vmatpush.bf16.msra.mxu2 %v6002_v59  ;;  %v6127_v46 = vld [vmem:[#allocation9 + $0x230] sm:$0xf0]  ;;  %v6037_v59 = vld [vmem:[#allocation9 + $0x158] sm:$0xf]  ;;  %v8587_v49 = vld [vmem:[#allocation9 + $0x29c] sm:$0xf] }
  0xa5   :  { %v6130_v57 = vor.u32 %v8570_v45, %v6127_v46  ;;  %v8591_v40 = vld [vmem:[#allocation9 + $0x2b4] sm:$0xf0]  ;;  %v5943_v45 = vld [vmem:[#allocation9 + $0xb8] sm:$0xf0]  ;;  %v6234_v46 = vor.u32 %v8595_v37, %v6231_v38  ;;  %v6573_v37 = vld [vmem:[#allocation12 + $0x1a0] sm:$0xf] }
  0xa6   :  { %1189 = vmatpush.bf16.msra.mxu1 %v6254_v52  ;;  %1215 = vmatpush.bf16.msra.mxu3 %v6258_v0  ;;  %v6325_v52 = vld [vmem:[#allocation9 + $0x398] sm:$0xf]  ;;  %v6199_v51 = vld [vmem:[#allocation9 + $0x2b8] sm:$0xf0]  ;;  %v8686_v38 = vld [vmem:[#allocation12 + $0x1ac] sm:$0xf0] }
  0xa7   :  { %v6326_v63 = vor.u32 %v8623_v53, %v6325_v52  ;;  %v8551_v0 = vld [vmem:[#allocation9 + $0x174] sm:$0xf0]  ;;  %v8710_v3 = vld [vmem:[#allocation12 + $0x26c] sm:$0xf0] }
  0xa8   :  { %1177 = vmatpush.bf16.msra.mxu0 %v5966_v60  ;;  %1203 = vmatpush.bf16.msra.mxu2 %v5970_v7  ;;  %v8555_v60 = vld [vmem:[#allocation9 + $0x19c] sm:$0xf]  ;;  %v6038_v6 = vor.u32 %v8551_v0, %v6037_v59  ;;  %v6005_v7 = vld [vmem:[#allocation9 + $0x118] sm:$0xf] }
  0xa9   :  { %v6074_v5 = vor.u32 %v8555_v60, %v6071_v61  ;;  %v8519_v48 = vld [vmem:[#allocation9 + $0x74] sm:$0xf0]  ;;  %v8515_v59 = vld [vmem:[#allocation9 + $0x5c] sm:$0xf]  ;;  %v6202_v61 = vor.u32 %v8587_v49, %v6199_v51  ;;  %v6557_v49 = vld [vmem:[#allocation12 + $0x180] sm:$0xf] }
  0xaa   :  { %1190 = vmatpush.bf16.msra.mxu1 %v6222_v1  ;;  %1216 = vmatpush.bf16.msra.mxu3 %v6226_v12  ;;  %v8619_v1 = vld [vmem:[#allocation9 + $0x39c] sm:$0xf]  ;;  %v8543_v12 = vld [vmem:[#allocation9 + $0x134] sm:$0xf0]  ;;  %v8682_v51 = vld [vmem:[#allocation12 + $0x18c] sm:$0xf0] }
  0xab   :  { %v6330_v10 = vor.u32 %v8619_v1, %v6327_v2  ;;  %v6006_v18 = vor.u32 %v8543_v12, %v6005_v7  ;;  %v6165_v52 = vld [vmem:[#allocation9 + $0x258] sm:$0xf]  ;;  %v5911_v60 = vld [vmem:[#allocation9 + $0x78] sm:$0xf0]  ;;  %v6733_v12 = vld [vmem:[#allocation12 + $0x2e0] sm:$0xf] }
  0xac   :  { %1178 = vmatpush.bf16.msra.mxu0 %v5934_v8  ;;  %1204 = vmatpush.bf16.msra.mxu2 %v5938_v20  ;;  %v8547_v8 = vld [vmem:[#allocation9 + $0x15c] sm:$0xf]  ;;  %v8583_v53 = vld [vmem:[#allocation9 + $0x274] sm:$0xf0]  ;;  %v5914_v7 = vor.u32 %v8515_v59, %v5911_v60  ;;  %v6558_v59 = vor.u32 %v8682_v51, %v6557_v49  ;;  %v8646_v60 = vld [vmem:[#allocation12 + $0x6c] sm:$0xf0] }
  0xad   :  { %v6042_v17 = vor.u32 %v8547_v8, %v6039_v9  ;;  %v8539_v20 = vld [vmem:[#allocation9 + $0x11c] sm:$0xf]  ;;  %v8575_v2 = vld [vmem:[#allocation9 + $0x234] sm:$0xf0]  ;;  %v6461_v9 = vld [vmem:[#allocation12 + $0xc0] sm:$0xf] }
  0xae   :  { %1191 = vmatpush.bf16.msra.mxu1 %v6190_v13  ;;  %1217 = vmatpush.bf16.msra.mxu3 %v6194_v25  ;;  %v8611_v13 = vld [vmem:[#allocation9 + $0x35c] sm:$0xf]  ;;  %v6749_v49 = vld [vmem:[#allocation12 + $0x300] sm:$0xf]  ;;  %v8730_v51 = vld [vmem:[#allocation12 + $0x30c] sm:$0xf0] }
  0xaf   :  { %v6298_v22 = vor.u32 %v8611_v13, %v6295_v14  ;;  %v8603_v25 = vld [vmem:[#allocation9 + $0x31c] sm:$0xf] }
  0xb0   :  { %1179 = vmatpush.bf16.msra.mxu0 %v5902_v21  ;;  %1205 = vmatpush.bf16.msra.mxu2 %v5906_v35  ;;  %v6007_v21 = vld [vmem:[#allocation9 + $0x138] sm:$0xf0]  ;;  %v6230_v35 = vor.u32 %v8599_v28, %v6229_v27 }
  0xb1   :  { %v6010_v29 = vor.u32 %v8539_v20, %v6007_v21  ;;  %v8579_v0 = vld [vmem:[#allocation9 + $0x25c] sm:$0xf]  ;;  %v8658_v20 = vld [vmem:[#allocation12 + $0xcc] sm:$0xf0]  ;;  %v6861_v21 = vld [vmem:[#allocation12 + $0x3e0] sm:$0xf] }
  0xb2   :  { %1192 = vmatpush.bf16.msra.mxu1 %v6158_v26  ;;  %1218 = vmatpush.bf16.msra.mxu3 %v6162_v41  ;;  %v6263_v26 = vld [vmem:[#allocation9 + $0x338] sm:$0xf0]  ;;  %v5978_v41 = vor.u32 %v8531_v32, %v5975_v33  ;;  %v6462_v28 = vor.u32 %v8658_v20, %v6461_v9  ;;  %v6525_v9 = vld [vmem:[#allocation12 + $0x140] sm:$0xf]  ;;  %v8738_v20 = vld [vmem:[#allocation12 + $0x34c] sm:$0xf0] }
  0xb3   :  { %v6266_v34 = vor.u32 %v8603_v25, %v6263_v26  ;;  %v6167_v1 = vld [vmem:[#allocation9 + $0x278] sm:$0xf0]  ;;  %v6734_v26 = vor.u32 %v8726_v16, %v6733_v12 }
  0xb4   :  { %1180 = vmatpush.bf16.msra.mxu0 %v5870_v36  ;;  %1206 = vmatpush.bf16.msra.mxu2 %v5874_v55  ;;  %v8527_v36 = vld [vmem:[#allocation9 + $0xb4] sm:$0xf0]  ;;  %v6170_v13 = vor.u32 %v8579_v0, %v6167_v1  ;;  %v6397_v1 = vld [vmem:[#allocation12 + $0x40] sm:$0xf] }
  0xb5   :  { %v5877_v55 = vld [vmem:[#allocation9 + $0x18] sm:$0xf] }
  0xb6   :  { %1193 = vmatpush.bf16.msra.mxu1 %v6126_v42  ;;  %1219 = vmatpush.bf16.msra.mxu3 %v6130_v57  ;;  %v5942_v42 = vor.u32 %v8527_v36, %v5941_v31  ;;  %v8722_v31 = vld [vmem:[#allocation12 + $0x2cc] sm:$0xf0] }
  0xb7   :  { %1181 = vmatmul.bf16.vlgmr.msra.gmra.mxu0 %v9839_v50  ;;  %1207 = vmatmul.bf16.vlgmr.msra.gmra.mxu2 %v9839_v50  ;;  %v8754_v36 = vld [vmem:[#allocation12 + $0x3cc] sm:$0xf0] }
  0xb8   :  { %1225 = vmatpush.bf16.msrb.mxu0 %v6102_v43  ;;  %1251 = vmatpush.bf16.msrb.mxu2 %v6106_v56  ;;  %v5909_v43 = vld [vmem:[#allocation9 + $0x58] sm:$0xf]  ;;  %v5946_v56 = vor.u32 %v8523_v44, %v5943_v45  ;;  %v6574_v45 = vor.u32 %v8686_v38, %v6573_v37  ;;  %v8692_v37 = vld [vmem:[#allocation12 + $0x1e4] sm:$0xf] }
  0xb9   :  { %1194 = vmatmul.bf16.vlgmr.msra.gmra.mxu1 %v9841_v54  ;;  %1220 = vmatmul.bf16.vlgmr.msra.gmra.mxu3 %v9841_v54  ;;  %v5910_v57 = vor.u32 %v8519_v48, %v5909_v43  ;;  %v8718_v43 = vld [vmem:[#allocation12 + $0x2ac] sm:$0xf0]  ;;  %v6607_v38 = vld [vmem:[#allocation12 + $0x1f0] sm:$0xf0] }
  0xba   :  { %1238 = vmatpush.bf16.msrb.mxu1 %v6358_v47  ;;  %1264 = vmatpush.bf16.msrb.mxu3 %v6362_v62  ;;  %v6198_v47 = vor.u32 %v8591_v40, %v6197_v39  ;;  %v6166_v62 = vor.u32 %v8583_v53, %v6165_v52  ;;  %v8750_v48 = vld [vmem:[#allocation12 + $0x3ac] sm:$0xf0] }
  0xbc   :  { %1226 = vmatpush.bf16.msrb.mxu0 %v6070_v58  ;;  %1252 = vmatpush.bf16.msrb.mxu2 %v6074_v5  ;;  %v8511_v58 = vld [vmem:[#allocation9 + $0x34] sm:$0xf0]  ;;  %v6605_v5 = vld [vmem:[#allocation12 + $0x1e0] sm:$0xf] }
  0xbd   :  { %v5878_v8 = vor.u32 %v8511_v58, %v5877_v55  ;;  %v6413_v55 = vld [vmem:[#allocation12 + $0x60] sm:$0xf] }
  0xbe   :  { %1239 = vmatpush.bf16.msrb.mxu1 %v6326_v63  ;;  %1265 = vmatpush.bf16.msrb.mxu3 %v6330_v10  ;;  %v6133_v63 = vld [vmem:[#allocation9 + $0x218] sm:$0xf]  ;;  %v8507_v10 = vld [vmem:[#allocation9 + $0x1c] sm:$0xf] }
  0xbf   :  { %v6134_v14 = vor.u32 %v8575_v2, %v6133_v63  ;;  %v8678_v63 = vld [vmem:[#allocation12 + $0x16c] sm:$0xf0]  ;;  %v6669_v2 = vld [vmem:[#allocation12 + $0x260] sm:$0xf] }
  0xc0   :  { %1227 = vmatpush.bf16.msrb.mxu0 %v6038_v6  ;;  %1253 = vmatpush.bf16.msrb.mxu2 %v6042_v17  ;;  %v8694_v6 = vld [vmem:[#allocation12 + $0x1ec] sm:$0xf0]  ;;  %v8571_v17 = vld [vmem:[#allocation9 + $0x21c] sm:$0xf] }
  0xc1   :  { %v6606_v19 = vor.u32 %v8694_v6, %v6605_v5  ;;  %v8642_v6 = vld [vmem:[#allocation12 + $0x4c] sm:$0xf0] }
  0xc2   :  { %1240 = vmatpush.bf16.msrb.mxu1 %v6294_v11  ;;  %1266 = vmatpush.bf16.msrb.mxu3 %v6298_v22  ;;  %v5879_v11 = vld [vmem:[#allocation9 + $0x38] sm:$0xf0]  ;;  %v8758_v22 = vld [vmem:[#allocation12 + $0x3ec] sm:$0xf0]  ;;  %v6398_v12 = vor.u32 %v8642_v6, %v6397_v1  ;;  %v6575_v6 = vld [vmem:[#allocation12 + $0x1b0] sm:$0xf0] }
  0xc3   :  { %v5882_v25 = vor.u32 %v8507_v10, %v5879_v11  ;;  %v6862_v32 = vor.u32 %v8758_v22, %v6861_v21  ;;  %v8674_v10 = vld [vmem:[#allocation12 + $0x14c] sm:$0xf0]  ;;  %v6670_v11 = vor.u32 %v8710_v3, %v6669_v2  ;;  %v6509_v21 = vld [vmem:[#allocation12 + $0x120] sm:$0xf]  ;;  %v6447_v2 = vld [vmem:[#allocation12 + $0xb0] sm:$0xf0] }
  0xc4   :  { %1228 = vmatpush.bf16.msrb.mxu0 %v6006_v18  ;;  %1254 = vmatpush.bf16.msrb.mxu2 %v6010_v29  ;;  %v6135_v18 = vld [vmem:[#allocation9 + $0x238] sm:$0xf0]  ;;  %v6445_v29 = vld [vmem:[#allocation12 + $0xa0] sm:$0xf]  ;;  %v8670_v22 = vld [vmem:[#allocation12 + $0x12c] sm:$0xf0] }
  0xc5   :  { %v6138_v27 = vor.u32 %v8571_v17, %v6135_v18  ;;  %v6526_v17 = vor.u32 %v8674_v10, %v6525_v9  ;;  %v8638_v18 = vld [vmem:[#allocation12 + $0x2c] sm:$0xf0]  ;;  %v8752_v3 = vld [vmem:[#allocation12 + $0x3c4] sm:$0xf] }
  0xc6   :  { %1241 = vmatpush.bf16.msrb.mxu1 %v6262_v23  ;;  %1267 = vmatpush.bf16.msrb.mxu3 %v6266_v34  ;;  %v6589_v23 = vld [vmem:[#allocation12 + $0x1c0] sm:$0xf]  ;;  %v8654_v34 = vld [vmem:[#allocation12 + $0xac] sm:$0xf0]  ;;  %v8648_v9 = vld [vmem:[#allocation12 + $0x84] sm:$0xf] }
  0xc7   :  { %v6590_v33 = vor.u32 %v8690_v24, %v6589_v23  ;;  %v6446_v40 = vor.u32 %v8654_v34, %v6445_v29  ;;  %v6365_v23 = vld [vmem:[#allocation12] sm:$0xf]  ;;  %v8666_v34 = vld [vmem:[#allocation12 + $0x10c] sm:$0xf0]  ;;  %v8716_v10 = vld [vmem:[#allocation12 + $0x2a4] sm:$0xf] }
  0xc8   :  { %1229 = vmatpush.bf16.msrb.mxu0 %v5974_v30  ;;  %1255 = vmatpush.bf16.msrb.mxu2 %v5978_v41  ;;  %v6717_v30 = vld [vmem:[#allocation12 + $0x2c0] sm:$0xf] }
  0xc9   :  { %v6718_v39 = vor.u32 %v8722_v31, %v6717_v30  ;;  %v6429_v41 = vld [vmem:[#allocation12 + $0x80] sm:$0xf]  ;;  %v6510_v30 = vor.u32 %v8670_v22, %v6509_v21  ;;  %v8644_v22 = vld [vmem:[#allocation12 + $0x64] sm:$0xf] }
  0xca   :  { %1242 = vmatpush.bf16.msrb.mxu1 %v6230_v35  ;;  %1268 = vmatpush.bf16.msrb.mxu3 %v6234_v46  ;;  %v6845_v35 = vld [vmem:[#allocation12 + $0x3c0] sm:$0xf]  ;;  %v8650_v46 = vld [vmem:[#allocation12 + $0x8c] sm:$0xf0] }
  0xcb   :  { %v6846_v44 = vor.u32 %v8754_v36, %v6845_v35  ;;  %v6430_v53 = vor.u32 %v8650_v46, %v6429_v41  ;;  %v6493_v31 = vld [vmem:[#allocation12 + $0x100] sm:$0xf]  ;;  %v8660_v35 = vld [vmem:[#allocation12 + $0xe4] sm:$0xf]  ;;  %v6479_v36 = vld [vmem:[#allocation12 + $0xf0] sm:$0xf0] }
  0xcc   :  { %1230 = vmatpush.bf16.msrb.mxu0 %v5942_v42  ;;  %1256 = vmatpush.bf16.msrb.mxu2 %v5946_v56  ;;  %v6701_v42 = vld [vmem:[#allocation12 + $0x2a0] sm:$0xf]  ;;  %v8656_v41 = vld [vmem:[#allocation12 + $0xc4] sm:$0xf]  ;;  %v6494_v46 = vor.u32 %v8666_v34, %v6493_v31 }
  0xcd   :  { %v6702_v52 = vor.u32 %v8718_v43, %v6701_v42  ;;  %v6685_v56 = vld [vmem:[#allocation12 + $0x280] sm:$0xf]  ;;  %v8698_v43 = vld [vmem:[#allocation12 + $0x20c] sm:$0xf0] }
  0xce   :  { %1243 = vmatpush.bf16.msrb.mxu1 %v6198_v47  ;;  %1269 = vmatpush.bf16.msrb.mxu3 %v6202_v61  ;;  %v6829_v47 = vld [vmem:[#allocation12 + $0x3a0] sm:$0xf] }
  0xcf   :  { %v6830_v58 = vor.u32 %v8750_v48, %v6829_v47  ;;  %v6813_v61 = vld [vmem:[#allocation12 + $0x380] sm:$0xf]  ;;  %v6482_v47 = vor.u32 %v8660_v35, %v6479_v36  ;;  %v6735_v48 = vld [vmem:[#allocation12 + $0x2f0] sm:$0xf0] }
  0xd0   :  { %1231 = vmatpush.bf16.msrb.mxu0 %v5910_v57  ;;  %1257 = vmatpush.bf16.msrb.mxu2 %v5914_v7  ;;  %v8714_v57 = vld [vmem:[#allocation12 + $0x28c] sm:$0xf0]  ;;  %v6797_v7 = vld [vmem:[#allocation12 + $0x360] sm:$0xf] }
  0xd1   :  { %v6686_v0 = vor.u32 %v8714_v57, %v6685_v56  ;;  %v6621_v42 = vld [vmem:[#allocation12 + $0x200] sm:$0xf]  ;;  %v6863_v56 = vld [vmem:[#allocation12 + $0x3f0] sm:$0xf0]  ;;  %v8688_v57 = vld [vmem:[#allocation12 + $0x1c4] sm:$0xf] }
  0xd2   :  { %1244 = vmatpush.bf16.msrb.mxu1 %v6166_v62  ;;  %1270 = vmatpush.bf16.msrb.mxu3 %v6170_v13  ;;  %v6541_v62 = vld [vmem:[#allocation12 + $0x160] sm:$0xf] }
  0xd3   :  { %v6542_v5 = vor.u32 %v8678_v63, %v6541_v62  ;;  %v6381_v13 = vld [vmem:[#allocation12 + $0x20] sm:$0xf]  ;;  %v8652_v62 = vld [vmem:[#allocation12 + $0xa4] sm:$0xf] }
  0xd4   :  { %1232 = vmatpush.bf16.msrb.mxu0 %v5878_v8  ;;  %1258 = vmatpush.bf16.msrb.mxu2 %v5882_v25  ;;  %v8742_v8 = vld [vmem:[#allocation12 + $0x36c] sm:$0xf0]  ;;  %v6382_v25 = vor.u32 %v8638_v18, %v6381_v13  ;;  %v8720_v63 = vld [vmem:[#allocation12 + $0x2c4] sm:$0xf]  ;;  %v6559_v18 = vld [vmem:[#allocation12 + $0x190] sm:$0xf0] }
  0xd5   :  { %v6798_v16 = vor.u32 %v8742_v8, %v6797_v7  ;;  %v6450_v8 = vor.u32 %v8652_v62, %v6447_v2 }
  0xd6   :  { %1245 = vmatpush.bf16.msrb.mxu1 %v6134_v14  ;;  %1271 = vmatpush.bf16.msrb.mxu3 %v6138_v27  ;;  %v6653_v14 = vld [vmem:[#allocation12 + $0x240] sm:$0xf] }
  0xd7   :  { %1233 = vmatmul.bf16.vlgmr.msrb.gmra.mxu0 %v9839_v50  ;;  %1259 = vmatmul.bf16.vlgmr.msrb.gmra.mxu2 %v9839_v50  ;;  %v8746_v50 = vld [vmem:[#allocation12 + $0x38c] sm:$0xf0]  ;;  %v6637_v27 = vld [vmem:[#allocation12 + $0x220] sm:$0xf] }
  0xd8   :  { %2077 = vmatpush.bf16.msra.mxu0 %v6478_v15  ;;  %2103 = vmatpush.bf16.msra.mxu2 %v6734_v26  ;;  %v6814_v4 = vor.u32 %v8746_v50, %v6813_v61  ;;  %v8706_v15 = vld [vmem:[#allocation12 + $0x24c] sm:$0xf0]  ;;  %v6750_v61 = vor.u32 %v8730_v51, %v6749_v49 }
  0xd9   :  { %1246 = vmatmul.bf16.vlgmr.msrb.gmra.mxu1 %v9841_v54  ;;  %1272 = vmatmul.bf16.vlgmr.msrb.gmra.mxu3 %v9841_v54  ;;  %v6414_v54 = vor.u32 %v8646_v60, %v6413_v55  ;;  %v6654_v24 = vor.u32 %v8706_v15, %v6653_v14  ;;  %v8634_v26 = vld [vmem:[#allocation12 + $0xc] sm:$0xf0]  ;;  %v8756_v55 = vld [vmem:[#allocation12 + $0x3e4] sm:$0xf]  ;;  %v6431_v14 = vld [vmem:[#allocation12 + $0x90] sm:$0xf0] }
  0xda   :  { %2090 = vmatpush.bf16.msra.mxu1 %v6606_v19  ;;  %2116 = vmatpush.bf16.msra.mxu3 %v6862_v32  ;;  %v6781_v19 = vld [vmem:[#allocation12 + $0x340] sm:$0xf]  ;;  %v8748_v15 = vld [vmem:[#allocation12 + $0x3a4] sm:$0xf]  ;;  %v6434_v21 = vor.u32 %v8648_v9, %v6431_v14  ;;  %v6639_v9 = vld [vmem:[#allocation12 + $0x230] sm:$0xf0] }
  0xdb   :  { %v6782_v29 = vor.u32 %v8738_v20, %v6781_v19  ;;  %v6765_v32 = vld [vmem:[#allocation12 + $0x320] sm:$0xf]  ;;  %v9859_v19 = vld [vmem:[#allocation11] sm:$0xf]  ;;  %v8664_v14 = vld [vmem:[#allocation12 + $0x104] sm:$0xf] }
  0xdc   :  { %2078 = vmatpush.bf16.msra.mxu0 %v6462_v28  ;;  %2104 = vmatpush.bf16.msra.mxu2 %v6718_v39  ;;  %v8702_v28 = vld [vmem:[#allocation12 + $0x22c] sm:$0xf0]  ;;  %v1279_v31 = vperm.slane %v9859_v19, 0 }
  0xdd   :  { %v6638_v39 = vor.u32 %v8702_v28, %v6637_v27  ;;  %v6415_v27 = vld [vmem:[#allocation12 + $0x70] sm:$0xf0]  ;;  %v8744_v28 = vld [vmem:[#allocation12 + $0x384] sm:$0xf] }
  0xde   :  { %2091 = vmatpush.bf16.msra.mxu1 %v6590_v33  ;;  %2117 = vmatpush.bf16.msra.mxu3 %v6846_v44  ;;  %v8734_v33 = vld [vmem:[#allocation12 + $0x32c] sm:$0xf0]  ;;  %v8724_v44 = vld [vmem:[#allocation12 + $0x2e4] sm:$0xf] }
  0xdf   :  { %v6738_v60 = vor.u32 %v8724_v44, %v6735_v48  ;;  %v6799_v44 = vld [vmem:[#allocation12 + $0x370] sm:$0xf0] }
  0xe0   :  { %2079 = vmatpush.bf16.msra.mxu0 %v6446_v40  ;;  %2105 = vmatpush.bf16.msra.mxu2 %v6702_v52  ;;  %v6366_v40 = vor.u32 %v8634_v26, %v6365_v23  ;;  %v6610_v52 = vor.u32 %v8692_v37, %v6607_v38  ;;  %v8712_v23 = vld [vmem:[#allocation12 + $0x284] sm:$0xf]  ;;  %v6418_v37 = vor.u32 %v8644_v22, %v6415_v27  ;;  %v6527_v48 = vld [vmem:[#allocation12 + $0x150] sm:$0xf0]  ;;  %v6613_v22 = vld [vmem:[#allocation12 + $0x1e8] sm:$0xf] }
  0xe1   :  { %v8708_v38 = vld [vmem:[#allocation12 + $0x264] sm:$0xf] }
  0xe2   :  { %2092 = vmatpush.bf16.msra.mxu1 %v6574_v45  ;;  %2118 = vmatpush.bf16.msra.mxu3 %v6830_v58  ;;  %v6766_v45 = vor.u32 %v8734_v33, %v6765_v32  ;;  %v6591_v58 = vld [vmem:[#allocation12 + $0x1d0] sm:$0xf0]  ;;  %v8676_v32 = vld [vmem:[#allocation12 + $0x164] sm:$0xf] }
  0xe3   :  { %v6594_v1 = vor.u32 %v8688_v57, %v6591_v58  ;;  %v6543_v33 = vld [vmem:[#allocation12 + $0x170] sm:$0xf0] }
  0xe4   :  { %2080 = vmatpush.bf16.msra.mxu0 %v6430_v53  ;;  %2106 = vmatpush.bf16.msra.mxu2 %v6686_v0  ;;  %v6463_v53 = vld [vmem:[#allocation12 + $0xd0] sm:$0xf0] }
  0xe5   :  { %v6466_v50 = vor.u32 %v8656_v41, %v6463_v53  ;;  %v6719_v0 = vld [vmem:[#allocation12 + $0x2d0] sm:$0xf0]  ;;  %v6546_v41 = vor.u32 %v8676_v32, %v6543_v33  ;;  %v8704_v53 = vld [vmem:[#allocation12 + $0x244] sm:$0xf] }
  0xe6   :  { %2093 = vmatpush.bf16.msra.mxu1 %v6558_v59  ;;  %2119 = vmatpush.bf16.msra.mxu3 %v6814_v4  ;;  %v6622_v59 = vor.u32 %v8698_v43, %v6621_v42  ;;  %v6847_v4 = vld [vmem:[#allocation12 + $0x3d0] sm:$0xf0]  ;;  %v6722_v7 = vor.u32 %v8720_v63, %v6719_v0  ;;  %v8640_v42 = vld [vmem:[#allocation12 + $0x44] sm:$0xf] }
  0xe7   :  { %v8740_v43 = vld [vmem:[#allocation12 + $0x364] sm:$0xf]  ;;  %v6383_v0 = vld [vmem:[#allocation12 + $0x30] sm:$0xf0] }
  0xe8   :  { %2081 = vmatpush.bf16.msra.mxu0 %v6414_v54  ;;  %2107 = vmatpush.bf16.msra.mxu2 %v6670_v11  ;;  %v6866_v54 = vor.u32 %v8756_v55, %v6863_v56  ;;  %v6703_v11 = vld [vmem:[#allocation12 + $0x2b0] sm:$0xf0]  ;;  %v6802_v56 = vor.u32 %v8740_v43, %v6799_v44  ;;  %v8728_v32 = vld [vmem:[#allocation12 + $0x304] sm:$0xf] }
  0xe9   :  { %v6706_v20 = vor.u32 %v8716_v10, %v6703_v11  ;;  %v6655_v55 = vld [vmem:[#allocation12 + $0x250] sm:$0xf0] }
  0xea   :  { %2094 = vmatpush.bf16.msra.mxu1 %v6542_v5  ;;  %2120 = vmatpush.bf16.msra.mxu3 %v6798_v16  ;;  %v8684_v5 = vld [vmem:[#allocation12 + $0x1a4] sm:$0xf]  ;;  %v6831_v16 = vld [vmem:[#allocation12 + $0x3b0] sm:$0xf0] }
  0xeb   :  { %v6578_v13 = vor.u32 %v8684_v5, %v6575_v6  ;;  %v6658_v5 = vor.u32 %v8704_v53, %v6655_v55  ;;  %v8632_v6 = vld [vmem:[#allocation12 + $0x4] sm:$0xf]  ;;  %v6751_v33 = vld [vmem:[#allocation12 + $0x310] sm:$0xf0]  ;;  %v8651_v53 = vld [vmem:[#allocation12 + $0x94] sm:$0xf0] }
  0xec   :  { %2082 = vmatpush.bf16.msra.mxu0 %v6398_v12  ;;  %2108 = vmatpush.bf16.msra.mxu2 %v6654_v24  ;;  %v6850_v12 = vor.u32 %v8752_v3, %v6847_v4  ;;  %v6687_v24 = vld [vmem:[#allocation12 + $0x290] sm:$0xf0]  ;;  %v6565_v55 = vld [vmem:[#allocation12 + $0x188] sm:$0xf] }
  0xed   :  { %v6690_v35 = vor.u32 %v8712_v23, %v6687_v24  ;;  %v8695_v23 = vld [vmem:[#allocation12 + $0x1f4] sm:$0xf0] }
  0xee   :  { %2095 = vmatpush.bf16.msra.mxu1 %v6526_v17  ;;  %2121 = vmatpush.bf16.msra.mxu3 %v6782_v29  ;;  %v8680_v17 = vld [vmem:[#allocation12 + $0x184] sm:$0xf]  ;;  %v6815_v29 = vld [vmem:[#allocation12 + $0x390] sm:$0xf0] }
  0xef   :  { %v6562_v26 = vor.u32 %v8680_v17, %v6559_v18  ;;  %v6495_v17 = vld [vmem:[#allocation12 + $0x110] sm:$0xf0]  ;;  %v6485_v18 = vld [vmem:[#allocation12 + $0xe8] sm:$0xf] }
  0xf0   :  { %2083 = vmatpush.bf16.msra.mxu0 %v6382_v25  ;;  %2109 = vmatpush.bf16.msra.mxu2 %v6638_v39  ;;  %v6834_v25 = vor.u32 %v8748_v15, %v6831_v16  ;;  %v6671_v39 = vld [vmem:[#allocation12 + $0x270] sm:$0xf0]  ;;  %v8732_v15 = vld [vmem:[#allocation12 + $0x324] sm:$0xf] }
  0xf1   :  { %v6674_v49 = vor.u32 %v8708_v38, %v6671_v39  ;;  %v6767_v16 = vld [vmem:[#allocation12 + $0x330] sm:$0xf0]  ;;  %v8659_v38 = vld [vmem:[#allocation12 + $0xd4] sm:$0xf0]  ;;  %v6597_v39 = vld [vmem:[#allocation12 + $0x1c8] sm:$0xf] }
  0xf2   :  { %2096 = vmatpush.bf16.msra.mxu1 %v6510_v30  ;;  %2122 = vmatpush.bf16.msra.mxu3 %v6766_v45  ;;  %v6770_v27 = vor.u32 %v8732_v15, %v6767_v16  ;;  %v6389_v16 = vld [vmem:[#allocation12 + $0x28] sm:$0xf] }
  0xf4   :  { %2084 = vmatpush.bf16.msra.mxu0 %v6366_v40  ;;  %2110 = vmatpush.bf16.msra.mxu2 %v6622_v59  ;;  %v1078_v30 = vpop.f32.mrf.mxu0  ;;  %v6818_v40 = vor.u32 %v8744_v28, %v6815_v29 }
  0xf6   :  { %2097 = vmatpush.bf16.msra.mxu1 %v6494_v46  ;;  %2123 = vmatpush.bf16.msra.mxu3 %v6750_v61  ;;  %v1091_v34 = vpop.f32.mrf.mxu1  ;;  %v6399_v46 = vld [vmem:[#allocation12 + $0x50] sm:$0xf0]  ;;  %v8736_v61 = vld [vmem:[#allocation12 + $0x344] sm:$0xf] }
  0xf7   :  { %v1092_v36 = vadd.f32 %v1091_v34, %v1078_v30  ;;  %v6402_v58 = vor.u32 %v8640_v42, %v6399_v46  ;;  %v6498_v30 = vor.u32 %v8664_v14, %v6495_v17  ;;  %v6754_v42 = vor.u32 %v8728_v32, %v6751_v33  ;;  %v8655_v46 = vld [vmem:[#allocation12 + $0xb4] sm:$0xf0] }
  0xf8   :  { %2129 = vmatpush.bf16.msrb.mxu0 %v6482_v47  ;;  %2155 = vmatpush.bf16.msrb.mxu2 %v6738_v60  ;;  %v8672_v47 = vld [vmem:[#allocation12 + $0x144] sm:$0xf] }
  0xf9   :  { %v1287_v45 = vadd.f32 %v1279_v31, %v1092_v36  ;;  %v6530_v59 = vor.u32 %v8672_v47, %v6527_v48  ;;  %v8636_v60 = vld [vmem:[#allocation12 + $0x24] sm:$0xf]  ;;  %v6581_v47 = vld [vmem:[#allocation12 + $0x1a8] sm:$0xf]  ;;  %v8687_v48 = vld [vmem:[#allocation12 + $0x1b4] sm:$0xf0] }
  0xfa   :  { %2142 = vmatpush.bf16.msrb.mxu1 %v6610_v52  ;;  %2168 = vmatpush.bf16.msrb.mxu3 %v6866_v54  ;;  %v1280_v52 = vperm.slane %v9859_v19, 1  ;;  %v1104_v57 = vpop.f32.mrf.mxu2  ;;  %v8668_v54 = vld [vmem:[#allocation12 + $0x124] sm:$0xf] }
  0xfb   :  { %v1291_v51 = vmax.f32 %v1287_v45, 0.0  ;;  %v6453_v45 = vld [vmem:[#allocation12 + $0xa8] sm:$0xf] }
  0xfc   :  { %2130 = vmatpush.bf16.msrb.mxu0 %v6466_v50  ;;  %2156 = vmatpush.bf16.msrb.mxu2 %v6722_v7  ;;  %v6783_v50 = vld [vmem:[#allocation12 + $0x350] sm:$0xf0]  ;;  %v1117_v63 = vpop.f32.mrf.mxu3  ;;  %v1080_v2 = vpop.f32.mrf.mxu0 }
  0xfd   :  { %v9863_v62 = vpack.c.bf16 %v1291_v51, %v1291_v51  ;;  %v1118_v3 = vadd.f32 %v1117_v63, %v1104_v57  ;;  %v6367_v7 = vld [vmem:[#allocation12 + $0x10] sm:$0xf0]  ;;  %v6786_v10 = vor.u32 %v8736_v61, %v6783_v50  ;;  %v6582_v51 = vor.u32 %v8687_v48, %v6581_v47  ;;  %v8647_v50 = vld [vmem:[#allocation12 + $0x74] sm:$0xf0]  ;;  %v6549_v63 = vld [vmem:[#allocation12 + $0x168] sm:$0xf] }
  0xfe   :  { %2143 = vmatpush.bf16.msrb.mxu1 %v6594_v1  ;;  %2169 = vmatpush.bf16.msrb.mxu3 %v6850_v12  ;;  %v6511_v1 = vld [vmem:[#allocation12 + $0x130] sm:$0xf0]  ;;  %v1093_v4 = vpop.f32.mrf.mxu1  ;;  %v6386_v12 = vor.u32 %v8636_v60, %v6383_v0  ;;  %v6370_v29 = vor.u32 %v8632_v6, %v6367_v7  ;;  %v1281_v57 = vperm.slane %v9859_v19, 2  ;;  %v6421_v60 = vld [vmem:[#allocation12 + $0x68] sm:$0xf] }
  0xff   :  { %2085 = vmatmul.bf16.vlgmr.msra.gmra.mxu0 %v9863_v62  ;;  %v1288_v11 = vadd.f32 %v1280_v52, %v1118_v3  ;;  %v6437_v52 = vld [vmem:[#allocation12 + $0x88] sm:$0xf]  ;;  %v8679_v0 = vld [vmem:[#allocation12 + $0x174] sm:$0xf0]  ;;  %v6422_v2 = vor.u32 %v8647_v50, %v6421_v60  ;;  %v6471_v50 = vld [vmem:[#allocation12 + $0xd8] sm:$0xf0] }
 0x100   :  { %2131 = vmatpush.bf16.msrb.mxu0 %v6450_v8  ;;  %2157 = vmatpush.bf16.msrb.mxu2 %v6706_v20  ;;  %v8700_v8 = vld [vmem:[#allocation12 + $0x224] sm:$0xf]  ;;  %v8663_v20 = vld [vmem:[#allocation12 + $0xf4] sm:$0xf0]  ;;  %v6550_v3 = vor.u32 %v8679_v0, %v6549_v63  ;;  %v6405_v4 = vld [vmem:[#allocation12 + $0x48] sm:$0xf] }
 0x101   :  { %v6642_v24 = vor.u32 %v8700_v8, %v6639_v9  ;;  %v6486_v34 = vor.u32 %v8663_v20, %v6485_v18  ;;  %v8643_v6 = vld [vmem:[#allocation12 + $0x54] sm:$0xf0]  ;;  %v6533_v7 = vld [vmem:[#allocation12 + $0x148] sm:$0xf]  ;;  %v8689_v0 = vld [vmem:[#allocation12 + $0x1cc] sm:$0xf] }
 0x102   :  { %2144 = vmatpush.bf16.msrb.mxu1 %v6578_v13  ;;  %2170 = vmatpush.bf16.msrb.mxu3 %v6834_v25  ;;  %v6514_v13 = vor.u32 %v8668_v54, %v6511_v1  ;;  %v8696_v25 = vld [vmem:[#allocation12 + $0x204] sm:$0xf]  ;;  %v1106_v31 = vpop.f32.mrf.mxu2  ;;  %v8675_v8 = vld [vmem:[#allocation12 + $0x154] sm:$0xf0]  ;;  %v6741_v9 = vld [vmem:[#allocation12 + $0x2e8] sm:$0xf]  ;;  %v6406_v14 = vor.u32 %v8643_v6, %v6405_v4 }
 0x103   :  { %v6534_v15 = vor.u32 %v8675_v8, %v6533_v7  ;;  %v8759_v31 = vld [vmem:[#allocation12 + $0x3f4] sm:$0xf0]  ;;  %v8653_v8 = vld [vmem:[#allocation12 + $0xac] sm:$0xf] }
 0x104   :  { %2132 = vmatpush.bf16.msrb.mxu0 %v6434_v21  ;;  %2158 = vmatpush.bf16.msrb.mxu2 %v6690_v35  ;;  %v1292_v21 = vmax.f32 %v1288_v11, 0.0  ;;  %v6614_v35 = vor.u32 %v8695_v23, %v6613_v22  ;;  %v1119_v36 = vpop.f32.mrf.mxu3  ;;  %v8639_v22 = vld [vmem:[#allocation12 + $0x34] sm:$0xf0]  ;;  %v6517_v23 = vld [vmem:[#allocation12 + $0x128] sm:$0xf] }
 0x105   :  { %v6390_v32 = vor.u32 %v8639_v22, %v6389_v16  ;;  %v6501_v36 = vld [vmem:[#allocation12 + $0x108] sm:$0xf]  ;;  %v8715_v60 = vld [vmem:[#allocation12 + $0x294] sm:$0xf0]  ;;  %v8649_v22 = vld [vmem:[#allocation12 + $0x8c] sm:$0xf] }
 0x106   :  { %2145 = vmatpush.bf16.msrb.mxu1 %v6562_v26  ;;  %2171 = vmatpush.bf16.msrb.mxu3 %v6818_v40  ;;  %v6623_v26 = vld [vmem:[#allocation12 + $0x210] sm:$0xf0]  ;;  %v9866_v28 = vpack.c.bf16 %v1292_v21, %v1292_v21  ;;  %v8691_v40 = vld [vmem:[#allocation12 + $0x1d4] sm:$0xf0] }
 0x107   :  { %v6598_v44 = vor.u32 %v8691_v40, %v6597_v39  ;;  %v6709_v39 = vld [vmem:[#allocation12 + $0x2a8] sm:$0xf]  ;;  %v8719_v40 = vld [vmem:[#allocation12 + $0x2b4] sm:$0xf0] }
 0x108   :  { %2133 = vmatpush.bf16.msrb.mxu0 %v6418_v37  ;;  %2159 = vmatpush.bf16.msrb.mxu2 %v6674_v49  ;;  %v6469_v37 = vld [vmem:[#allocation12 + $0xc8] sm:$0xf]  ;;  %v6454_v49 = vor.u32 %v8655_v46, %v6453_v45  ;;  %v8693_v45 = vld [vmem:[#allocation12 + $0x1ec] sm:$0xf]  ;;  %v6615_v46 = vld [vmem:[#allocation12 + $0x1f8] sm:$0xf0] }
 0x109   :  { %2098 = vmatmul.bf16.vlgmr.msra.gmra.mxu1 %v9866_v28  ;;  %v6470_v43 = vor.u32 %v8659_v38, %v6469_v37  ;;  %v8667_v38 = vld [vmem:[#allocation12 + $0x114] sm:$0xf0] }
 0x10a   :  { %2146 = vmatpush.bf16.msrb.mxu1 %v6546_v41  ;;  %2172 = vmatpush.bf16.msrb.mxu3 %v6802_v56  ;;  %v6626_v41 = vor.u32 %v8696_v25, %v6623_v26  ;;  %v8683_v56 = vld [vmem:[#allocation12 + $0x194] sm:$0xf0] }
 0x10b   :  { %v8711_v7 = vld [vmem:[#allocation12 + $0x274] sm:$0xf0] }
 0x10c   :  { %2134 = vmatpush.bf16.msrb.mxu0 %v6402_v58  ;;  %2160 = vmatpush.bf16.msrb.mxu2 %v6658_v5  ;;  %v6438_v58 = vor.u32 %v8651_v53, %v6437_v52  ;;  %v6853_v52 = vld [vmem:[#allocation12 + $0x3c8] sm:$0xf]  ;;  %v8755_v53 = vld [vmem:[#allocation12 + $0x3d4] sm:$0xf0] }
 0x10d   :  { %v6854_v63 = vor.u32 %v8755_v53, %v6853_v52  ;;  %v6535_v52 = vld [vmem:[#allocation12 + $0x158] sm:$0xf0]  ;;  %v8725_v53 = vld [vmem:[#allocation12 + $0x2ec] sm:$0xf] }
 0x10e   :  { %2147 = vmatpush.bf16.msrb.mxu1 %v6530_v59  ;;  %2173 = vmatpush.bf16.msrb.mxu3 %v6786_v10  ;;  %v6566_v59 = vor.u32 %v8683_v56, %v6565_v55  ;;  %v8727_v10 = vld [vmem:[#allocation12 + $0x2f4] sm:$0xf0]  ;;  %v6710_v56 = vor.u32 %v8719_v40, %v6709_v39  ;;  %v6789_v39 = vld [vmem:[#allocation12 + $0x348] sm:$0xf] }
 0x10f   :  { %v6742_v21 = vor.u32 %v8727_v10, %v6741_v9  ;;  %v6455_v9 = vld [vmem:[#allocation12 + $0xb8] sm:$0xf0]  ;;  %v8739_v40 = vld [vmem:[#allocation12 + $0x354] sm:$0xf0] }
 0x110   :  { %2135 = vmatpush.bf16.msrb.mxu0 %v6386_v12  ;;  %2161 = vmatpush.bf16.msrb.mxu2 %v6642_v24  ;;  %v8671_v24 = vld [vmem:[#allocation12 + $0x134] sm:$0xf0]  ;;  %v6458_v16 = vor.u32 %v8653_v8, %v6455_v9  ;;  %v6871_v8 = vld [vmem:[#allocation12 + $0x3f8] sm:$0xf0] }
 0x111   :  { %v6518_v33 = vor.u32 %v8671_v24, %v6517_v23  ;;  %v6439_v23 = vld [vmem:[#allocation12 + $0x98] sm:$0xf0] }
 0x112   :  { %2148 = vmatpush.bf16.msrb.mxu1 %v6514_v13  ;;  %2174 = vmatpush.bf16.msrb.mxu3 %v6770_v27  ;;  %v1282_v13 = vperm.slane %v9859_v19, 3  ;;  %v6725_v27 = vld [vmem:[#allocation12 + $0x2c8] sm:$0xf] }
 0x114   :  { %2136 = vmatpush.bf16.msrb.mxu0 %v6370_v29  ;;  %2162 = vmatpush.bf16.msrb.mxu2 %v6626_v41  ;;  %v1130_v61 = vpop.f32.mrf.mxu0  ;;  %v8723_v29 = vld [vmem:[#allocation12 + $0x2d4] sm:$0xf0] }
 0x115   :  { %v6726_v37 = vor.u32 %v8723_v29, %v6725_v27  ;;  %v6805_v27 = vld [vmem:[#allocation12 + $0x368] sm:$0xf]  ;;  %v8743_v29 = vld [vmem:[#allocation12 + $0x374] sm:$0xf0] }
 0x116   :  { %2149 = vmatpush.bf16.msrb.mxu1 %v6498_v30  ;;  %2175 = vmatpush.bf16.msrb.mxu3 %v6754_v42  ;;  %v1143_v54 = vpop.f32.mrf.mxu1  ;;  %v6869_v30 = vld [vmem:[#allocation12 + $0x3e8] sm:$0xf]  ;;  %v8661_v42 = vld [vmem:[#allocation12 + $0xec] sm:$0xf] }
 0x117   :  { %2137 = vmatmul.bf16.vlgmr.msrb.gmra.mxu0 %v9863_v62  ;;  %v1144_v1 = vadd.f32 %v1143_v54, %v1130_v61  ;;  %v8657_v61 = vld [vmem:[#allocation12 + $0xcc] sm:$0xf]  ;;  %v6599_v54 = vld [vmem:[#allocation12 + $0x1d8] sm:$0xf0] }
 0x118   :  { %2181 = vmatpush.bf16.msra.mxu0 %v6486_v34  ;;  %v6373_v34 = vld [vmem:[#allocation12 + $0x8] sm:$0xf]  ;;  %v6474_v4 = vor.u32 %v8657_v61, %v6471_v50  ;;  %v6602_v6 = vor.u32 %v8689_v0, %v6599_v54  ;;  %v8637_v50 = vld [vmem:[#allocation12 + $0x2c] sm:$0xf] }
 0x119   :  { %v1289_v5 = vadd.f32 %v1281_v57, %v1144_v1  ;;  %2150 = vmatmul.bf16.vlgmr.msrb.gmra.mxu1 %v9866_v28  ;;  %v6837_v1 = vld [vmem:[#allocation12 + $0x3a8] sm:$0xf]  ;;  %v8669_v0 = vld [vmem:[#allocation12 + $0x12c] sm:$0xf] }
 0x11a   :  { %2194 = vmatpush.bf16.msra.mxu1 %v6614_v35  ;;  %v1156_v12 = vpop.f32.mrf.mxu2  ;;  %v8635_v35 = vld [vmem:[#allocation12 + $0x14] sm:$0xf0] }
 0x11b   :  { %v1293_v11 = vmax.f32 %v1289_v5, 0.0  ;;  %v6677_v5 = vld [vmem:[#allocation12 + $0x268] sm:$0xf] }
 0x11c   :  { %2182 = vmatpush.bf16.msra.mxu0 %v6470_v43  ;;  %v1169_v18 = vpop.f32.mrf.mxu3  ;;  %v1132_v20 = vpop.f32.mrf.mxu0  ;;  %v6487_v43 = vld [vmem:[#allocation12 + $0xf8] sm:$0xf0] }
 0x11d   :  { %v9873_v17 = vpack.c.bf16 %v1293_v11, %v1293_v11  ;;  %v1170_v25 = vadd.f32 %v1169_v18, %v1156_v12  ;;  %v6490_v57 = vor.u32 %v8661_v42, %v6487_v43  ;;  %v8685_v11 = vld [vmem:[#allocation12 + $0x1ac] sm:$0xf]  ;;  %v6583_v12 = vld [vmem:[#allocation12 + $0x1b8] sm:$0xf0]  ;;  %v6661_v18 = vld [vmem:[#allocation12 + $0x248] sm:$0xf] }
 0x11e   :  { %2195 = vmatpush.bf16.msra.mxu1 %v6598_v44  ;;  %v1145_v26 = vpop.f32.mrf.mxu1  ;;  %v6870_v44 = vor.u32 %v8759_v31, %v6869_v30  ;;  %v6586_v20 = vor.u32 %v8685_v11, %v6583_v12  ;;  %v6442_v31 = vor.u32 %v8649_v22, %v6439_v23  ;;  %v6629_v43 = vld [vmem:[#allocation12 + $0x208] sm:$0xf]  ;;  %v8633_v11 = vld [vmem:[#allocation12 + $0xc] sm:$0xf]  ;;  %v6375_v12 = vld [vmem:[#allocation12 + $0x18] sm:$0xf0] }
 0x11f   :  { %2111 = vmatmul.bf16.vlgmr.msra.gmra.mxu2 %v9873_v17  ;;  %v1290_v19 = vadd.f32 %v1282_v13, %v1170_v25  ;;  %v6821_v13 = vld [vmem:[#allocation12 + $0x388] sm:$0xf]  ;;  %v8681_v25 = vld [vmem:[#allocation12 + $0x18c] sm:$0xf]  ;;  %v6567_v26 = vld [vmem:[#allocation12 + $0x198] sm:$0xf0]  ;;  %v6378_v22 = vor.u32 %v8633_v11, %v6375_v12 }
 0x120   :  { %2183 = vmatpush.bf16.msra.mxu0 %v6454_v49  ;;  %2207 = vmatpush.bf16.msra.mxu2 %v6742_v21  ;;  %v6374_v49 = vor.u32 %v8635_v35, %v6373_v34  ;;  %v8707_v21 = vld [vmem:[#allocation12 + $0x254] sm:$0xf0]  ;;  %v8645_v34 = vld [vmem:[#allocation12 + $0x6c] sm:$0xf]  ;;  %v6423_v35 = vld [vmem:[#allocation12 + $0x78] sm:$0xf0] }
 0x121   :  { %v1294_v41 = vmax.f32 %v1290_v19, 0.0  ;;  %v6662_v30 = vor.u32 %v8707_v21, %v6661_v18  ;;  %v6645_v19 = vld [vmem:[#allocation12 + $0x228] sm:$0xf]  ;;  %v6426_v42 = vor.u32 %v8645_v34, %v6423_v35  ;;  %v6711_v18 = vld [vmem:[#allocation12 + $0x2b8] sm:$0xf0] }
 0x122   :  { %2196 = vmatpush.bf16.msra.mxu1 %v6582_v51  ;;  %v1158_v48 = vpop.f32.mrf.mxu2  ;;  %v6502_v51 = vor.u32 %v8667_v38, %v6501_v36  ;;  %v6806_v36 = vor.u32 %v8743_v29, %v6805_v27  ;;  %v6551_v38 = vld [vmem:[#allocation12 + $0x178] sm:$0xf0]  ;;  %v8753_v23 = vld [vmem:[#allocation12 + $0x3cc] sm:$0xf] }
 0x123   :  { %v9876_v47 = vpack.c.bf16 %v1294_v41, %v1294_v41  ;;  %v6407_v48 = vld [vmem:[#allocation12 + $0x58] sm:$0xf0]  ;;  %v8713_v27 = vld [vmem:[#allocation12 + $0x28c] sm:$0xf] }
 0x124   :  { %2184 = vmatpush.bf16.msra.mxu0 %v6438_v58  ;;  %2208 = vmatpush.bf16.msra.mxu2 %v6726_v37  ;;  %v1171_v55 = vpop.f32.mrf.mxu3  ;;  %v6693_v58 = vld [vmem:[#allocation12 + $0x288] sm:$0xf]  ;;  %v8677_v37 = vld [vmem:[#allocation12 + $0x16c] sm:$0xf]  ;;  %v6695_v29 = vld [vmem:[#allocation12 + $0x298] sm:$0xf0] }
 0x125   :  { %2124 = vmatmul.bf16.vlgmr.msra.gmra.mxu3 %v9876_v47  ;;  %v6743_v55 = vld [vmem:[#allocation12 + $0x2f8] sm:$0xf0]  ;;  %v8749_v34 = vld [vmem:[#allocation12 + $0x3ac] sm:$0xf] }
 0x126   :  { %2197 = vmatpush.bf16.msra.mxu1 %v6566_v59  ;;  %v6618_v59 = vor.u32 %v8693_v45, %v6615_v46  ;;  %2220 = vmatpush.bf16.msra.mxu3 %v6870_v44  ;;  %v8699_v44 = vld [vmem:[#allocation12 + $0x214] sm:$0xf0]  ;;  %v6554_v45 = vor.u32 %v8677_v37, %v6551_v38  ;;  %v8641_v46 = vld [vmem:[#allocation12 + $0x4c] sm:$0xf]  ;;  %v6746_v61 = vor.u32 %v8725_v53, %v6743_v55  ;;  %v6839_v35 = vld [vmem:[#allocation12 + $0x3b8] sm:$0xf0] }
 0x127   :  { %v6698_v37 = vor.u32 %v8713_v27, %v6695_v29  ;;  %v8709_v38 = vld [vmem:[#allocation12 + $0x26c] sm:$0xf]  ;;  %v6807_v55 = vld [vmem:[#allocation12 + $0x378] sm:$0xf0] }
 0x128   :  { %2185 = vmatpush.bf16.msra.mxu0 %v6422_v2  ;;  %v8751_v2 = vld [vmem:[#allocation12 + $0x3b4] sm:$0xf0]  ;;  %2209 = vmatpush.bf16.msra.mxu2 %v6710_v56  ;;  %v6773_v56 = vld [vmem:[#allocation12 + $0x328] sm:$0xf]  ;;  %v8741_v53 = vld [vmem:[#allocation12 + $0x36c] sm:$0xf] }
 0x129   :  { %v6838_v10 = vor.u32 %v8751_v2, %v6837_v1  ;;  %v6519_v1 = vld [vmem:[#allocation12 + $0x138] sm:$0xf0]  ;;  %v8721_v2 = vld [vmem:[#allocation12 + $0x2cc] sm:$0xf] }
 0x12a   :  { %2198 = vmatpush.bf16.msra.mxu1 %v6550_v3  ;;  %v6694_v3 = vor.u32 %v8715_v60, %v6693_v58  ;;  %2221 = vmatpush.bf16.msra.mxu3 %v6854_v63  ;;  %v6630_v58 = vor.u32 %v8699_v44, %v6629_v43  ;;  %v6391_v63 = vld [vmem:[#allocation12 + $0x38] sm:$0xf0]  ;;  %v6522_v9 = vor.u32 %v8669_v0, %v6519_v1  ;;  %v8733_v1 = vld [vmem:[#allocation12 + $0x32c] sm:$0xf] }
 0x12b   :  { %v6823_v43 = vld [vmem:[#allocation12 + $0x398] sm:$0xf0]  ;;  %v8761_v27 = vld [vmem:[%s10283_s8 + $0x8] sm:$0xff] }
 0x12c   :  { %2186 = vmatpush.bf16.msra.mxu0 %v6406_v14  ;;  %v8747_v14 = vld [vmem:[#allocation12 + $0x394] sm:$0xf0]  ;;  %2210 = vmatpush.bf16.msra.mxu2 %v6694_v3  ;;  %v6727_v3 = vld [vmem:[#allocation12 + $0x2d8] sm:$0xf0]  ;;  %v8773_v29 = vld [vmem:[%s10283_s8 + $0x68] sm:$0xff] }
 0x12d   :  { %v6822_v24 = vor.u32 %v8747_v14, %v6821_v13  ;;  %v8665_v13 = vld [vmem:[#allocation12 + $0x10c] sm:$0xf] }
 0x12e   :  { %2199 = vmatpush.bf16.msra.mxu1 %v6534_v15  ;;  %v6678_v15 = vor.u32 %v8711_v7, %v6677_v5  ;;  %2222 = vmatpush.bf16.msra.mxu3 %v6838_v10  ;;  %v8731_v5 = vld [vmem:[#allocation12 + $0x314] sm:$0xf0]  ;;  %v8757_v7 = vld [vmem:[#allocation12 + $0x3ec] sm:$0xf]  ;;  %v6730_v10 = vor.u32 %v8721_v2, %v6727_v3  ;;  %v6775_v2 = vld [vmem:[#allocation12 + $0x338] sm:$0xf0] }
 0x12f   :  { %2163 = vmatmul.bf16.vlgmr.msrb.gmra.mxu2 %v9873_v17 }
 0x130   :  { %2187 = vmatpush.bf16.msra.mxu0 %v6390_v32  ;;  %2211 = vmatpush.bf16.msra.mxu2 %v6678_v15  ;;  %v6570_v32 = vor.u32 %v8681_v25, %v6567_v26  ;;  %v6503_v15 = vld [vmem:[#allocation12 + $0x118] sm:$0xf0] }
 0x131   :  { %v6506_v25 = vor.u32 %v8665_v13, %v6503_v15 }
 0x132   :  { %2200 = vmatpush.bf16.msra.mxu1 %v6518_v33  ;;  %v8703_v33 = vld [vmem:[#allocation12 + $0x234] sm:$0xf0]  ;;  %2223 = vmatpush.bf16.msra.mxu3 %v6822_v24  ;;  %v6855_v24 = vld [vmem:[#allocation12 + $0x3d8] sm:$0xf0] }
 0x133   :  { %v6646_v41 = vor.u32 %v8703_v33, %v6645_v19  ;;  %v6858_v19 = vor.u32 %v8753_v23, %v6855_v24  ;;  %v8762_v23 = vld [vmem:[%s10283_s8 + $0x10] sm:$0xff] }
 0x134   :  { %2188 = vmatpush.bf16.msra.mxu0 %v6374_v49  ;;  %2212 = vmatpush.bf16.msra.mxu2 %v6662_v30  ;;  %v8673_v49 = vld [vmem:[#allocation12 + $0x14c] sm:$0xf]  ;;  %v1182_v21 = vpop.f32.mrf.mxu0  ;;  %v8774_v24 = vld [vmem:[%s10283_s8 + $0x70] sm:$0xff] }
 0x135   :  { %2176 = vmatmul.bf16.vlgmr.msrb.gmra.mxu3 %v9876_v47  ;;  %v6538_v60 = vor.u32 %v8673_v49, %v6535_v52 }
 0x136   :  { %2201 = vmatpush.bf16.msra.mxu1 %v6502_v51  ;;  %2224 = vmatpush.bf16.msra.mxu3 %v6806_v36  ;;  %v6790_v51 = vor.u32 %v8739_v40, %v6789_v39  ;;  %v1195_v30 = vpop.f32.mrf.mxu1  ;;  %v6679_v39 = vld [vmem:[#allocation12 + $0x278] sm:$0xf0]  ;;  %v6842_v40 = vor.u32 %v8749_v34, %v6839_v35 }
 0x137   :  { %2189 = vmatmul.bf16.vlgmr.msra.gmra.mxu0 %v9863_v62  ;;  %v6682_v44 = vor.u32 %v8709_v38, %v6679_v39  ;;  %v8771_v34 = vld [vmem:[%s10283_s8 + $0x58] sm:$0xff]  ;;  %v8782_v38 = vld [vmem:[%s10283_s8 + $0xb0] sm:$0xff] }
 0x138   :  { %2233 = vmatpush.bf16.msrb.mxu0 %v6490_v57  ;;  %v8735_v57 = vld [vmem:[#allocation12 + $0x334] sm:$0xf0]  ;;  %2213 = vmatpush.bf16.msra.mxu2 %v6646_v41  ;;  %v8783_v35 = vld [vmem:[%s10283_s8 + $0xb8] sm:$0xff] }
 0x139   :  { %2202 = vmatmul.bf16.vlgmr.msra.gmra.mxu1 %v9866_v28  ;;  %v6774_v54 = vor.u32 %v8735_v57, %v6773_v56  ;;  %v6647_v57 = vld [vmem:[#allocation12 + $0x238] sm:$0xf0] }
 0x13a   :  { %2246 = vmatpush.bf16.msrb.mxu1 %v6618_v59  ;;  %v6410_v59 = vor.u32 %v8641_v46, %v6407_v48  ;;  %2225 = vmatpush.bf16.msra.mxu3 %v6790_v51  ;;  %v6663_v46 = vld [vmem:[#allocation12 + $0x258] sm:$0xf0] }
 0x13c   :  { %2234 = vmatpush.bf16.msrb.mxu0 %v6474_v4  ;;  %v6757_v4 = vld [vmem:[#allocation12 + $0x308] sm:$0xf]  ;;  %2214 = vmatpush.bf16.msra.mxu2 %v6630_v58  ;;  %v1221_v33 = vpop.f32.mrf.mxu3  ;;  %v1184_v41 = vpop.f32.mrf.mxu0  ;;  %v6810_v58 = vor.u32 %v8741_v53, %v6807_v55  ;;  %v8778_v53 = vld [vmem:[%s10283_s8 + $0x90] sm:$0xff] }
 0x13d   :  { %v6758_v14 = vor.u32 %v8731_v5, %v6757_v4  ;;  %v6778_v5 = vor.u32 %v8733_v1, %v6775_v2  ;;  %v8769_v41 = vld [vmem:[%s10283_s8 + $0x48] sm:$0xff]  ;;  %v8790_v2 = vld [vmem:[%s10283_s8 + $0xf0] sm:$0xff] }
 0x13e   :  { %2247 = vmatpush.bf16.msrb.mxu1 %v6602_v6  ;;  %v6394_v6 = vor.u32 %v8637_v50, %v6391_v63  ;;  %2226 = vmatpush.bf16.msra.mxu3 %v6774_v54  ;;  %v1197_v48 = vpop.f32.mrf.mxu1  ;;  %v8697_v50 = vld [vmem:[#allocation12 + $0x20c] sm:$0xf]  ;;  %v6631_v63 = vld [vmem:[#allocation12 + $0x218] sm:$0xf0] }
 0x13f   :  { %2215 = vmatmul.bf16.vlgmr.msra.gmra.mxu2 %v9873_v17  ;;  %v6634_v4 = vor.u32 %v8697_v50, %v6631_v63  ;;  %v8776_v50 = vld [vmem:[%s10283_s8 + $0x80] sm:$0xff]  ;;  %v8791_v63 = vld [vmem:[%s10283_s8 + $0xf8] sm:$0xff] }
 0x140   :  { %2235 = vmatpush.bf16.msrb.mxu0 %v6458_v16  ;;  %2259 = vmatpush.bf16.msrb.mxu2 %v6746_v61  ;;  %v8717_v16 = vld [vmem:[#allocation12 + $0x2ac] sm:$0xf] }
 0x141   :  { %v6714_v26 = vor.u32 %v8717_v16, %v6711_v18  ;;  %v8767_v16 = vld [vmem:[%s10283_s8 + $0x38] sm:$0xff]  ;;  %v8766_v18 = vld [vmem:[%s10283_s8 + $0x30] sm:$0xff] }
 0x142   :  { %2248 = vmatpush.bf16.msrb.mxu1 %v6586_v20  ;;  %v6874_v20 = vor.u32 %v8757_v7, %v6871_v8  ;;  %2227 = vmatpush.bf16.msra.mxu3 %v6758_v14  ;;  %v8729_v7 = vld [vmem:[#allocation12 + $0x30c] sm:$0xf]  ;;  %v6759_v8 = vld [vmem:[#allocation12 + $0x318] sm:$0xf0] }
 0x144   :  { %2236 = vmatpush.bf16.msrb.mxu0 %v6442_v31  ;;  %2260 = vmatpush.bf16.msrb.mxu2 %v6730_v10  ;;  %v1208_v31 = vpop.f32.mrf.mxu2  ;;  %v1223_v52 = vpop.f32.mrf.mxu3 }
 0x145   :  { %v9886_v36 = vadd.f32 %v1221_v33, %v1208_v31  ;;  %2228 = vmatmul.bf16.vlgmr.msra.gmra.mxu3 %v9876_v47  ;;  %v8772_v31 = vld [vmem:[%s10283_s8 + $0x60] sm:$0xff] }
 0x146   :  { %2249 = vmatpush.bf16.msrb.mxu1 %v6570_v32  ;;  %2272 = vmatpush.bf16.msrb.mxu3 %v6874_v20  ;;  %v9884_v32 = vadd.f32 %v1195_v30, %v1182_v21  ;;  %v8763_v20 = vld [vmem:[%s10283_s8 + $0x18] sm:$0xff]  ;;  %v8760_v30 = vld [vmem:[%s10283_s8] sm:$0xff] }
 0x147   :  { %v8775_v21 = vld [vmem:[%s10283_s8 + $0x78] sm:$0xff] }
 0x148   :  { %2237 = vmatpush.bf16.msrb.mxu0 %v6426_v42  ;;  %2261 = vmatpush.bf16.msrb.mxu2 %v6714_v26  ;;  %v8745_v42 = vld [vmem:[#allocation12 + $0x38c] sm:$0xf] }
 0x149   :  { %v6826_v51 = vor.u32 %v8745_v42, %v6823_v43  ;;  %v8781_v42 = vld [vmem:[%s10283_s8 + $0xa8] sm:$0xff]  ;;  %v9951_v43 = vld [vmem:[#allocation14] sm:$0xf] }
 0x14a   :  { %2250 = vmatpush.bf16.msrb.mxu1 %v6554_v45  ;;  %2273 = vmatpush.bf16.msrb.mxu3 %v6858_v19  ;;  %v8705_v45 = vld [vmem:[#allocation12 + $0x24c] sm:$0xf] }
 0x14b   :  { %v6666_v56 = vor.u32 %v8705_v45, %v6663_v46  ;;  %v8780_v45 = vld [vmem:[%s10283_s8 + $0xa0] sm:$0xff]  ;;  %v1429_v46 = vperm.slane %v9951_v43, 0 }
 0x14c   :  { %2238 = vmatpush.bf16.msrb.mxu0 %v6410_v59  ;;  %2262 = vmatpush.bf16.msrb.mxu2 %v6698_v37  ;;  %v1210_v49 = vpop.f32.mrf.mxu2  ;;  %v8737_v59 = vld [vmem:[#allocation12 + $0x34c] sm:$0xf]  ;;  %v8770_v37 = vld [vmem:[%s10283_s8 + $0x50] sm:$0xff] }
 0x14d   :  { %v8779_v49 = vld [vmem:[%s10283_s8 + $0x98] sm:$0xff] }
 0x14e   :  { %2251 = vmatpush.bf16.msrb.mxu1 %v6538_v60  ;;  %2274 = vmatpush.bf16.msrb.mxu3 %v6842_v40  ;;  %v6791_v60 = vld [vmem:[#allocation12 + $0x358] sm:$0xf0] }
 0x14f   :  { %v6794_v0 = vor.u32 %v8737_v59, %v6791_v60 }
 0x150   :  { %2239 = vmatpush.bf16.msrb.mxu0 %v6394_v6  ;;  %2263 = vmatpush.bf16.msrb.mxu2 %v6682_v44  ;;  %v8768_v44 = vld [vmem:[%s10283_s8 + $0x40] sm:$0xff] }
 0x152   :  { %2252 = vmatpush.bf16.msrb.mxu1 %v6522_v9  ;;  %2275 = vmatpush.bf16.msrb.mxu3 %v6826_v51  ;;  %v6762_v9 = vor.u32 %v8729_v7, %v6759_v8  ;;  %v8789_v7 = vld [vmem:[%s10283_s8 + $0xe8] sm:$0xff] }
 0x154   :  { %2240 = vmatpush.bf16.msrb.mxu0 %v6378_v22  ;;  %2264 = vmatpush.bf16.msrb.mxu2 %v6666_v56 }
 0x156   :  { %2253 = vmatpush.bf16.msrb.mxu1 %v6506_v25  ;;  %2276 = vmatpush.bf16.msrb.mxu3 %v6810_v58  ;;  %v1247_v54 = vpop.f32.mrf.mxu1 }
 0x157   :  { %2241 = vmatmul.bf16.vlgmr.msrb.gmra.mxu0 %v9863_v62  ;;  %v8701_v62 = vld [vmem:[#allocation12 + $0x22c] sm:$0xf] }
 0x158   :  { %v6650_v61 = vor.u32 %v8701_v62, %v6647_v57  ;;  %2553 = vmatpush.bf16.msra.mxu0 %v8767_v16  ;;  %v8777_v57 = vld [vmem:[%s10283_s8 + $0x88] sm:$0xff]  ;;  %v8787_v16 = vld [vmem:[%s10283_s8 + $0xd8] sm:$0xff] }
 0x159   :  { %2254 = vmatmul.bf16.vlgmr.msrb.gmra.mxu1 %v9866_v28  ;;  %v1234_v28 = vpop.f32.mrf.mxu0 }
 0x15a   :  { %v9891_v3 = vadd.f32 %v1247_v54, %v1234_v28  ;;  %2265 = vmatpush.bf16.msrb.mxu2 %v6650_v61  ;;  %2277 = vmatpush.bf16.msrb.mxu3 %v6794_v0  ;;  %v1260_v11 = vpop.f32.mrf.mxu2  ;;  %v1430_v54 = vperm.slane %v9951_v43, 1 }
 0x15b   :  { %2566 = vmatpush.bf16.msra.mxu1 %v8775_v21 }
 0x15c   :  { %v1273_v12 = vpop.f32.mrf.mxu3  ;;  %2554 = vmatpush.bf16.msra.mxu0 %v8766_v18 }
 0x15d   :  { %v9894_v13 = vadd.f32 %v1273_v12, %v1260_v11 }
 0x15e   :  { %2266 = vmatpush.bf16.msrb.mxu2 %v6634_v4  ;;  %2278 = vmatpush.bf16.msrb.mxu3 %v6778_v5  ;;  %v1249_v10 = vpop.f32.mrf.mxu1 }
 0x15f   :  { %2567 = vmatpush.bf16.msra.mxu1 %v8774_v24  ;;  %v8788_v10 = vld [vmem:[%s10283_s8 + $0xe0] sm:$0xff]  ;;  %v8785_v24 = vld [vmem:[%s10283_s8 + $0xc8] sm:$0xff] }
 0x161   :  { %v1236_v6 = vpop.f32.mrf.mxu0  ;;  %2267 = vmatmul.bf16.vlgmr.msrb.gmra.mxu2 %v9873_v17  ;;  %v8765_v17 = vld [vmem:[%s10283_s8 + $0x28] sm:$0xff] }
 0x162   :  { %2279 = vmatpush.bf16.msrb.mxu3 %v6762_v9  ;;  %v1262_v14 = vpop.f32.mrf.mxu2  ;;  %2555 = vmatpush.bf16.msra.mxu0 %v8765_v17 }
 0x163   :  { %2568 = vmatpush.bf16.msra.mxu1 %v8773_v29  ;;  %2579 = vmatpush.bf16.msra.mxu2 %v8783_v35  ;;  %v8784_v29 = vld [vmem:[%s10283_s8 + $0xc0] sm:$0xff] }
 0x164   :  { %v1275_v15 = vpop.f32.mrf.mxu3 }
 0x165   :  { %2280 = vmatmul.bf16.vlgmr.msrb.gmra.mxu3 %v9876_v47  ;;  %v8764_v47 = vld [vmem:[%s10283_s8 + $0x20] sm:$0xff] }
 0x166   :  { %2556 = vmatpush.bf16.msra.mxu0 %v8764_v47  ;;  %2592 = vmatpush.bf16.msra.mxu3 %v8791_v63  ;;  %v1431_v47 = vperm.slane %v9951_v43, 2  ;;  %v2630_v63 = vld [vmem:[#allocation6] sm:$0xff] }
 0x167   :  { %2569 = vmatpush.bf16.msra.mxu1 %v8772_v31  ;;  %2580 = vmatpush.bf16.msra.mxu2 %v8782_v38 }
 0x16a   :  { %2557 = vmatpush.bf16.msra.mxu0 %v8763_v20  ;;  %2593 = vmatpush.bf16.msra.mxu3 %v8790_v2  ;;  %v8786_v20 = vld [vmem:[%s10283_s8 + $0xd0] sm:$0xff] }
 0x16b   :  { %2570 = vmatpush.bf16.msra.mxu1 %v8771_v34  ;;  %2581 = vmatpush.bf16.msra.mxu2 %v8781_v42 }
 0x16e   :  { %2558 = vmatpush.bf16.msra.mxu0 %v8762_v23  ;;  %2594 = vmatpush.bf16.msra.mxu3 %v8789_v7 }
 0x16f   :  { %2571 = vmatpush.bf16.msra.mxu1 %v8770_v37  ;;  %2582 = vmatpush.bf16.msra.mxu2 %v8780_v45 }
 0x172   :  { %2559 = vmatpush.bf16.msra.mxu0 %v8761_v27  ;;  %2595 = vmatpush.bf16.msra.mxu3 %v8788_v10 }
 0x173   :  { %2572 = vmatpush.bf16.msra.mxu1 %v8769_v41  ;;  %2583 = vmatpush.bf16.msra.mxu2 %v8779_v49 }
 0x176   :  { %2560 = vmatpush.bf16.msra.mxu0 %v8760_v30  ;;  %2596 = vmatpush.bf16.msra.mxu3 %v8787_v16  ;;  %v7007_v16 = vld [vmem:[%s10285_s10 + $0x14] sm:$0xf0] }
 0x177   :  { %2573 = vmatpush.bf16.msra.mxu1 %v8768_v44  ;;  %2584 = vmatpush.bf16.msra.mxu2 %v8778_v53 }
 0x17a   :  { %2597 = vmatpush.bf16.msra.mxu3 %v8786_v20 }
 0x17b   :  { %2585 = vmatpush.bf16.msra.mxu2 %v8777_v57 }
 0x17c   :  { %v2086_v22 = vpop.f32.mrf.mxu0 }
 0x17d   :  { %v2087_v51 = vadd.f32 %v2086_v22, %v1429_v46 }
 0x17e   :  { %2598 = vmatpush.bf16.msra.mxu3 %v8785_v24  ;;  %v7021_v24 = vld [vmem:[%s10285_s10 + $0x10] sm:$0xf] }
 0x17f   :  { %2586 = vmatpush.bf16.msra.mxu2 %v8776_v50 }
 0x182   :  { %2599 = vmatpush.bf16.msra.mxu3 %v8784_v29  ;;  %v7142_v29 = vld [vmem:[#allocation17 + $0xe0] sm:$0xf] }
 0x184   :  { %v2088_v26 = vpop.f32.mrf.mxu0 }
 0x186   :  { %v2099_v25 = vpop.f32.mrf.mxu1 }
 0x187   :  { %v2100_v55 = vadd.f32 %v2099_v25, %v2087_v51 }
 0x18e   :  { %v2101_v19 = vpop.f32.mrf.mxu1 }
 0x194   :  { %v2138_v33 = vpop.f32.mrf.mxu0 }
 0x195   :  { %v2139_v8 = vadd.f32 %v2138_v33, %v1430_v54  ;;  %v2632_v54 = vstv %s10316_s0 }
 0x196   :  { %v2151_v39 = vpop.f32.mrf.mxu1 }
 0x197   :  { %v2152_v9 = vadd.f32 %v2151_v39, %v2139_v8 }
 0x19c   :  { %v2140_v40 = vpop.f32.mrf.mxu0 }
 0x19d   :  { %v1432_v40 = vperm.slane %v9951_v43, 3 }
 0x19e   :  { %v2153_v48 = vpop.f32.mrf.mxu1 }
 0x1a2   :  { %v2112_v52 = vpop.f32.mrf.mxu2 }
 0x1a3   :  { %v2113_v56 = vadd.f32 %v2112_v52, %v2100_v55 }
 0x1a8   :  { %v2125_v28 = vpop.f32.mrf.mxu3 }
 0x1a9   :  { %v2126_v59 = vadd.f32 %v2125_v28, %v2113_v56 }
 0x1aa   :  { %v2114_v60 = vpop.f32.mrf.mxu2 }
 0x1ab   :  { %v2285_v61 = vmax.f32 %v2126_v59, 0.0  ;;  %v9189_v59 = vld [vmem:[#allocation15] ss:$0 sm:$0xff] }
 0x1ad   :  { %v2289_v0 = vpack.c.bf16 %v2285_v61, %v2285_v61 }
 0x1af   :  { %2561 = vmatmul.bf16.vlgmr.msra.gmra.mxu0 %v2289_v0 }
 0x1b0   :  { %v2127_v5 = vpop.f32.mrf.mxu3 }
 0x1b2   :  { %v2164_v6 = vpop.f32.mrf.mxu2 }
 0x1b3   :  { %v2165_v11 = vadd.f32 %v2164_v6, %v2152_v9 }
 0x1b4   :  { %v2190_v62 = vpop.f32.mrf.mxu0 }
 0x1b5   :  { %v2191_v22 = vadd.f32 %v2190_v62, %v1431_v47 }
 0x1b6   :  { %v2203_v58 = vpop.f32.mrf.mxu1 }
 0x1b7   :  { %v2204_v27 = vadd.f32 %v2203_v58, %v2191_v22  ;;  %v7015_v22 = vld [vmem:[%s10285_s10 + $0x1c] sm:$0xf0] }
 0x1b8   :  { %v2177_v12 = vpop.f32.mrf.mxu3 }
 0x1b9   :  { %v2178_v14 = vadd.f32 %v2177_v12, %v2165_v11  ;;  %v7005_v11 = vld [vmem:[%s10285_s10] sm:$0xf]  ;;  %v8794_v12 = vld [vmem:[%s10285_s10 + $0x10] sm:$0xf0] }
 0x1ba   :  { %v2166_v15 = vpop.f32.mrf.mxu2 }
 0x1bb   :  { %v2286_v18 = vmax.f32 %v2178_v14, 0.0  ;;  %v8792_v14 = vld [vmem:[%s10285_s10 + $0x4] sm:$0xf]  ;;  %v7006_v15 = vor.u32 %v8794_v12, %v7005_v11  ;;  %v8847_v12 = vld [vmem:[#allocation17 + $0x18c] sm:$0xf0] }
 0x1bc   :  { %v2192_v1 = vpop.f32.mrf.mxu0  ;;  %v7010_v47 = vor.u32 %v8792_v14, %v7007_v16  ;;  %v7222_v11 = vld [vmem:[#allocation17 + $0x180] sm:$0xf]  ;;  %v8811_v16 = vld [vmem:[#allocation17 + $0x6c] sm:$0xf0] }
 0x1bd   :  { %v2290_v17 = vpack.c.bf16 %v2286_v18, %v2286_v18  ;;  %v7013_v18 = vld [vmem:[%s10285_s10 + $0x8] sm:$0xf]  ;;  %2713 = vmatpush.bf16.msrb.mxu0 %v7006_v15  ;;  %v7078_v14 = vld [vmem:[#allocation17 + $0x60] sm:$0xf] }
 0x1be   :  { %v2205_v4 = vpop.f32.mrf.mxu1  ;;  %2726 = vmatpush.bf16.msrb.mxu1 %v7010_v47 }
 0x1bf   :  { %2574 = vmatmul.bf16.vlgmr.msra.gmra.mxu1 %v2290_v17  ;;  %v8795_v17 = vld [vmem:[%s10285_s10 + $0x18] sm:$0xf0] }
 0x1c0   :  { %v2179_v21 = vpop.f32.mrf.mxu3  ;;  %v7014_v20 = vor.u32 %v8795_v17, %v7013_v18  ;;  %v7350_v18 = vld [vmem:[#allocation17 + $0x280] sm:$0xf]  ;;  %v8879_v17 = vld [vmem:[#allocation17 + $0x28c] sm:$0xf0] }
 0x1c1   :  { %v8793_v21 = vld [vmem:[%s10285_s10 + $0xc] sm:$0xf] }
 0x1c2   :  { %v2216_v23 = vpop.f32.mrf.mxu2  ;;  %2739 = vmatpush.bf16.msrb.mxu2 %v7014_v20 }
 0x1c3   :  { %v2217_v30 = vadd.f32 %v2216_v23, %v2204_v27  ;;  %v7018_v23 = vor.u32 %v8793_v21, %v7015_v22  ;;  %v7510_v21 = vld [vmem:[#allocation17 + $0x3c0] sm:$0xf]  ;;  %v8919_v22 = vld [vmem:[#allocation17 + $0x3cc] sm:$0xf0] }
 0x1c5   :  { %2752 = vmatpush.bf16.msrb.mxu3 %v7018_v23  ;;  %v7223_v23 = vor.u32 %v8847_v12, %v7222_v11  ;;  %v8863_v11 = vld [vmem:[#allocation17 + $0x20c] sm:$0xf0]  ;;  %v7128_v12 = vld [vmem:[#allocation17 + $0xd0] sm:$0xf0] }
 0x1c8   :  { %v2229_v31 = vpop.f32.mrf.mxu3 }
 0x1c9   :  { %v2230_v19 = vadd.f32 %v2229_v31, %v2217_v30  ;;  %v8827_v30 = vld [vmem:[#allocation17 + $0xec] sm:$0xf0]  ;;  %v7270_v31 = vld [vmem:[#allocation17 + $0x1e0] sm:$0xf] }
 0x1ca   :  { %v2218_v33 = vpop.f32.mrf.mxu2 }
 0x1cb   :  { %v2287_v34 = vmax.f32 %v2230_v19, 0.0  ;;  %v7143_v33 = vor.u32 %v8827_v30, %v7142_v29  ;;  %v7062_v29 = vld [vmem:[#allocation17 + $0x40] sm:$0xf] }
 0x1cc   :  { %v7334_v30 = vld [vmem:[#allocation17 + $0x260] sm:$0xf] }
 0x1cd   :  { %v2291_v38 = vpack.c.bf16 %v2287_v34, %v2287_v34  ;;  %v8859_v34 = vld [vmem:[#allocation17 + $0x1ec] sm:$0xf0]  ;;  %3561 = vmatpush.bf16.msra.mxu1 %v7143_v33  ;;  %v7494_v33 = vld [vmem:[#allocation17 + $0x3a0] sm:$0xf] }
 0x1cf   :  { %2587 = vmatmul.bf16.vlgmr.msra.gmra.mxu2 %v2291_v38 }
 0x1d0   :  { %v2231_v39 = vpop.f32.mrf.mxu3 }
 0x1d1   :  { %v7271_v39 = vor.u32 %v8859_v34, %v7270_v31  ;;  %v8875_v31 = vld [vmem:[#allocation17 + $0x26c] sm:$0xf0] }
 0x1d2   :  { %v8915_v34 = vld [vmem:[#allocation17 + $0x3ac] sm:$0xf0] }
 0x1d3   :  { %3574 = vmatpush.bf16.msra.mxu2 %v7271_v39  ;;  %v8839_v39 = vld [vmem:[#allocation17 + $0x14c] sm:$0xf0] }
 0x1d4   :  { %v2242_v25 = vpop.f32.mrf.mxu0 }
 0x1d5   :  { %v2243_v41 = vadd.f32 %v2242_v25, %v1432_v40  ;;  %v8796_v25 = vld [vmem:[%s10285_s10 + $0x20] sm:$0xf0] }
 0x1d6   :  { %v2255_v26 = vpop.f32.mrf.mxu1  ;;  %v7254_v40 = vld [vmem:[#allocation17 + $0x1c0] sm:$0xf] }
 0x1d7   :  { %v2256_v44 = vadd.f32 %v2255_v26, %v2243_v41  ;;  %v7022_v26 = vor.u32 %v8796_v25, %v7021_v24  ;;  %v8855_v41 = vld [vmem:[#allocation17 + $0x1cc] sm:$0xf0]  ;;  %v7079_v24 = vor.u32 %v8811_v16, %v7078_v14  ;;  %v7206_v25 = vld [vmem:[#allocation17 + $0x160] sm:$0xf]  ;;  %v8889_v14 = vld [vmem:[#allocation17 + $0x2e4] sm:$0xf] }
 0x1d9   :  { %2765 = vmatpush.bf16.msra.mxu0 %v7022_v26  ;;  %v8843_v26 = vld [vmem:[#allocation17 + $0x16c] sm:$0xf0] }
 0x1dc   :  { %v2244_v35 = vpop.f32.mrf.mxu0 }
 0x1dd   :  { %v7126_v35 = vld [vmem:[#allocation17 + $0xc0] sm:$0xf] }
 0x1de   :  { %v2257_v37 = vpop.f32.mrf.mxu1 }
 0x1df   :  { %v8823_v37 = vld [vmem:[#allocation17 + $0xcc] sm:$0xf0] }
 0x1e4   :  { %v2268_v42 = vpop.f32.mrf.mxu2 }
 0x1e5   :  { %v2269_v45 = vadd.f32 %v2268_v42, %v2256_v44  ;;  %v7398_v42 = vld [vmem:[#allocation17 + $0x2e0] sm:$0xf]  ;;  %v7127_v44 = vor.u32 %v8823_v37, %v7126_v35  ;;  %v7207_v35 = vor.u32 %v8843_v26, %v7206_v25  ;;  %v7256_v25 = vld [vmem:[#allocation17 + $0x1d0] sm:$0xf0] }
 0x1e7   :  { %3562 = vmatpush.bf16.msra.mxu1 %v7127_v44  ;;  %v7318_v44 = vld [vmem:[#allocation17 + $0x240] sm:$0xf] }
 0x1e8   :  { %v2281_v46 = vpop.f32.mrf.mxu3 }
 0x1e9   :  { %v2282_v48 = vadd.f32 %v2281_v46, %v2269_v45  ;;  %v8891_v45 = vld [vmem:[#allocation17 + $0x2ec] sm:$0xf0] }
 0x1eb   :  { %v2288_v51 = vmax.f32 %v2282_v48, 0.0 }
 0x1ec   :  { %v2270_v49 = vpop.f32.mrf.mxu2 }
 0x1ed   :  { %v2292_v52 = vpack.c.bf16 %v2288_v51, %v2288_v51  ;;  %v7255_v49 = vor.u32 %v8855_v41, %v7254_v40  ;;  %v7399_v51 = vor.u32 %v8891_v45, %v7398_v42  ;;  %v7335_v40 = vor.u32 %v8875_v31, %v7334_v30  ;;  %v7046_v41 = vld [vmem:[#allocation17 + $0x20] sm:$0xf]  ;;  %v8803_v42 = vld [vmem:[#allocation17 + $0x2c] sm:$0xf0] }
 0x1ee   :  { %v8871_v45 = vld [vmem:[#allocation17 + $0x24c] sm:$0xf0] }
 0x1ef   :  { %2600 = vmatmul.bf16.vlgmr.msra.gmra.mxu3 %v2292_v52  ;;  %v7110_v52 = vld [vmem:[#allocation17 + $0xa0] sm:$0xf]  ;;  %3575 = vmatpush.bf16.msra.mxu2 %v7255_v49  ;;  %v8911_v49 = vld [vmem:[#allocation17 + $0x38c] sm:$0xf0] }
 0x1f0   :  { %v2283_v53 = vpop.f32.mrf.mxu3  ;;  %3587 = vmatpush.bf16.msra.mxu3 %v7399_v51 }
 0x1f1   :  { %v8819_v53 = vld [vmem:[#allocation17 + $0xac] sm:$0xf0] }
 0x22c   :  { %v2562_v55 = vpop.f32.mrf.mxu0 }
 0x22d   :  { %v2563_v60 = vadd.f32 %v9189_v59, %v2562_v55  ;;  %v7238_v55 = vld [vmem:[#allocation17 + $0x1a0] sm:$0xf]  ;;  %v7111_v59 = vor.u32 %v8819_v53, %v7110_v52  ;;  %v7047_v52 = vor.u32 %v8803_v42, %v7046_v41  ;;  %v7240_v42 = vld [vmem:[#allocation17 + $0x1b0] sm:$0xf0] }
 0x22e   :  { %v7174_v53 = vld [vmem:[#allocation17 + $0x120] sm:$0xf] }
 0x22f   :  { %3563 = vmatpush.bf16.msra.mxu1 %v7111_v59  ;;  %v8825_v59 = vld [vmem:[#allocation17 + $0xe4] sm:$0xf] }
 0x234   :  { %v2564_v56 = vpop.f32.mrf.mxu0 }
 0x235   :  { %v8851_v56 = vld [vmem:[#allocation17 + $0x1ac] sm:$0xf0] }
 0x23c   :  { %v2575_v62 = vpop.f32.mrf.mxu1 }
 0x23d   :  { %v2576_v43 = vadd.f32 %v2575_v62, %v2563_v60 }
 0x244   :  { %v2577_v57 = vpop.f32.mrf.mxu1 }
 0x252   :  { %v2588_v58 = vpop.f32.mrf.mxu2 }
 0x253   :  { %v2589_v61 = vadd.f32 %v2588_v58, %v2576_v43  ;;  %v7382_v58 = vld [vmem:[#allocation17 + $0x2c0] sm:$0xf] }
 0x25a   :  { %v2590_v28 = vpop.f32.mrf.mxu2 }
 0x25b   :  { %v8887_v28 = vld [vmem:[#allocation17 + $0x2cc] sm:$0xf0] }
 0x25c   :  { %v7383_v60 = vor.u32 %v8887_v28, %v7382_v58  ;;  %v7302_v58 = vld [vmem:[#allocation17 + $0x220] sm:$0xf]  ;;  %v8867_v28 = vld [vmem:[#allocation17 + $0x22c] sm:$0xf0] }
 0x25e   :  { %3588 = vmatpush.bf16.msra.mxu3 %v7383_v60  ;;  %v7144_v60 = vld [vmem:[#allocation17 + $0xf0] sm:$0xf0] }
 0x272   :  { %v2601_v50 = vpop.f32.mrf.mxu3 }
 0x273   :  { %v9999_v0 = vadd.f32 %v2601_v50, %v2589_v61  ;;  %v7239_v61 = vor.u32 %v8851_v56, %v7238_v55  ;;  %v7094_v50 = vld [vmem:[#allocation17 + $0x80] sm:$0xf]  ;;  %v8835_v55 = vld [vmem:[#allocation17 + $0x12c] sm:$0xf0]  ;;  %v7319_v56 = vor.u32 %v8871_v45, %v7318_v44  ;;  %v8885_v44 = vld [vmem:[#allocation17 + $0x2c4] sm:$0xf] }
 0x274   :  { %v7384_v45 = vld [vmem:[#allocation17 + $0x2d0] sm:$0xf0] }
 0x275   :  { %v2631_v1 = vadd.f32 %v2630_v63, %v9999_v0  ;;  %v8815_v63 = vld [vmem:[#allocation17 + $0x8c] sm:$0xf0]  ;;  %3576 = vmatpush.bf16.msra.mxu2 %v7239_v61  ;;  %v7462_v61 = vld [vmem:[#allocation17 + $0x360] sm:$0xf] }
 0x277   :  { %v2633_v2 = vmul.f32 %v2632_v54, %v2631_v1  ;;  %v7366_v54 = vld [vmem:[#allocation17 + $0x2a0] sm:$0xf] }
 0x279   :  { %v2634_v4 = vsel %vm2605_vm0, %v2633_v2, -inf  ;;  %3577 = vmatpush.bf16.msra.mxu2 %v7223_v23 }
 0x27a   :  { %v2603_v5 = vpop.f32.mrf.mxu3  ;;  %2635 = vmax.xlane.f32.xlu0 %v2634_v4 }
 0x27b   :  { %v7526_v5 = vld [vmem:[#allocation17 + $0x3e0] sm:$0xf] }
 0x27d   :  { %3578 = vmatpush.bf16.msra.mxu2 %v7207_v35 }
 0x2ed   :  { %v2636_v6 = vpop.xlane.xlu0 %2635 }
 0x2ee   :  { %v2637_v7 = vsub.f32 %v2633_v2, %v2636_v6  ;;  %v8883_v2 = vld [vmem:[#allocation17 + $0x2ac] sm:$0xf0] }
 0x2ef   :  { %v8923_v6 = vld [vmem:[#allocation17 + $0x3ec] sm:$0xf0] }
 0x2f0   :  { %v2638_v8 = vmul.f32 1.442695, %v2637_v7  ;;  %v7367_v7 = vor.u32 %v8883_v2, %v7366_v54  ;;  %v7527_v20 = vor.u32 %v8923_v6, %v7526_v5  ;;  %v7158_v54 = vld [vmem:[#allocation17 + $0x100] sm:$0xf]  ;;  %v8831_v2 = vld [vmem:[#allocation17 + $0x10c] sm:$0xf0]  ;;  %v7303_v6 = vor.u32 %v8867_v28, %v7302_v58 }
 0x2f1   :  { %v7272_v5 = vld [vmem:[#allocation17 + $0x1f0] sm:$0xf0]  ;;  %v8881_v28 = vld [vmem:[#allocation17 + $0x2a4] sm:$0xf] }
 0x2f2   :  { %9191 = vpow2.f32 %v2638_v8  ;;  %3589 = vmatpush.bf16.msra.mxu3 %v7367_v7  ;;  %v7147_v7 = vor.u32 %v8825_v59, %v7144_v60  ;;  %v7368_v59 = vld [vmem:[#allocation17 + $0x2b0] sm:$0xf0]  ;;  %v8913_v60 = vld [vmem:[#allocation17 + $0x3a4] sm:$0xf] }
 0x2f8   :  { %v10006_v9 = vpop.eup %9191 }
 0x2f9   :  { %v2640_v10 = vsel %vm2605_vm0, %v10006_v9, 0.0 }
 0x2fa   :  { %2641 = vadd.xlane.f32.xlu0 %v2640_v10  ;;  %v7095_v10 = vor.u32 %v8815_v63, %v7094_v50  ;;  %v8907_v50 = vld [vmem:[#allocation17 + $0x36c] sm:$0xf0]  ;;  %v7175_v63 = vor.u32 %v8835_v55, %v7174_v53  ;;  %v7096_v55 = vld [vmem:[#allocation17 + $0x90] sm:$0xf0] }
 0x2fb   :  { %v7463_v16 = vor.u32 %v8907_v50, %v7462_v61  ;;  %v7496_v61 = vld [vmem:[#allocation17 + $0x3b0] sm:$0xf0]  ;;  %v8809_v50 = vld [vmem:[#allocation17 + $0x64] sm:$0xf] }
 0x2fc   :  { %3564 = vmatpush.bf16.msra.mxu1 %v7095_v10  ;;  %v7286_v10 = vld [vmem:[#allocation17 + $0x200] sm:$0xf] }
 0x300   :  { %3565 = vmatpush.bf16.msra.mxu1 %v7079_v24  ;;  %v8853_v24 = vld [vmem:[#allocation17 + $0x1c4] sm:$0xf] }
 0x301   :  { %v7259_v30 = vor.u32 %v8853_v24, %v7256_v25  ;;  %v8905_v24 = vld [vmem:[#allocation17 + $0x364] sm:$0xf]  ;;  %v7464_v25 = vld [vmem:[#allocation17 + $0x370] sm:$0xf0] }
 0x36d   :  { %v2642_v27 = vpop.xlane.xlu0 %2641 }
 0x36e   :  { %9193 = vrcp.f32 %v2642_v27  ;;  %v2654_v48 = vand.u32 2147483648, %v2642_v27  ;;  %v2652_v57 = vand.u32 2147483647, %v2642_v27  ;;  %vm2648_vm2 = vweird.f32 %v2642_v27 }
 0x370   :  { %v2655_v1 = vor.u32 1.1754944e-38, %v2654_v48  ;;  %vm2653_vm4 = vcmp.eq.f32.partialorder %v2652_v57, 8.507059e+37  ;;  %v7478_v48 = vld [vmem:[#allocation17 + $0x380] sm:$0xf]  ;;  %v8799_v57 = vld [vmem:[#allocation17 + $0xc] sm:$0xf0] }
 0x374   :  { %v9194_v19 = vpop.eup %9193 }
 0x375   :  { %v2644_v38 = vmul.f32 %v9194_v19, %v2642_v27  ;;  %vm2649_vm1 = vweird.f32 %v9194_v19  ;;  %v7351_v27 = vor.u32 %v8879_v17, %v7350_v18  ;;  %v7159_v18 = vor.u32 %v8831_v2, %v7158_v54  ;;  %v7446_v17 = vld [vmem:[#allocation17 + $0x340] sm:$0xf]  ;;  %v7208_v2 = vld [vmem:[#allocation17 + $0x170] sm:$0xf0] }
 0x376   :  { %vm2650_vm3 = vmor %vm2648_vm2, %vm2649_vm1  ;;  %v7499_v54 = vor.u32 %v8913_v60, %v7496_v61 }
 0x377   :  { %v2645_v46 = vsub.f32 1.0, %v2644_v38  ;;  %3590 = vmatpush.bf16.msra.mxu3 %v7351_v27  ;;  %v7190_v38 = vld [vmem:[#allocation17 + $0x140] sm:$0xf] }
 0x378   :  { %v7191_v51 = vor.u32 %v8839_v39, %v7190_v38  ;;  %v8817_v38 = vld [vmem:[#allocation17 + $0xa4] sm:$0xf]  ;;  %v7112_v39 = vld [vmem:[#allocation17 + $0xb0] sm:$0xf0] }
 0x379   :  { %v2646_v62 = vmul.f32 %v9194_v19, %v2645_v46  ;;  %v7495_v46 = vor.u32 %v8915_v34, %v7494_v33  ;;  %v8921_v33 = vld [vmem:[#allocation17 + $0x3e4] sm:$0xf]  ;;  %v7528_v34 = vld [vmem:[#allocation17 + $0x3f0] sm:$0xf0]  ;;  %v7115_v41 = vor.u32 %v8817_v38, %v7112_v39 }
 0x37a   :  { %3579 = vmatpush.bf16.msra.mxu2 %v7191_v51  ;;  %v7512_v51 = vld [vmem:[#allocation17 + $0x3d0] sm:$0xf0]  ;;  %v8797_v39 = vld [vmem:[#allocation17 + $0x4] sm:$0xf] }
 0x37b   :  { %v2647_v43 = vadd.f32 %v9194_v19, %v2646_v62  ;;  %3591 = vmatpush.bf16.msra.mxu3 %v7335_v40  ;;  %v7030_v62 = vld [vmem:[#allocation17] sm:$0xf]  ;;  %v8849_v40 = vld [vmem:[#allocation17 + $0x1a4] sm:$0xf] }
 0x37d   :  { %v2651_v4 = vsel %vm2650_vm3, %v9194_v19, %v2647_v43  ;;  %v7511_v19 = vor.u32 %v8919_v22, %v7510_v21  ;;  %v7479_v43 = vor.u32 %v8911_v49, %v7478_v48  ;;  %v7287_v22 = vor.u32 %v8863_v11, %v7286_v10  ;;  %v8917_v49 = vld [vmem:[#allocation17 + $0x3c4] sm:$0xf] }
 0x37e   :  { %v2656_v8 = vsel %vm2653_vm4, %v2655_v1, %v2651_v4  ;;  %v7031_v1 = vor.u32 %v8799_v57, %v7030_v62  ;;  %v8857_v4 = vld [vmem:[#allocation17 + $0x1e4] sm:$0xf]  ;;  %3580 = vmatpush.bf16.msra.mxu2 %v7175_v63  ;;  %v7387_v48 = vor.u32 %v8885_v44, %v7384_v45  ;;  %v7515_v53 = vor.u32 %v8917_v49, %v7512_v51  ;;  %v7224_v62 = vld [vmem:[#allocation17 + $0x190] sm:$0xf0] }
 0x37f   :  { %v2657_v15 = vmul.f32 %v10006_v9, %v2656_v8  ;;  %v8807_v9 = vld [vmem:[#allocation17 + $0x4c] sm:$0xf0]  ;;  %3592 = vmatpush.bf16.msra.mxu3 %v7319_v56  ;;  %v8821_v8 = vld [vmem:[#allocation17 + $0xc4] sm:$0xf]  ;;  %v7275_v21 = vor.u32 %v8857_v4, %v7272_v5  ;;  %v7080_v63 = vld [vmem:[#allocation17 + $0x70] sm:$0xf0] }
 0x380   :  { %v7063_v37 = vor.u32 %v8807_v9, %v7062_v29  ;;  %v7131_v23 = vor.u32 %v8821_v8, %v7128_v12  ;;  %v7430_v29 = vld [vmem:[#allocation17 + $0x320] sm:$0xf]  ;;  %v8899_v9 = vld [vmem:[#allocation17 + $0x32c] sm:$0xf0]  ;;  %v8845_v56 = vld [vmem:[#allocation17 + $0x184] sm:$0xf]  ;;  %v7083_v5 = vor.u32 %v8809_v50, %v7080_v63 }
 0x381   :  { %5797 = vrot.lane.b32.xlu0 %v2657_v15, %s9640_s3  ;;  %v10043_v47 = vpack.c.bf16 %v2657_v15, %v2657_v15  ;;  %v7400_v15 = vld [vmem:[#allocation17 + $0x2f0] sm:$0xf0]  ;;  %v7431_v31 = vor.u32 %v8899_v9, %v7430_v29  ;;  %v7227_v58 = vor.u32 %v8845_v56, %v7224_v62  ;;  %v8877_v4 = vld [vmem:[#allocation17 + $0x284] sm:$0xf] }
 0x382   :  { %3566 = vmatpush.bf16.msra.mxu1 %v7063_v37  ;;  %v7403_v26 = vor.u32 %v8889_v14, %v7400_v15  ;;  %3581 = vmatpush.bf16.msra.mxu2 %v7159_v18  ;;  %v7531_v37 = vor.u32 %v8921_v33, %v7528_v34  ;;  %v7480_v8 = vld [vmem:[#allocation17 + $0x390] sm:$0xf0]  ;;  %v8805_v14 = vld [vmem:[#allocation17 + $0x44] sm:$0xf] }
 0x383   :  { %7023 = vmatmul.msk.bf16.vlgmr.msrb.gmra.mxu0 %vm2605_vm0, %v10043_v47  ;;  %7024 = vmatmul.msk.bf16.vlgmr.msrb.gmra.mxu1 %vm2605_vm0, %v10043_v47  ;;  %v7064_v15 = vld [vmem:[#allocation17 + $0x50] sm:$0xf0]  ;;  %v8833_v9 = vld [vmem:[#allocation17 + $0x124] sm:$0xf] }
 0x384   :  { %7025 = vmatmul.msk.bf16.vlgmr.msrb.gmra.mxu2 %vm2605_vm0, %v10043_v47  ;;  %7026 = vmatmul.msk.bf16.vlgmr.msrb.gmra.mxu3 %vm2605_vm0, %v10043_v47  ;;  %v7067_v18 = vor.u32 %v8805_v14, %v7064_v15  ;;  %v7048_v29 = vld [vmem:[#allocation17 + $0x30] sm:$0xf0]  ;;  %v8901_v34 = vld [vmem:[#allocation17 + $0x344] sm:$0xf] }
 0x385   :  { %3600 = vmatpush.bf16.msrb.mxu0 %v7527_v20  ;;  %v8903_v20 = vld [vmem:[#allocation17 + $0x34c] sm:$0xf0]  ;;  %3593 = vmatpush.bf16.msra.mxu3 %v7303_v6  ;;  %v7352_v6 = vld [vmem:[#allocation17 + $0x290] sm:$0xf0]  ;;  %v8897_v49 = vld [vmem:[#allocation17 + $0x324] sm:$0xf] }
 0x386   :  { %3567 = vmatpush.bf16.msra.mxu1 %v7047_v52  ;;  %v7447_v27 = vor.u32 %v8903_v20, %v7446_v17  ;;  %3626 = vmatpush.bf16.msrb.mxu2 %v7275_v21  ;;  %v8813_v52 = vld [vmem:[#allocation17 + $0x84] sm:$0xf]  ;;  %v7355_v11 = vor.u32 %v8877_v4, %v7352_v6  ;;  %v7192_v17 = vld [vmem:[#allocation17 + $0x150] sm:$0xf0]  ;;  %v7278_v6 = vld [vmem:[#allocation17 + $0x1e8] sm:$0xf] }
 0x387   :  { %v7099_v57 = vor.u32 %v8813_v52, %v7096_v55  ;;  %v8873_v21 = vld [vmem:[#allocation17 + $0x264] sm:$0xf]  ;;  %v7320_v33 = vld [vmem:[#allocation17 + $0x250] sm:$0xf0] }
 0x388   :  { %v7160_v44 = vld [vmem:[#allocation17 + $0x110] sm:$0xf0]  ;;  %v8861_v55 = vld [vmem:[#allocation17 + $0x204] sm:$0xf] }
 0x389   :  { %3601 = vmatpush.bf16.msrb.mxu0 %v7511_v19  ;;  %3594 = vmatpush.bf16.msra.mxu3 %v7287_v22  ;;  %v7414_v19 = vld [vmem:[#allocation17 + $0x300] sm:$0xf]  ;;  %v7336_v22 = vld [vmem:[#allocation17 + $0x270] sm:$0xf0] }
 0x38a   :  { %3568 = vmatpush.bf16.msra.mxu1 %v7031_v1  ;;  %3627 = vmatpush.bf16.msrb.mxu2 %v7259_v30  ;;  %v8841_v1 = vld [vmem:[#allocation17 + $0x164] sm:$0xf]  ;;  %v7432_v52 = vld [vmem:[#allocation17 + $0x330] sm:$0xf0] }
 0x38b   :  { %v7211_v10 = vor.u32 %v8841_v1, %v7208_v2  ;;  %v7288_v56 = vld [vmem:[#allocation17 + $0x210] sm:$0xf0]  ;;  %v7150_v1 = vld [vmem:[#allocation17 + $0xe8] sm:$0xf] }
 0x38c   :  { %v7291_v62 = vor.u32 %v8861_v55, %v7288_v56 }
 0x38d   :  { %3602 = vmatpush.bf16.msrb.mxu0 %v7495_v46  ;;  %3639 = vmatpush.bf16.msrb.mxu3 %v7403_v26  ;;  %v7243_v46 = vor.u32 %v8849_v40, %v7240_v42  ;;  %v7467_v26 = vor.u32 %v8905_v24, %v7464_v25  ;;  %v7032_v40 = vld [vmem:[#allocation17 + $0x10] sm:$0xf0]  ;;  %v8829_v42 = vld [vmem:[#allocation17 + $0x104] sm:$0xf] }
 0x38e   :  { %3613 = vmatpush.bf16.msrb.mxu1 %v7147_v7  ;;  %v8909_v7 = vld [vmem:[#allocation17 + $0x384] sm:$0xf]  ;;  %v7163_v45 = vor.u32 %v8829_v42, %v7160_v44 }
 0x38f   :  { %3628 = vmatpush.bf16.msrb.mxu2 %v7243_v46  ;;  %v7483_v12 = vor.u32 %v8909_v7, %v7480_v8  ;;  %v8865_v46 = vld [vmem:[#allocation17 + $0x224] sm:$0xf]  ;;  %v8860_v7 = vld [vmem:[#allocation17 + $0x1f4] sm:$0xf0] }
 0x390   :  { %v7279_v15 = vor.u32 %v8860_v7, %v7278_v6  ;;  %v8812_v6 = vld [vmem:[#allocation17 + $0x74] sm:$0xf0]  ;;  %v7214_v7 = vld [vmem:[#allocation17 + $0x168] sm:$0xf] }
 0x391   :  { %3603 = vmatpush.bf16.msrb.mxu0 %v7479_v43  ;;  %3640 = vmatpush.bf16.msrb.mxu3 %v7387_v48  ;;  %v7371_v43 = vor.u32 %v8881_v28, %v7368_v59  ;;  %v7304_v48 = vld [vmem:[#allocation17 + $0x230] sm:$0xf0]  ;;  %v10058_v59 = vld [vmem:[%s10286_s11] sm:$0x1f] }
 0x392   :  { %3614 = vmatpush.bf16.msrb.mxu1 %v7131_v23  ;;  %v7339_v23 = vor.u32 %v8873_v21, %v7336_v22  ;;  %v7307_v51 = vor.u32 %v8865_v46, %v7304_v48  ;;  %v2667_v60 = vperm.slane %v10058_v59, 0  ;;  %v2669_v8 = vperm.slane %v10058_v59, 2  ;;  %v8856_v22 = vld [vmem:[#allocation17 + $0x1d4] sm:$0xf0]  ;;  %v7390_v46 = vld [vmem:[#allocation17 + $0x2c8] sm:$0xf] }
 0x393   :  { %7027 = vmatmul.msk.bf16.vlgmr.msra.gmra.mxu0 %vm2605_vm0, %v10043_v47  ;;  %v8895_v47 = vld [vmem:[#allocation17 + $0x30c] sm:$0xf0]  ;;  %3629 = vmatpush.bf16.msrb.mxu2 %v7227_v58  ;;  %v7416_v58 = vld [vmem:[#allocation17 + $0x310] sm:$0xf0]  ;;  %v2671_v44 = vperm.slane %v10058_v59, 4 }
 0x394   :  { %v7415_v35 = vor.u32 %v8895_v47, %v7414_v19  ;;  %v8869_v47 = vld [vmem:[#allocation17 + $0x244] sm:$0xf]  ;;  %v8888_v48 = vld [vmem:[#allocation17 + $0x2d4] sm:$0xf0] }
 0x395   :  { %3604 = vmatpush.bf16.msrb.mxu0 %v7463_v16  ;;  %3641 = vmatpush.bf16.msrb.mxu3 %v7371_v43  ;;  %v8837_v16 = vld [vmem:[#allocation17 + $0x144] sm:$0xf]  ;;  %v2668_v43 = vperm.slane %v10058_v59, 1 }
 0x396   :  { %3615 = vmatpush.bf16.msrb.mxu1 %v7115_v41  ;;  %v7195_v20 = vor.u32 %v8837_v16, %v7192_v17  ;;  %v7035_v41 = vor.u32 %v8797_v39, %v7032_v40  ;;  %v7134_v16 = vld [vmem:[#allocation17 + $0xc8] sm:$0xf] }
 0x397   :  { %3630 = vmatpush.bf16.msrb.mxu2 %v7211_v10  ;;  %v2670_v10 = vperm.slane %v10058_v59, 3 }
 0x399   :  { %3605 = vmatpush.bf16.msrb.mxu0 %v7447_v27  ;;  %3642 = vmatpush.bf16.msrb.mxu3 %v7355_v11  ;;  %v8801_v27 = vld [vmem:[#allocation17 + $0x24] sm:$0xf] }
 0x39a   :  { %3616 = vmatpush.bf16.msrb.mxu1 %v7099_v57  ;;  %v7051_v30 = vor.u32 %v8801_v27, %v7048_v29  ;;  %v8893_v57 = vld [vmem:[#allocation17 + $0x304] sm:$0xf]  ;;  %v7406_v29 = vld [vmem:[#allocation17 + $0x2e8] sm:$0xf] }
 0x39b   :  { %3631 = vmatpush.bf16.msrb.mxu2 %v7195_v20  ;;  %v7419_v28 = vor.u32 %v8893_v57, %v7416_v58  ;;  %v7230_v57 = vld [vmem:[#allocation17 + $0x188] sm:$0xf]  ;;  %v8848_v58 = vld [vmem:[#allocation17 + $0x194] sm:$0xf0] }
 0x39d   :  { %3606 = vmatpush.bf16.msrb.mxu0 %v7431_v31  ;;  %3643 = vmatpush.bf16.msrb.mxu3 %v7339_v23  ;;  %v7176_v31 = vld [vmem:[#allocation17 + $0x130] sm:$0xf0] }
 0x39e   :  { %3617 = vmatpush.bf16.msrb.mxu1 %v7083_v5  ;;  %v7179_v19 = vor.u32 %v8833_v9, %v7176_v31  ;;  %v8828_v5 = vld [vmem:[#allocation17 + $0xf4] sm:$0xf0] }
 0x39f   :  { %v7151_v14 = vor.u32 %v8828_v5, %v7150_v1  ;;  %v8892_v9 = vld [vmem:[#allocation17 + $0x2f4] sm:$0xf0]  ;;  %v7502_v1 = vld [vmem:[#allocation17 + $0x3a8] sm:$0xf] }
 0x3a0   :  { %3632 = vmatpush.bf16.msrb.mxu2 %v7179_v19  ;;  %v7086_v5 = vld [vmem:[#allocation17 + $0x68] sm:$0xf] }
 0x3a1   :  { %3607 = vmatpush.bf16.msrb.mxu0 %v7415_v35  ;;  %v7323_v35 = vor.u32 %v8869_v47, %v7320_v33  ;;  %v8924_v33 = vld [vmem:[#allocation17 + $0x3f4] sm:$0xf0] }
 0x3a2   :  { %3618 = vmatpush.bf16.msrb.mxu1 %v7067_v18  ;;  %v8824_v18 = vld [vmem:[#allocation17 + $0xd4] sm:$0xf0] }
 0x3a3   :  { %3644 = vmatpush.bf16.msrb.mxu3 %v7323_v35  ;;  %v7135_v27 = vor.u32 %v8824_v18, %v7134_v16  ;;  %v8820_v35 = vld [vmem:[#allocation17 + $0xb4] sm:$0xf0]  ;;  %v7486_v16 = vld [vmem:[#allocation17 + $0x388] sm:$0xf] }
 0x3a4   :  { %3633 = vmatpush.bf16.msrb.mxu2 %v7163_v45  ;;  %v8912_v18 = vld [vmem:[#allocation17 + $0x394] sm:$0xf0] }
 0x3a5   :  { %3652 = vmatpush.bf16.msra.mxu0 %v7531_v37  ;;  %v7448_v37 = vld [vmem:[#allocation17 + $0x350] sm:$0xf0] }
 0x3a6   :  { %3619 = vmatpush.bf16.msrb.mxu1 %v7051_v30  ;;  %v7451_v38 = vor.u32 %v8901_v34, %v7448_v37  ;;  %v7534_v30 = vld [vmem:[#allocation17 + $0x3e8] sm:$0xf] }
 0x3a7   :  { %3645 = vmatpush.bf16.msrb.mxu3 %v7307_v51  ;;  %v7118_v34 = vld [vmem:[#allocation17 + $0xa8] sm:$0xf]  ;;  %v7535_v42 = vor.u32 %v8924_v33, %v7534_v30  ;;  %v8876_v30 = vld [vmem:[#allocation17 + $0x274] sm:$0xf0] }
 0x3a8   :  { %v7246_v37 = vld [vmem:[#allocation17 + $0x1a8] sm:$0xf]  ;;  %v7119_v45 = vor.u32 %v8820_v35, %v7118_v34  ;;  %v8804_v35 = vld [vmem:[#allocation17 + $0x34] sm:$0xf0] }
 0x3a9   :  { %3653 = vmatpush.bf16.msra.mxu0 %v7515_v53  ;;  %v7435_v53 = vor.u32 %v8897_v49, %v7432_v52  ;;  %v7518_v51 = vld [vmem:[#allocation17 + $0x3c8] sm:$0xf]  ;;  %v8920_v52 = vld [vmem:[#allocation17 + $0x3d4] sm:$0xf0] }
 0x3aa   :  { %3620 = vmatpush.bf16.msrb.mxu1 %v7035_v41  ;;  %v7407_v41 = vor.u32 %v8892_v9, %v7406_v29  ;;  %v7487_v29 = vor.u32 %v8912_v18, %v7486_v16  ;;  %v7342_v9 = vld [vmem:[#allocation17 + $0x268] sm:$0xf]  ;;  %v8864_v18 = vld [vmem:[#allocation17 + $0x214] sm:$0xf0] }
 0x3ab   :  { %3646 = vmatpush.bf16.msrb.mxu3 %v7291_v62  ;;  %v8816_v62 = vld [vmem:[#allocation17 + $0x94] sm:$0xf0]  ;;  %v7054_v34 = vld [vmem:[#allocation17 + $0x28] sm:$0xf] }
 0x3ac   :  { %v7294_v16 = vld [vmem:[#allocation17 + $0x208] sm:$0xf] }
 0x3ad   :  { %3654 = vmatpush.bf16.msra.mxu0 %v7499_v54 }
 0x3b1   :  { %3655 = vmatpush.bf16.msra.mxu0 %v7483_v12 }
 0x3b5   :  { %3656 = vmatpush.bf16.msra.mxu0 %v7467_v26 }
 0x3b9   :  { %3657 = vmatpush.bf16.msra.mxu0 %v7451_v38  ;;  %v8852_v38 = vld [vmem:[#allocation17 + $0x1b4] sm:$0xf0] }
 0x3ba   :  { %v7247_v49 = vor.u32 %v8852_v38, %v7246_v37  ;;  %v7182_v37 = vld [vmem:[#allocation17 + $0x128] sm:$0xf]  ;;  %v8836_v38 = vld [vmem:[#allocation17 + $0x134] sm:$0xf0] }
 0x3bd   :  { %3658 = vmatpush.bf16.msra.mxu0 %v7435_v53  ;;  %v7102_v53 = vld [vmem:[#allocation17 + $0x88] sm:$0xf] }
 0x3c1   :  { %3659 = vmatpush.bf16.msra.mxu0 %v7419_v28 }
 0x400   :  { %v2715_v61 = vpop.f32.mrf.mxu0  ;;  %v2728_v50 = vpop.f32.mrf.mxu1 }
 0x401   :  { %v2716_v63 = vadd.f32 %v2715_v61, %v2667_v60  ;;  %v2729_v54 = vadd.f32 %v2728_v50, %v2668_v43  ;;  %v7391_v60 = vor.u32 %v8888_v48, %v7390_v46  ;;  %v7519_v43 = vor.u32 %v8920_v52, %v7518_v51  ;;  %v7374_v61 = vld [vmem:[#allocation17 + $0x2a8] sm:$0xf] }
 0x402   :  { %v7103_v50 = vor.u32 %v8816_v62, %v7102_v53  ;;  %v7038_v46 = vld [vmem:[#allocation17 + $0x8] sm:$0xf]  ;;  %v7055_v51 = vor.u32 %v8804_v35, %v7054_v34  ;;  %v7183_v52 = vor.u32 %v8836_v38, %v7182_v37  ;;  %v8800_v53 = vld [vmem:[#allocation17 + $0x14] sm:$0xf0]  ;;  %v7248_v34 = vld [vmem:[#allocation17 + $0x1b8] sm:$0xf0] }
 0x403   :  { %v2771_v2 = vadd.f32 %v2716_v63, %v9884_v32  ;;  %v2772_v4 = vadd.f32 %v2729_v54, %v9886_v36  ;;  %v7262_v36 = vld [vmem:[#allocation17 + $0x1c8] sm:$0xf]  ;;  %v7231_v63 = vor.u32 %v8848_v58, %v7230_v57  ;;  %v8884_v54 = vld [vmem:[#allocation17 + $0x2b4] sm:$0xf0]  ;;  %v8826_v57 = vld [vmem:[#allocation17 + $0xec] sm:$0xf] }
 0x404   :  { %v7263_v47 = vor.u32 %v8856_v22, %v7262_v36  ;;  %v7070_v22 = vld [vmem:[#allocation17 + $0x48] sm:$0xf]  ;;  %v7152_v58 = vld [vmem:[#allocation17 + $0xf8] sm:$0xf0]  ;;  %v8886_v38 = vld [vmem:[#allocation17 + $0x2cc] sm:$0xf] }
 0x405   :  { %v2775_v11 = vmax.f32 %v2771_v2, 0.0  ;;  %v2776_v12 = vmax.f32 %v2772_v4, 0.0  ;;  %v8916_v2 = vld [vmem:[#allocation17 + $0x3b4] sm:$0xf0] }
 0x407   :  { %v10066_v17 = vpack.c.bf16 %v2775_v11, %v2775_v11  ;;  %v10068_v20 = vpack.c.bf16 %v2776_v12, %v2776_v12  ;;  %v2741_v32 = vpop.f32.mrf.mxu2  ;;  %v2754_v21 = vpop.f32.mrf.mxu3  ;;  %v7375_v11 = vor.u32 %v8884_v54, %v7374_v61  ;;  %v7503_v12 = vor.u32 %v8916_v2, %v7502_v1  ;;  %v7280_v61 = vld [vmem:[#allocation17 + $0x1f8] sm:$0xf0]  ;;  %v7438_v54 = vld [vmem:[#allocation17 + $0x328] sm:$0xf]  ;;  %v8900_v1 = vld [vmem:[#allocation17 + $0x334] sm:$0xf0] }
 0x408   :  { %v2742_v23 = vadd.f32 %v2741_v32, %v2669_v8  ;;  %v2755_v24 = vadd.f32 %v2754_v21, %v2670_v10  ;;  %v2717_v25 = vpop.f32.mrf.mxu0  ;;  %v2730_v26 = vpop.f32.mrf.mxu1  ;;  %v8844_v8 = vld [vmem:[#allocation17 + $0x174] sm:$0xf0]  ;;  %v7087_v21 = vor.u32 %v8812_v6, %v7086_v5  ;;  %v7155_v6 = vor.u32 %v8826_v57, %v7152_v58  ;;  %v8914_v57 = vld [vmem:[#allocation17 + $0x3ac] sm:$0xf]  ;;  %v7504_v58 = vld [vmem:[#allocation17 + $0x3b8] sm:$0xf0] }
 0x409   :  { %3569 = vmatmul.bf16.vlgmr.msra.gmra.mxu1 %v10066_v17  ;;  %3582 = vmatmul.bf16.vlgmr.msra.gmra.mxu2 %v10068_v20  ;;  %v7215_v36 = vor.u32 %v8844_v8, %v7214_v7  ;;  %v7198_v25 = vld [vmem:[#allocation17 + $0x148] sm:$0xf]  ;;  %v8840_v26 = vld [vmem:[#allocation17 + $0x154] sm:$0xf0]  ;;  %v8822_v8 = vld [vmem:[#allocation17 + $0xcc] sm:$0xf] }
 0x40a   :  { %v2773_v31 = vadd.f32 %v2742_v23, %v9891_v3  ;;  %v2774_v19 = vadd.f32 %v2755_v24, %v9894_v13  ;;  %3665 = vmatpush.bf16.msra.mxu1 %v7151_v14  ;;  %3678 = vmatpush.bf16.msra.mxu2 %v7279_v15  ;;  %v7358_v14 = vld [vmem:[#allocation17 + $0x288] sm:$0xf]  ;;  %v8880_v15 = vld [vmem:[#allocation17 + $0x294] sm:$0xf0]  ;;  %v7199_v33 = vor.u32 %v8840_v26, %v7198_v25 }
 0x40b   :  { %v8808_v24 = vld [vmem:[#allocation17 + $0x54] sm:$0xf0] }
 0x40c   :  { %v2777_v39 = vmax.f32 %v2773_v31, 0.0  ;;  %v2778_v40 = vmax.f32 %v2774_v19, 0.0  ;;  %v7470_v31 = vld [vmem:[#allocation17 + $0x368] sm:$0xf]  ;;  %v8908_v19 = vld [vmem:[#allocation17 + $0x374] sm:$0xf0] }
 0x40e   :  { %v10075_v3 = vpack.c.bf16 %v2777_v39, %v2777_v39  ;;  %v10077_v13 = vpack.c.bf16 %v2778_v40, %v2778_v40  ;;  %3666 = vmatpush.bf16.msra.mxu1 %v7135_v27  ;;  %3679 = vmatpush.bf16.msra.mxu2 %v7263_v47  ;;  %v7359_v27 = vor.u32 %v8880_v15, %v7358_v14  ;;  %v7264_v15 = vld [vmem:[#allocation17 + $0x1d8] sm:$0xf0] }
 0x40f   :  { %v2743_v55 = vpop.f32.mrf.mxu2  ;;  %v2756_v56 = vpop.f32.mrf.mxu3  ;;  %v7071_v47 = vor.u32 %v8808_v24, %v7070_v22  ;;  %v7343_v39 = vor.u32 %v8876_v30, %v7342_v9  ;;  %v7471_v40 = vor.u32 %v8908_v19, %v7470_v31  ;;  %v7439_v14 = vor.u32 %v8900_v1, %v7438_v54  ;;  %v7408_v22 = vld [vmem:[#allocation17 + $0x2f8] sm:$0xf0]  ;;  %v8850_v30 = vld [vmem:[#allocation17 + $0x1ac] sm:$0xf] }
 0x410   :  { %3595 = vmatmul.bf16.vlgmr.msra.gmra.mxu3 %v10075_v3  ;;  %3608 = vmatmul.bf16.vlgmr.msrb.gmra.mxu0 %v10077_v13  ;;  %v2767_v28 = vpop.f32.mrf.mxu0  ;;  %v7166_v55 = vld [vmem:[#allocation17 + $0x108] sm:$0xf]  ;;  %v8832_v56 = vld [vmem:[#allocation17 + $0x114] sm:$0xf0]  ;;  %v7536_v24 = vld [vmem:[#allocation17 + $0x3f8] sm:$0xf0]  ;;  %v7507_v54 = vor.u32 %v8914_v57, %v7504_v58 }
 0x411   :  { %3691 = vmatpush.bf16.msra.mxu3 %v7407_v41  ;;  %3704 = vmatpush.bf16.msrb.mxu0 %v7535_v42  ;;  %v10081_v59 = vadd.f32 %v2767_v28, %v2671_v44  ;;  %v7326_v41 = vld [vmem:[#allocation17 + $0x248] sm:$0xf]  ;;  %v8872_v42 = vld [vmem:[#allocation17 + $0x254] sm:$0xf0]  ;;  %v7167_v5 = vor.u32 %v8832_v56, %v7166_v55  ;;  %v7120_v9 = vld [vmem:[#allocation17 + $0xb8] sm:$0xf0] }
 0x412   :  { %3667 = vmatpush.bf16.msra.mxu1 %v7119_v45  ;;  %3680 = vmatpush.bf16.msra.mxu2 %v7247_v49  ;;  %v7454_v44 = vld [vmem:[#allocation17 + $0x348] sm:$0xf]  ;;  %v8904_v45 = vld [vmem:[#allocation17 + $0x354] sm:$0xf0]  ;;  %v4089_v49 = vlaneseq  ;;  %v7327_v28 = vor.u32 %v8872_v42, %v7326_v41  ;;  %v8918_v41 = vld [vmem:[#allocation17 + $0x3cc] sm:$0xf] }
 0x413   :  { %v4123_v4 = vand.u32 2147483647, %v10081_v59  ;;  %v4122_v31 = vmax.f32 %v10081_v59, 0.0  ;;  %v7520_v42 = vld [vmem:[#allocation17 + $0x3d8] sm:$0xf0]  ;;  %v8931_v58 = vld [vmem:[%s10289_s14 + $0x30] sm:$0xff] }
 0x414   :  { %v10088_v2 = vand.u32 127, %v4089_v49  ;;  %v7104_v49 = vld [vmem:[#allocation17 + $0x98] sm:$0xf0]  ;;  %v7523_v55 = vor.u32 %v8918_v41, %v7520_v42  ;;  %v8882_v56 = vld [vmem:[#allocation17 + $0x2ac] sm:$0xf] }
 0x415   :  { %v4124_v10 = vsub.f32 0.0, %v4123_v4  ;;  %3692 = vmatpush.bf16.msra.mxu3 %v7391_v60  ;;  %3705 = vmatpush.bf16.msrb.mxu0 %v7519_v43  ;;  %v7455_v60 = vor.u32 %v8904_v45, %v7454_v44  ;;  %v8858_v43 = vld [vmem:[#allocation17 + $0x1ec] sm:$0xf]  ;;  %v7039_v4 = vor.u32 %v8800_v53, %v7038_v46  ;;  %v7251_v45 = vor.u32 %v8850_v30, %v7248_v34  ;;  %v7424_v57 = vld [vmem:[#allocation17 + $0x318] sm:$0xf0] }
 0x416   :  { %3668 = vmatpush.bf16.msra.mxu1 %v7103_v50  ;;  %3681 = vmatpush.bf16.msra.mxu2 %v7231_v63  ;;  %v7310_v50 = vld [vmem:[#allocation17 + $0x228] sm:$0xf]  ;;  %v8868_v63 = vld [vmem:[#allocation17 + $0x234] sm:$0xf0]  ;;  %v7283_v7 = vor.u32 %v8858_v43, %v7280_v61  ;;  %vm4091_vm5 = vcmp.ge.s32.totalorder %v10088_v2, 64 }
 0x417   :  { %v4125_v32 = vmul.f32 1.442695, %v4124_v10  ;;  %v7136_v10 = vld [vmem:[#allocation17 + $0xd8] sm:$0xf0]  ;;  %v8814_v46 = vld [vmem:[#allocation17 + $0x8c] sm:$0xf] }
 0x418   :  { %v2769_v23 = vpop.f32.mrf.mxu0  ;;  %v7139_v26 = vor.u32 %v8822_v8, %v7136_v10  ;;  %v8810_v43 = vld [vmem:[#allocation17 + $0x6c] sm:$0xf]  ;;  %v7718_v2 = vld [vmem:[#allocation21 + $0x60] sm:$0xf] }
 0x419   :  { %9195 = vpow2.f32 %v4125_v32  ;;  %3693 = vmatpush.bf16.msra.mxu3 %v7375_v11  ;;  %3706 = vmatpush.bf16.msrb.mxu0 %v7503_v12  ;;  %v8854_v11 = vld [vmem:[#allocation17 + $0x1cc] sm:$0xf]  ;;  %v7311_v12 = vor.u32 %v8868_v63, %v7310_v50  ;;  %v7422_v32 = vld [vmem:[#allocation17 + $0x308] sm:$0xf]  ;;  %v7216_v50 = vld [vmem:[#allocation17 + $0x178] sm:$0xf0] }
 0x41a   :  { %3621 = vmatmul.bf16.vlgmr.msrb.gmra.mxu1 %v10066_v17  ;;  %3634 = vmatmul.bf16.vlgmr.msrb.gmra.mxu2 %v10068_v20  ;;  %v8922_v23 = vld [vmem:[#allocation17 + $0x3ec] sm:$0xf] }
 0x41b   :  { %3669 = vmatpush.bf16.msra.mxu1 %v7087_v21  ;;  %3682 = vmatpush.bf16.msra.mxu2 %v7215_v36  ;;  %v8896_v21 = vld [vmem:[#allocation17 + $0x314] sm:$0xf0]  ;;  %v8890_v36 = vld [vmem:[#allocation17 + $0x2ec] sm:$0xf]  ;;  %v7539_v37 = vor.u32 %v8922_v23, %v7536_v24 }
 0x41c   :  { %v7411_v35 = vor.u32 %v8890_v36, %v7408_v22  ;;  %v8842_v61 = vld [vmem:[#allocation17 + $0x16c] sm:$0xf]  ;;  %v7472_v36 = vld [vmem:[#allocation17 + $0x378] sm:$0xf0] }
 0x41d   :  { %3694 = vmatpush.bf16.msra.mxu3 %v7359_v27  ;;  %3707 = vmatpush.bf16.msrb.mxu0 %v7487_v29  ;;  %v7267_v27 = vor.u32 %v8854_v11, %v7264_v15  ;;  %v8818_v29 = vld [vmem:[#allocation17 + $0xac] sm:$0xf]  ;;  %v7219_v8 = vor.u32 %v8842_v61, %v7216_v50  ;;  %v7072_v11 = vld [vmem:[#allocation17 + $0x58] sm:$0xf0] }
 0x41e   :  { %v7123_v44 = vor.u32 %v8818_v29, %v7120_v9  ;;  %v8878_v1 = vld [vmem:[#allocation17 + $0x28c] sm:$0xf] }
 0x41f   :  { %v9196_v48 = vpop.eup %9195  ;;  %3670 = vmatpush.bf16.msra.mxu1 %v7071_v47  ;;  %3683 = vmatpush.bf16.msra.mxu2 %v7199_v33  ;;  %v7295_v47 = vor.u32 %v8864_v18, %v7294_v16  ;;  %v7423_v33 = vor.u32 %v8896_v21, %v7422_v32  ;;  %v8806_v10 = vld [vmem:[#allocation17 + $0x4c] sm:$0xf]  ;;  %v7344_v32 = vld [vmem:[#allocation17 + $0x278] sm:$0xf0] }
 0x420   :  { %v4127_v62 = vadd.f32 1.0, %v9196_v48  ;;  %3647 = vmatmul.bf16.vlgmr.msrb.gmra.mxu3 %v10075_v3  ;;  %3660 = vmatmul.bf16.vlgmr.msra.gmra.mxu0 %v10077_v13  ;;  %v8874_v18 = vld [vmem:[#allocation17 + $0x26c] sm:$0xf]  ;;  %v7075_v22 = vor.u32 %v8806_v10, %v7072_v11  ;;  %v8933_v11 = vld [vmem:[%s10289_s14 + $0x40] sm:$0xff] }
 0x421   :  { %3695 = vmatpush.bf16.msra.mxu3 %v7343_v39  ;;  %3708 = vmatpush.bf16.msrb.mxu0 %v7471_v40  ;;  %v7392_v40 = vld [vmem:[#allocation17 + $0x2d8] sm:$0xf0]  ;;  %v8906_v21 = vld [vmem:[#allocation17 + $0x36c] sm:$0xf]  ;;  %v7347_v29 = vor.u32 %v8874_v18, %v7344_v32 }
 0x422   :  { %9197 = vlog2.f32 %v4127_v62  ;;  %v7395_v53 = vor.u32 %v8886_v38, %v7392_v40  ;;  %v7376_v62 = vld [vmem:[#allocation17 + $0x2b8] sm:$0xf0]  ;;  %v8802_v24 = vld [vmem:[#allocation17 + $0x2c] sm:$0xf]  ;;  %v7475_v9 = vor.u32 %v8906_v21, %v7472_v36 }
 0x423   :  { %3671 = vmatpush.bf16.msra.mxu1 %v7055_v51  ;;  %3684 = vmatpush.bf16.msra.mxu2 %v7183_v52  ;;  %v8846_v51 = vld [vmem:[#allocation17 + $0x18c] sm:$0xf]  ;;  %v7232_v52 = vld [vmem:[#allocation17 + $0x198] sm:$0xf0]  ;;  %v7379_v63 = vor.u32 %v8882_v56, %v7376_v62 }
 0x424   :  { %v8870_v30 = vld [vmem:[#allocation17 + $0x24c] sm:$0xf]  ;;  %v7296_v56 = vld [vmem:[#allocation17 + $0x218] sm:$0xf0] }
 0x425   :  { %3696 = vmatpush.bf16.msra.mxu3 %v7327_v28  ;;  %3709 = vmatpush.bf16.msrb.mxu0 %v7455_v60  ;;  %v7107_v28 = vor.u32 %v8814_v46, %v7104_v49  ;;  %v7235_v60 = vor.u32 %v8846_v51, %v7232_v52  ;;  %v8830_v38 = vld [vmem:[#allocation17 + $0x10c] sm:$0xf]  ;;  %v7440_v46 = vld [vmem:[#allocation17 + $0x338] sm:$0xf0] }
 0x426   :  { %v8866_v42 = vld [vmem:[#allocation17 + $0x22c] sm:$0xf]  ;;  %v8932_v51 = vld [vmem:[%s10289_s14 + $0x38] sm:$0xff] }
 0x427   :  { %3672 = vmatpush.bf16.msra.mxu1 %v7039_v4  ;;  %3685 = vmatpush.bf16.msra.mxu2 %v7167_v5  ;;  %v7360_v4 = vld [vmem:[#allocation17 + $0x298] sm:$0xf0]  ;;  %v8910_v5 = vld [vmem:[#allocation17 + $0x38c] sm:$0xf] }
 0x428   :  { %v9198_v25 = vpop.eup %9197  ;;  %v7363_v15 = vor.u32 %v8878_v1, %v7360_v4  ;;  %v8894_v62 = vld [vmem:[#allocation17 + $0x30c] sm:$0xf]  ;;  %v8936_v1 = vld [vmem:[%s10289_s14 + $0x58] sm:$0xff] }
 0x429   :  { %v4129_v19 = vmul.f32 0.6931472, %v9198_v25  ;;  %3697 = vmatpush.bf16.msra.mxu3 %v7311_v12  ;;  %3710 = vmatpush.bf16.msrb.mxu0 %v7439_v14  ;;  %v8838_v12 = vld [vmem:[#allocation17 + $0x14c] sm:$0xf]  ;;  %v7200_v14 = vld [vmem:[#allocation17 + $0x158] sm:$0xf0] }
 0x42a   :  { %3673 = vmatmul.bf16.vlgmr.msra.gmra.mxu1 %v10066_v17  ;;  %3686 = vmatmul.bf16.vlgmr.msra.gmra.mxu2 %v10068_v20  ;;  %v7203_v23 = vor.u32 %v8838_v12, %v7200_v14  ;;  %v7056_v25 = vld [vmem:[#allocation17 + $0x38] sm:$0xf0]  ;;  %v8926_v61 = vld [vmem:[%s10289_s14 + $0x8] sm:$0xff]  ;;  %v10163_v14 = vld [vmem:[#allocation18] sm:$0xf] }
 0x42b   :  { %3717 = vmatpush.bf16.msrb.mxu1 %v7155_v6  ;;  %3730 = vmatpush.bf16.msrb.mxu2 %v7283_v7  ;;  %v4130_v39 = vadd.f32 %v4129_v19, %v4122_v31  ;;  %v7488_v6 = vld [vmem:[#allocation17 + $0x398] sm:$0xf0]  ;;  %v8902_v19 = vld [vmem:[#allocation17 + $0x34c] sm:$0xf] }
 0x42c   :  { %v7491_v16 = vor.u32 %v8910_v5, %v7488_v6  ;;  %v7328_v31 = vld [vmem:[#allocation17 + $0x258] sm:$0xf0]  ;;  %v8938_v50 = vld [vmem:[%s10289_s14 + $0x68] sm:$0xff]  ;;  %v8935_v5 = vld [vmem:[%s10289_s14 + $0x50] sm:$0xff] }
 0x42d   :  { %v4131_v48 = vsel %vm4091_vm5, %v4130_v39, %v10081_v59  ;;  %3698 = vmatpush.bf16.msra.mxu3 %v7295_v47  ;;  %3711 = vmatpush.bf16.msrb.mxu0 %v7423_v33  ;;  %v7088_v59 = vld [vmem:[#allocation17 + $0x78] sm:$0xf0]  ;;  %v7059_v33 = vor.u32 %v8802_v24, %v7056_v25  ;;  %v7331_v40 = vor.u32 %v8870_v30, %v7328_v31  ;;  %v8947_v6 = vld [vmem:[%s10289_s14 + $0xb0] sm:$0xff] }
 0x42e   :  { %5807 = vst [vmem:[#allocation27 + $0x10] sm:$0xff] %v4131_v48  ;;  %v7091_v7 = vor.u32 %v8810_v43, %v7088_v59  ;;  %v7456_v47 = vld [vmem:[#allocation17 + $0x358] sm:$0xf0]  ;;  %v8930_v43 = vld [vmem:[%s10289_s14 + $0x28] sm:$0xff]  ;;  %v8943_v36 = vld [vmem:[%s10289_s14 + $0x90] sm:$0xff] }
 0x42f   :  { %3718 = vmatpush.bf16.msrb.mxu1 %v7139_v26  ;;  %3731 = vmatpush.bf16.msrb.mxu2 %v7267_v27  ;;  %v8834_v26 = vld [vmem:[#allocation17 + $0x12c] sm:$0xf]  ;;  %v7184_v27 = vld [vmem:[#allocation17 + $0x138] sm:$0xf0]  ;;  %v7459_v41 = vor.u32 %v8902_v19, %v7456_v47 }
 0x430   :  { %3699 = vmatmul.bf16.vlgmr.msra.gmra.mxu3 %v10075_v3  ;;  %3712 = vmatmul.bf16.vlgmr.msrb.gmra.mxu0 %v10077_v13  ;;  %v7187_v34 = vor.u32 %v8834_v26, %v7184_v27  ;;  %v7168_v39 = vld [vmem:[#allocation17 + $0x118] sm:$0xf0]  ;;  %v8942_v27 = vld [vmem:[%s10289_s14 + $0x88] sm:$0xff] }
 0x431   :  { %3743 = vmatpush.bf16.msrb.mxu3 %v7411_v35  ;;  %3756 = vmatpush.bf16.msra.mxu0 %v7539_v37  ;;  %v8798_v35 = vld [vmem:[#allocation17 + $0xc] sm:$0xf]  ;;  %v7040_v37 = vld [vmem:[#allocation17 + $0x18] sm:$0xf0]  ;;  %v7171_v49 = vor.u32 %v8830_v38, %v7168_v39 }
 0x432   :  { %v7043_v48 = vor.u32 %v8798_v35, %v7040_v37  ;;  %v8929_v59 = vld [vmem:[%s10289_s14 + $0x20] sm:$0xff]  ;;  %v8948_v4 = vld [vmem:[%s10289_s14 + $0xb8] sm:$0xff]  ;;  %v2914_v35 = vperm.slane %v10163_v14, 1  ;;  %v8955_v37 = vld [vmem:[%s10289_s14 + $0xf0] sm:$0xff] }
 0x433   :  { %3719 = vmatpush.bf16.msrb.mxu1 %v7123_v44  ;;  %3732 = vmatpush.bf16.msrb.mxu2 %v7251_v45  ;;  %v7312_v44 = vld [vmem:[#allocation17 + $0x238] sm:$0xf0]  ;;  %v8898_v45 = vld [vmem:[#allocation17 + $0x32c] sm:$0xf] }
 0x434   :  { %v7315_v52 = vor.u32 %v8866_v42, %v7312_v44  ;;  %v8945_v12 = vld [vmem:[%s10289_s14 + $0xa0] sm:$0xff]  ;;  %v8944_v18 = vld [vmem:[%s10289_s14 + $0x98] sm:$0xff] }
 0x435   :  { %3744 = vmatpush.bf16.msrb.mxu3 %v7395_v53  ;;  %3757 = vmatpush.bf16.msra.mxu0 %v7523_v55  ;;  %v7443_v53 = vor.u32 %v8898_v45, %v7440_v46  ;;  %v8862_v55 = vld [vmem:[#allocation17 + $0x20c] sm:$0xf]  ;;  %v8941_v19 = vld [vmem:[%s10289_s14 + $0x80] sm:$0xff]  ;;  %v8956_v47 = vld [vmem:[%s10289_s14 + $0xf8] sm:$0xff] }
 0x437   :  { %3720 = vmatpush.bf16.msrb.mxu1 %v7107_v28  ;;  %3733 = vmatpush.bf16.msrb.mxu2 %v7235_v60  ;;  %v7299_v28 = vor.u32 %v8862_v55, %v7296_v56  ;;  %v7427_v60 = vor.u32 %v8894_v62, %v7424_v57  ;;  %v8952_v56 = vld [vmem:[%s10289_s14 + $0xd8] sm:$0xff] }
 0x439   :  { %3745 = vmatpush.bf16.msrb.mxu3 %v7379_v63  ;;  %3758 = vmatpush.bf16.msra.mxu0 %v7507_v54  ;;  %v8925_v63 = vld [vmem:[%s10289_s14] sm:$0xff] }
 0x43a   :  { %v8937_v54 = vld [vmem:[%s10289_s14 + $0x60] sm:$0xff] }
 0x43b   :  { %3721 = vmatpush.bf16.msrb.mxu1 %v7091_v7  ;;  %3734 = vmatpush.bf16.msrb.mxu2 %v7219_v8  ;;  %v8934_v7 = vld [vmem:[%s10289_s14 + $0x48] sm:$0xff] }
 0x43c   :  { %v8946_v8 = vld [vmem:[%s10289_s14 + $0xa8] sm:$0xff] }
 0x43d   :  { %3746 = vmatpush.bf16.msrb.mxu3 %v7363_v15  ;;  %3759 = vmatpush.bf16.msra.mxu0 %v7491_v16  ;;  %v2913_v15 = vperm.slane %v10163_v14, 0 }
 0x43f   :  { %3722 = vmatpush.bf16.msrb.mxu1 %v7075_v22  ;;  %3735 = vmatpush.bf16.msrb.mxu2 %v7203_v23 }
 0x441   :  { %3747 = vmatpush.bf16.msrb.mxu3 %v7347_v29  ;;  %3760 = vmatpush.bf16.msra.mxu0 %v7475_v9 }
 0x443   :  { %3723 = vmatpush.bf16.msrb.mxu1 %v7059_v33  ;;  %3736 = vmatpush.bf16.msrb.mxu2 %v7187_v34 }
 0x445   :  { %3748 = vmatpush.bf16.msrb.mxu3 %v7331_v40  ;;  %3761 = vmatpush.bf16.msra.mxu0 %v7459_v41  ;;  %v8954_v40 = vld [vmem:[%s10289_s14 + $0xe8] sm:$0xff] }
 0x447   :  { %3724 = vmatpush.bf16.msrb.mxu1 %v7043_v48  ;;  %3737 = vmatpush.bf16.msrb.mxu2 %v7171_v49  ;;  %v8953_v48 = vld [vmem:[%s10289_s14 + $0xe0] sm:$0xff] }
 0x449   :  { %3749 = vmatpush.bf16.msrb.mxu3 %v7315_v52  ;;  %3762 = vmatpush.bf16.msra.mxu0 %v7443_v53 }
 0x44a   :  { %3725 = vmatmul.bf16.vlgmr.msrb.gmra.mxu1 %v10066_v17  ;;  %3738 = vmatmul.bf16.vlgmr.msrb.gmra.mxu2 %v10068_v20  ;;  %v8928_v17 = vld [vmem:[%s10289_s14 + $0x18] sm:$0xff] }
 0x44b   :  { %4037 = vmatpush.bf16.msra.mxu1 %v8932_v51  ;;  %v8940_v20 = vld [vmem:[%s10289_s14 + $0x78] sm:$0xff] }
 0x44c   :  { %4050 = vmatpush.bf16.msra.mxu2 %v8940_v20 }
 0x44d   :  { %3750 = vmatpush.bf16.msrb.mxu3 %v7299_v28  ;;  %3763 = vmatpush.bf16.msra.mxu0 %v7427_v60  ;;  %v2915_v28 = vperm.slane %v10163_v14, 2 }
 0x44f   :  { %4038 = vmatpush.bf16.msra.mxu1 %v8931_v58  ;;  %v8951_v58 = vld [vmem:[%s10289_s14 + $0xd0] sm:$0xff] }
 0x450   :  { %3751 = vmatmul.bf16.vlgmr.msrb.gmra.mxu3 %v10075_v3  ;;  %3764 = vmatmul.bf16.vlgmr.msra.gmra.mxu0 %v10077_v13  ;;  %v8927_v3 = vld [vmem:[%s10289_s14 + $0x10] sm:$0xff] }
 0x451   :  { %v8939_v13 = vld [vmem:[%s10289_s14 + $0x70] sm:$0xff]  ;;  %4063 = vmatpush.bf16.msra.mxu3 %v8948_v4  ;;  %4076 = vmatpush.bf16.msrb.mxu0 %v8956_v47 }
 0x452   :  { %4051 = vmatpush.bf16.msra.mxu2 %v8939_v13 }
 0x453   :  { %4039 = vmatpush.bf16.msra.mxu1 %v8930_v43 }
 0x455   :  { %4064 = vmatpush.bf16.msra.mxu3 %v8947_v6  ;;  %4077 = vmatpush.bf16.msrb.mxu0 %v8955_v37 }
 0x456   :  { %4052 = vmatpush.bf16.msra.mxu2 %v8938_v50 }
 0x457   :  { %4040 = vmatpush.bf16.msra.mxu1 %v8929_v59 }
 0x459   :  { %4065 = vmatpush.bf16.msra.mxu3 %v8946_v8  ;;  %4078 = vmatpush.bf16.msrb.mxu0 %v8954_v40  ;;  %v2916_v8 = vperm.slane %v10163_v14, 3 }
 0x45a   :  { %4053 = vmatpush.bf16.msra.mxu2 %v8937_v54 }
 0x45b   :  { %4041 = vmatpush.bf16.msra.mxu1 %v8928_v17  ;;  %v8950_v17 = vld [vmem:[%s10289_s14 + $0xc8] sm:$0xff] }
 0x45d   :  { %4066 = vmatpush.bf16.msra.mxu3 %v8945_v12  ;;  %4079 = vmatpush.bf16.msrb.mxu0 %v8953_v48 }
 0x45e   :  { %4054 = vmatpush.bf16.msra.mxu2 %v8936_v1 }
 0x45f   :  { %4042 = vmatpush.bf16.msra.mxu1 %v8927_v3 }
 0x461   :  { %4067 = vmatpush.bf16.msra.mxu3 %v8944_v18  ;;  %4080 = vmatpush.bf16.msrb.mxu0 %v8952_v56 }
 0x462   :  { %4055 = vmatpush.bf16.msra.mxu2 %v8935_v5 }
 0x463   :  { %4043 = vmatpush.bf16.msra.mxu1 %v8926_v61  ;;  %v8949_v61 = vld [vmem:[%s10289_s14 + $0xc0] sm:$0xff]  ;;  %s9658_s14 = smov 64  }
 0x465   :  { %4068 = vmatpush.bf16.msra.mxu3 %v8943_v36  ;;  %4081 = vmatpush.bf16.msrb.mxu0 %v8951_v58 }
 0x466   :  { %4056 = vmatpush.bf16.msra.mxu2 %v8934_v7 }
 0x467   :  { %4044 = vmatpush.bf16.msra.mxu1 %v8925_v63 }
 0x469   :  { %4069 = vmatpush.bf16.msra.mxu3 %v8942_v27  ;;  %4082 = vmatpush.bf16.msrb.mxu0 %v8950_v17  ;;  %v8969_v17 = vld [vmem:[#allocation21 + $0x64] sm:$0xf] }
 0x46a   :  { %4057 = vmatpush.bf16.msra.mxu2 %v8933_v11 }
 0x46d   :  { %4070 = vmatpush.bf16.msra.mxu3 %v8941_v19  ;;  %4083 = vmatpush.bf16.msrb.mxu0 %v8949_v61  ;;  %v8972_v61 = vld [vmem:[#allocation21 + $0x74] sm:$0xf0] }
 0x486   :  { %v3570_v10 = vpop.f32.mrf.mxu1 }
 0x487   :  { %v3571_v22 = vadd.f32 %v3570_v10, %v2913_v15 }
 0x48c   :  { %v3583_v16 = vpop.f32.mrf.mxu2 }
 0x48d   :  { %v3609_v32 = vpop.f32.mrf.mxu0  ;;  %v3584_v23 = vadd.f32 %v3583_v16, %v3571_v22 }
 0x48e   :  { %v3572_v21 = vpop.f32.mrf.mxu1 }
 0x493   :  { %v3596_v24 = vpop.f32.mrf.mxu3 }
 0x494   :  { %v3597_v25 = vadd.f32 %v3596_v24, %v3584_v23  ;;  %v3585_v26 = vpop.f32.mrf.mxu2 }
 0x495   :  { %v3611_v29 = vpop.f32.mrf.mxu0 }
 0x496   :  { %v3610_v9 = vadd.f32 %v3609_v32, %v3597_v25 }
 0x497   :  { %v3622_v30 = vpop.f32.mrf.mxu1 }
 0x498   :  { %v3769_v31 = vmax.f32 %v3610_v9, 0.0  ;;  %v3623_v42 = vadd.f32 %v3622_v30, %v2914_v35 }
 0x49a   :  { %v3773_v33 = vpack.c.bf16 %v3769_v31, %v3769_v31  ;;  %v9190_v31 = vld [vmem:[#allocation20] ss:$0 sm:$0xff] }
 0x49b   :  { %v3598_v34 = vpop.f32.mrf.mxu3 }
 0x49c   :  { %4045 = vmatmul.bf16.vlgmr.msra.gmra.mxu1 %v3773_v33 }
 0x49d   :  { %v3635_v38 = vpop.f32.mrf.mxu2  ;;  %v3661_v39 = vpop.f32.mrf.mxu0 }
 0x49e   :  { %v3636_v44 = vadd.f32 %v3635_v38, %v3623_v42 }
 0x49f   :  { %v3624_v41 = vpop.f32.mrf.mxu1 }
 0x4a3   :  { %v3648_v45 = vpop.f32.mrf.mxu3 }
 0x4a4   :  { %v3649_v46 = vadd.f32 %v3648_v45, %v3636_v44 }
 0x4a5   :  { %v3637_v49 = vpop.f32.mrf.mxu2  ;;  %v3663_v51 = vpop.f32.mrf.mxu0 }
 0x4a6   :  { %v3662_v52 = vadd.f32 %v3661_v39, %v3649_v46 }
 0x4a7   :  { %v3674_v53 = vpop.f32.mrf.mxu1 }
 0x4a8   :  { %v3770_v55 = vmax.f32 %v3662_v52, 0.0  ;;  %v3675_v20 = vadd.f32 %v3674_v53, %v2915_v28 }
 0x4aa   :  { %v3774_v62 = vpack.c.bf16 %v3770_v55, %v3770_v55 }
 0x4ab   :  { %v3650_v57 = vpop.f32.mrf.mxu3 }
 0x4ac   :  { %4058 = vmatmul.bf16.vlgmr.msra.gmra.mxu2 %v3774_v62 }
 0x4ad   :  { %v3687_v60 = vpop.f32.mrf.mxu2  ;;  %v3713_v43 = vpop.f32.mrf.mxu0 }
 0x4ae   :  { %v3688_v3 = vadd.f32 %v3687_v60, %v3675_v20 }
 0x4af   :  { %v3676_v59 = vpop.f32.mrf.mxu1 }
 0x4b0   :  { %v8971_v59 = vld [vmem:[#allocation21 + $0x6c] sm:$0xf0] }
 0x4b1   :  { %v7719_v20 = vor.u32 %v8971_v59, %v7718_v2  ;;  %v8218_v59 = vld [vmem:[#allocation24 + $0x3c0] sm:$0xf] }
 0x4b3   :  { %v3700_v13 = vpop.f32.mrf.mxu3  ;;  %4247 = vmatpush.bf16.msrb.mxu1 %v7719_v20  ;;  %v7978_v20 = vld [vmem:[#allocation24 + $0x1e0] sm:$0xf] }
 0x4b4   :  { %v3701_v50 = vadd.f32 %v3700_v13, %v3688_v3  ;;  %v7720_v3 = vld [vmem:[#allocation21 + $0x70] sm:$0xf0]  ;;  %v7726_v13 = vld [vmem:[#allocation21 + $0x68] sm:$0xf] }
 0x4b5   :  { %v3689_v63 = vpop.f32.mrf.mxu2  ;;  %v3715_v54 = vpop.f32.mrf.mxu0 }
 0x4b6   :  { %v3714_v1 = vadd.f32 %v3713_v43, %v3701_v50  ;;  %v7723_v50 = vor.u32 %v8969_v17, %v7720_v3  ;;  %v7727_v63 = vor.u32 %v8972_v61, %v7726_v13  ;;  %v8970_v54 = vld [vmem:[#allocation21 + $0x6c] sm:$0xf]  ;;  %v9095_v17 = vld [vmem:[#allocation24 + $0x3cc] sm:$0xf0]  ;;  %v8106_v13 = vld [vmem:[#allocation24 + $0x2e0] sm:$0xf] }
 0x4b7   :  { %v9035_v3 = vld [vmem:[#allocation24 + $0x1ec] sm:$0xf0] }
 0x4b8   :  { %v3771_v4 = vmax.f32 %v3714_v1, 0.0  ;;  %v7728_v1 = vld [vmem:[#allocation21 + $0x78] sm:$0xf0]  ;;  %4260 = vmatpush.bf16.msrb.mxu2 %v7723_v50  ;;  %4273 = vmatpush.bf16.msrb.mxu3 %v7727_v63  ;;  %v9067_v61 = vld [vmem:[#allocation24 + $0x2ec] sm:$0xf0]  ;;  %v8219_v50 = vor.u32 %v9095_v17, %v8218_v59  ;;  %v7979_v63 = vor.u32 %v9035_v3, %v7978_v20 }
 0x4b9   :  { %v7754_v17 = vld [vmem:[#allocation24 + $0x20] sm:$0xf]  ;;  %v8979_v20 = vld [vmem:[#allocation24 + $0x2c] sm:$0xf0] }
 0x4ba   :  { %v3775_v5 = vpack.c.bf16 %v3771_v4, %v3771_v4  ;;  %v7702_v4 = vld [vmem:[#allocation21 + $0x40] sm:$0xf]  ;;  %v9075_v3 = vld [vmem:[#allocation24 + $0x32c] sm:$0xf0] }
 0x4bb   :  { %v3702_v6 = vpop.f32.mrf.mxu3 }
 0x4bc   :  { %4071 = vmatmul.bf16.vlgmr.msra.gmra.mxu3 %v3775_v5  ;;  %v7731_v5 = vor.u32 %v8970_v54, %v7728_v1  ;;  %v8967_v6 = vld [vmem:[#allocation21 + $0x4c] sm:$0xf0]  ;;  %v8107_v54 = vor.u32 %v9067_v61, %v8106_v13  ;;  %v7818_v1 = vld [vmem:[#allocation24 + $0xa0] sm:$0xf] }
 0x4be   :  { %4286 = vmatpush.bf16.msra.mxu0 %v7731_v5  ;;  %v8202_v5 = vld [vmem:[#allocation24 + $0x3a0] sm:$0xf] }
 0x4c7   :  { %v3726_v7 = vpop.f32.mrf.mxu1 }
 0x4c8   :  { %v3727_v15 = vadd.f32 %v3726_v7, %v2916_v8  ;;  %v8965_v7 = vld [vmem:[#allocation21 + $0x44] sm:$0xf]  ;;  %v7704_v8 = vld [vmem:[#allocation21 + $0x50] sm:$0xf0] }
 0x4cd   :  { %v3739_v10 = vpop.f32.mrf.mxu2  ;;  %v3765_v11 = vpop.f32.mrf.mxu0 }
 0x4ce   :  { %v3740_v16 = vadd.f32 %v3739_v10, %v3727_v15  ;;  %v7703_v10 = vor.u32 %v8967_v6, %v7702_v4  ;;  %v8968_v15 = vld [vmem:[#allocation21 + $0x54] sm:$0xf0]  ;;  %v8995_v4 = vld [vmem:[#allocation24 + $0xac] sm:$0xf0] }
 0x4cf   :  { %v3728_v12 = vpop.f32.mrf.mxu1  ;;  %v9091_v6 = vld [vmem:[#allocation24 + $0x3ac] sm:$0xf0] }
 0x4d0   :  { %v7710_v12 = vld [vmem:[#allocation21 + $0x48] sm:$0xf]  ;;  %4248 = vmatpush.bf16.msrb.mxu1 %v7703_v10 }
 0x4d3   :  { %v3752_v18 = vpop.f32.mrf.mxu3 }
 0x4d4   :  { %v3753_v32 = vadd.f32 %v3752_v18, %v3740_v16  ;;  %v8966_v16 = vld [vmem:[#allocation21 + $0x4c] sm:$0xf]  ;;  %v7711_v18 = vor.u32 %v8968_v15, %v7710_v12  ;;  %v9063_v12 = vld [vmem:[#allocation24 + $0x2cc] sm:$0xf0]  ;;  %v7819_v15 = vor.u32 %v8995_v4, %v7818_v1  ;;  %v7755_v1 = vor.u32 %v8979_v20, %v7754_v17  ;;  %v8989_v17 = vld [vmem:[#allocation24 + $0x84] sm:$0xf] }
 0x4d5   :  { %v3741_v21 = vpop.f32.mrf.mxu2  ;;  %v3767_v36 = vpop.f32.mrf.mxu0  ;;  %v9011_v4 = vld [vmem:[#allocation24 + $0x12c] sm:$0xf0]  ;;  %v7804_v20 = vld [vmem:[#allocation24 + $0x90] sm:$0xf0] }
 0x4d6   :  { %v3766_v22 = vadd.f32 %v3765_v11, %v3753_v32  ;;  %v7707_v11 = vor.u32 %v8965_v7, %v7704_v8  ;;  %v7712_v32 = vld [vmem:[#allocation21 + $0x58] sm:$0xf0]  ;;  %v7686_v21 = vld [vmem:[#allocation21 + $0x20] sm:$0xf]  ;;  %v8963_v36 = vld [vmem:[#allocation21 + $0x2c] sm:$0xf0]  ;;  %4274 = vmatpush.bf16.msrb.mxu3 %v7711_v18 }
 0x4d7   :  { %v7962_v7 = vld [vmem:[#allocation24 + $0x1c0] sm:$0xf]  ;;  %v9031_v8 = vld [vmem:[#allocation24 + $0x1cc] sm:$0xf0] }
 0x4d8   :  { %v3772_v23 = vmax.f32 %v3766_v22, 0.0  ;;  %v7715_v22 = vor.u32 %v8966_v16, %v7712_v32  ;;  %4261 = vmatpush.bf16.msrb.mxu2 %v7707_v11  ;;  %v7963_v10 = vor.u32 %v9031_v8, %v7962_v7  ;;  %v8090_v11 = vld [vmem:[#allocation24 + $0x2c0] sm:$0xf]  ;;  %v8991_v32 = vld [vmem:[#allocation24 + $0x8c] sm:$0xf0] }
 0x4d9   :  { %v8091_v16 = vor.u32 %v9063_v12, %v8090_v11  ;;  %v7802_v18 = vld [vmem:[#allocation24 + $0x80] sm:$0xf]  ;;  %v8975_v8 = vld [vmem:[#allocation24 + $0xc] sm:$0xf0]  ;;  %v9001_v12 = vld [vmem:[#allocation24 + $0xe4] sm:$0xf] }
 0x4da   :  { %v3776_v24 = vpack.c.bf16 %v3772_v23, %v3772_v23  ;;  %v8961_v23 = vld [vmem:[#allocation21 + $0x24] sm:$0xf]  ;;  %4287 = vmatpush.bf16.msra.mxu0 %v7715_v22  ;;  %v9027_v22 = vld [vmem:[#allocation24 + $0x1ac] sm:$0xf0] }
 0x4db   :  { %v3754_v25 = vpop.f32.mrf.mxu3  ;;  %v9071_v11 = vld [vmem:[#allocation24 + $0x30c] sm:$0xf0] }
 0x4dc   :  { %4084 = vmatmul.bf16.vlgmr.msrb.gmra.mxu0 %v3776_v24  ;;  %v7688_v24 = vld [vmem:[#allocation21 + $0x30] sm:$0xf0]  ;;  %v7694_v25 = vld [vmem:[#allocation21 + $0x28] sm:$0xf] }
 0x519   :  { %v4046_v26 = vpop.f32.mrf.mxu1 }
 0x51a   :  { %v4047_v19 = vadd.f32 %v9190_v31, %v4046_v26  ;;  %v7687_v26 = vor.u32 %v8963_v36, %v7686_v21  ;;  %v8203_v21 = vor.u32 %v9091_v6, %v8202_v5  ;;  %v7946_v36 = vld [vmem:[#allocation24 + $0x1a0] sm:$0xf]  ;;  %v9043_v6 = vld [vmem:[#allocation24 + $0x22c] sm:$0xf0] }
 0x51b   :  { %v8010_v5 = vld [vmem:[#allocation24 + $0x220] sm:$0xf] }
 0x51c   :  { %4249 = vmatpush.bf16.msrb.mxu1 %v7687_v26  ;;  %v9059_v26 = vld [vmem:[#allocation24 + $0x2ac] sm:$0xf0] }
 0x521   :  { %v4048_v27 = vpop.f32.mrf.mxu1 }
 0x522   :  { %v8964_v27 = vld [vmem:[#allocation21 + $0x34] sm:$0xf0] }
 0x52f   :  { %v4059_v29 = vpop.f32.mrf.mxu2 }
 0x530   :  { %v4060_v47 = vadd.f32 %v4059_v29, %v4047_v19  ;;  %v8962_v29 = vld [vmem:[#allocation21 + $0x2c] sm:$0xf]  ;;  %v2606_v19 = vsel %vm2605_vm0, %v9999_v0, -inf }
 0x537   :  { %v4061_v9 = vpop.f32.mrf.mxu2 }
 0x538   :  { %v7696_v9 = vld [vmem:[#allocation21 + $0x38] sm:$0xf0] }
 0x539   :  { %v7699_v31 = vor.u32 %v8962_v29, %v7696_v9  ;;  %v7930_v9 = vld [vmem:[#allocation24 + $0x180] sm:$0xf] }
 0x53b   :  { %4288 = vmatpush.bf16.msra.mxu0 %v7699_v31  ;;  %v8058_v31 = vld [vmem:[#allocation24 + $0x280] sm:$0xf] }
 0x53f   :  { %v4072_v30 = vpop.f32.mrf.mxu3 }
 0x540   :  { %v4073_v33 = vadd.f32 %v4072_v30, %v4060_v47  ;;  %v7691_v30 = vor.u32 %v8961_v23, %v7688_v24  ;;  %v7670_v47 = vld [vmem:[#allocation21] sm:$0xf]  ;;  %v8074_v23 = vld [vmem:[#allocation24 + $0x2a0] sm:$0xf] }
 0x541   :  { %v8186_v24 = vld [vmem:[#allocation24 + $0x380] sm:$0xf]  ;;  %v8075_v29 = vor.u32 %v9059_v26, %v8074_v23  ;;  %v9033_v26 = vld [vmem:[#allocation24 + $0x1e4] sm:$0xf] }
 0x542   :  { %4262 = vmatpush.bf16.msrb.mxu2 %v7691_v30  ;;  %v7803_v30 = vor.u32 %v8991_v32, %v7802_v18  ;;  %v8236_v18 = vld [vmem:[#allocation24 + $0x3f0] sm:$0xf0] }
 0x547   :  { %v4074_v14 = vpop.f32.mrf.mxu3 }
 0x548   :  { %v7695_v14 = vor.u32 %v8964_v27, %v7694_v25  ;;  %v9087_v25 = vld [vmem:[#allocation24 + $0x38c] sm:$0xf0]  ;;  %v7947_v27 = vor.u32 %v9027_v22, %v7946_v36  ;;  %v7866_v36 = vld [vmem:[#allocation24 + $0x100] sm:$0xf] }
 0x549   :  { %v9007_v22 = vld [vmem:[#allocation24 + $0x10c] sm:$0xf0] }
 0x54a   :  { %4275 = vmatpush.bf16.msrb.mxu3 %v7695_v14  ;;  %v9023_v14 = vld [vmem:[#allocation24 + $0x18c] sm:$0xf0] }
 0x559   :  { %v4085_v34 = vpop.f32.mrf.mxu0 }
 0x55a   :  { %v4086_v35 = vadd.f32 %v4085_v34, %v4073_v33  ;;  %v8959_v33 = vld [vmem:[#allocation21 + $0xc] sm:$0xf0]  ;;  %v8957_v34 = vld [vmem:[#allocation21 + $0x4] sm:$0xf] }
 0x55c   :  { %v4093_v37 = vand.u32 2147483647, %v4086_v35  ;;  %v4092_v45 = vmax.f32 %v4086_v35, 0.0 }
 0x55e   :  { %v4094_v38 = vsub.f32 0.0, %v4093_v37  ;;  %v7672_v37 = vld [vmem:[#allocation21 + $0x10] sm:$0xf0] }
 0x560   :  { %v4095_v39 = vmul.f32 1.442695, %v4094_v38  ;;  %v7678_v38 = vld [vmem:[#allocation21 + $0x8] sm:$0xf] }
 0x561   :  { %v4087_v40 = vpop.f32.mrf.mxu0 }
 0x562   :  { %9199 = vpow2.f32 %v4095_v39  ;;  %v8960_v39 = vld [vmem:[#allocation21 + $0x14] sm:$0xf0]  ;;  %v7675_v40 = vor.u32 %v8957_v34, %v7672_v37  ;;  %v8987_v34 = vld [vmem:[#allocation24 + $0x6c] sm:$0xf0] }
 0x563   :  { %v9083_v37 = vld [vmem:[#allocation24 + $0x36c] sm:$0xf0] }
 0x564   :  { %4263 = vmatpush.bf16.msrb.mxu2 %v7675_v40  ;;  %v7914_v40 = vld [vmem:[#allocation24 + $0x160] sm:$0xf] }
 0x568   :  { %v9200_v41 = vpop.eup %9199  ;;  %5094 = vmatpush.bf16.msra.mxu2 %v7979_v63  ;;  %v7738_v63 = vld [vmem:[#allocation24] sm:$0xf] }
 0x569   :  { %v4097_v42 = vadd.f32 1.0, %v9200_v41  ;;  %v7679_v41 = vor.u32 %v8960_v39, %v7678_v38  ;;  %v7931_v38 = vor.u32 %v9023_v14, %v7930_v9  ;;  %v7739_v23 = vor.u32 %v8975_v8, %v7738_v63  ;;  %v9065_v9 = vld [vmem:[#allocation24 + $0x2e4] sm:$0xf]  ;;  %v7932_v63 = vld [vmem:[#allocation24 + $0x190] sm:$0xf0] }
 0x56a   :  { %v9081_v8 = vld [vmem:[#allocation24 + $0x364] sm:$0xf] }
 0x56b   :  { %9201 = vlog2.f32 %v4097_v42  ;;  %v8958_v42 = vld [vmem:[#allocation21 + $0xc] sm:$0xf]  ;;  %4276 = vmatpush.bf16.msrb.mxu3 %v7679_v41 }
 0x56c   :  { %5095 = vmatpush.bf16.msra.mxu2 %v7963_v10  ;;  %v8122_v10 = vld [vmem:[#allocation24 + $0x300] sm:$0xf] }
 0x56f   :  { %5107 = vmatpush.bf16.msra.mxu3 %v8107_v54  ;;  %v7882_v54 = vld [vmem:[#allocation24 + $0x120] sm:$0xf] }
 0x570   :  { %5096 = vmatpush.bf16.msra.mxu2 %v7947_v27  ;;  %v7883_v32 = vor.u32 %v9011_v4, %v7882_v54  ;;  %v8123_v27 = vor.u32 %v9071_v11, %v8122_v10  ;;  %v9053_v54 = vld [vmem:[#allocation24 + $0x284] sm:$0xf]  ;;  %v7807_v4 = vor.u32 %v8989_v17, %v7804_v20  ;;  %v8172_v10 = vld [vmem:[#allocation24 + $0x370] sm:$0xf0]  ;;  %v4149_v17 = vld [vmem:[#allocation23] sm:$0xf] }
 0x571   :  { %v9202_v44 = vpop.eup %9201  ;;  %v4151_v20 = vperm.slane %v4149_v17, 0 }
 0x572   :  { %v4099_v46 = vmul.f32 0.6931472, %v9202_v44  ;;  %v7680_v44 = vld [vmem:[#allocation21 + $0x18] sm:$0xf0] }
 0x573   :  { %5108 = vmatpush.bf16.msra.mxu3 %v8091_v16  ;;  %v9097_v16 = vld [vmem:[#allocation24 + $0x3e4] sm:$0xf] }
 0x574   :  { %v4100_v48 = vadd.f32 %v4099_v46, %v4092_v45  ;;  %v7683_v45 = vor.u32 %v8958_v42, %v7680_v44  ;;  %v4102_v46 = vld [vmem:[#allocation8] sm:$0xff]  ;;  %v9019_v42 = vld [vmem:[#allocation24 + $0x16c] sm:$0xf0]  ;;  %v8042_v44 = vld [vmem:[#allocation24 + $0x260] sm:$0xf]  ;;  %5097 = vmatpush.bf16.msra.mxu2 %v7931_v38 }
 0x576   :  { %v10207_v49 = vsel %vm4091_vm5, %v4100_v48, %v4086_v35  ;;  %v7671_v35 = vor.u32 %v8959_v33, %v7670_v47  ;;  %4289 = vmatpush.bf16.msra.mxu0 %v7683_v45  ;;  %v8187_v47 = vor.u32 %v9087_v25, %v8186_v24  ;;  %v7786_v33 = vld [vmem:[#allocation24 + $0x60] sm:$0xf]  ;;  %v9051_v45 = vld [vmem:[#allocation24 + $0x26c] sm:$0xf0] }
 0x577   :  { %v4103_v51 = vadd.f32 1e-10, %v10207_v49  ;;  %5805 = vst [vmem:[#allocation27] sm:$0xff] %v10207_v49  ;;  %5109 = vmatpush.bf16.msra.mxu3 %v8075_v29  ;;  %v7787_v41 = vor.u32 %v8987_v34, %v7786_v33  ;;  %v7994_v24 = vld [vmem:[#allocation24 + $0x200] sm:$0xf] }
 0x578   :  { %4250 = vmatpush.bf16.msrb.mxu1 %v7671_v35  ;;  %v8170_v35 = vld [vmem:[#allocation24 + $0x360] sm:$0xf]  ;;  %v9039_v25 = vld [vmem:[#allocation24 + $0x20c] sm:$0xf0]  ;;  %v7980_v29 = vld [vmem:[#allocation24 + $0x1f0] sm:$0xf0] }
 0x579   :  { %9203 = vrsqrt.f32 %v4103_v51  ;;  %vm4111_vm6 = vcmp.eq.f32.partialorder %v4103_v51, inf  ;;  %v4114_v28 = vand.u32 2147483648, %v4103_v51  ;;  %vm4113_vm7 = vcmp.eq.f32.partialorder %v4103_v51, 0.0  ;;  %v7836_v33 = vld [vmem:[#allocation24 + $0xd0] sm:$0xf0] }
 0x57a   :  { %v9093_v34 = vld [vmem:[#allocation24 + $0x3c4] sm:$0xf]  ;;  %v7995_v38 = vor.u32 %v9039_v25, %v7994_v24  ;;  %v7916_v25 = vld [vmem:[#allocation24 + $0x170] sm:$0xf0] }
 0x57b   :  { %v9017_v24 = vld [vmem:[#allocation24 + $0x164] sm:$0xf] }
 0x57f   :  { %v9204_v52 = vpop.eup %9203 }
 0x580   :  { %v4105_v53 = vmul.f32 %v9204_v52, %v4103_v51 }
 0x582   :  { %v4106_v55 = vmul.f32 %v9204_v52, %v4105_v53 }
 0x584   :  { %v4107_v56 = vmul.f32 0.5, %v4106_v55 }
 0x586   :  { %v4108_v62 = vsub.f32 1.5, %v4107_v56  ;;  %v7850_v56 = vld [vmem:[#allocation24 + $0xe0] sm:$0xf] }
 0x588   :  { %v4109_v57 = vmul.f32 %v9204_v52, %v4108_v62  ;;  %v9003_v62 = vld [vmem:[#allocation24 + $0xec] sm:$0xf0] }
 0x58a   :  { %v4110_v58 = vmul.f32 %v4109_v57, %v4103_v51  ;;  %v8234_v57 = vld [vmem:[#allocation24 + $0x3e0] sm:$0xf] }
 0x58c   :  { %v4112_v60 = vsel %vm4111_vm6, %v4103_v51, %v4110_v58  ;;  %v7851_v58 = vor.u32 %v9003_v62, %v7850_v56  ;;  %v8043_v56 = vor.u32 %v9051_v45, %v8042_v44  ;;  %v7898_v62 = vld [vmem:[#allocation24 + $0x140] sm:$0xf]  ;;  %v7964_v44 = vld [vmem:[#allocation24 + $0x1d0] sm:$0xf0]  ;;  %v9061_v45 = vld [vmem:[#allocation24 + $0x2c4] sm:$0xf] }
 0x58d   :  { %v4115_v43 = vsel %vm4113_vm7, %v4114_v28, %v4112_v60  ;;  %v9099_v28 = vld [vmem:[#allocation24 + $0x3ec] sm:$0xf0]  ;;  %v7834_v60 = vld [vmem:[#allocation24 + $0xc0] sm:$0xf] }
 0x58e   :  { %4117 = vrot.lane.b32.xlu1 %v4115_v43, %s9658_s14  ;;  %v8999_v43 = vld [vmem:[#allocation24 + $0xcc] sm:$0xf0]  ;;  %v8235_v2 = vor.u32 %v9099_v28, %v8234_v57  ;;  %5081 = vmatpush.bf16.msra.mxu1 %v7851_v58 }
 0x58f   :  { %v9015_v28 = vld [vmem:[#allocation24 + $0x14c] sm:$0xf0] }
 0x590   :  { %5120 = vmatpush.bf16.msrb.mxu0 %v8235_v2  ;;  %v7899_v61 = vor.u32 %v9015_v28, %v7898_v62  ;;  %v7948_v28 = vld [vmem:[#allocation24 + $0x1b0] sm:$0xf0] }
 0x594   :  { %5121 = vmatpush.bf16.msrb.mxu0 %v8219_v50 }
 0x598   :  { %5122 = vmatpush.bf16.msrb.mxu0 %v8203_v21  ;;  %v8011_v21 = vor.u32 %v9043_v6, %v8010_v5  ;;  %v8985_v6 = vld [vmem:[#allocation24 + $0x64] sm:$0xf] }
 0x59c   :  { %5123 = vmatpush.bf16.msrb.mxu0 %v8187_v47 }
 0x5b8   :  { %2607 = vmax.xlane.f32.xlu1 %v2606_v19  ;;  %v9055_v19 = vld [vmem:[#allocation24 + $0x28c] sm:$0xf0] }
 0x5b9   :  { %v8059_v39 = vor.u32 %v9055_v19, %v8058_v31  ;;  %v8239_v31 = vor.u32 %v9097_v16, %v8236_v18  ;;  %v8997_v19 = vld [vmem:[#allocation24 + $0xc4] sm:$0xf]  ;;  %v8175_v16 = vor.u32 %v9081_v8, %v8172_v10  ;;  %v4153_v8 = vperm.slane %v4149_v17, 2 }
 0x5ba   :  { %v8981_v18 = vld [vmem:[#allocation24 + $0x44] sm:$0xf] }
 0x5bb   :  { %5110 = vmatpush.bf16.msra.mxu3 %v8059_v39 }
 0x5bf   :  { %5111 = vmatpush.bf16.msra.mxu3 %v8043_v56  ;;  %v8204_v56 = vld [vmem:[#allocation24 + $0x3b0] sm:$0xf0] }
 0x600   :  { %v4118_v48 = vpop.permute.xlu1 %4117 }
 0x601   :  { %v4120_v51 = vmul.f32 %v4118_v48, %v4102_v46  ;;  %v8171_v46 = vor.u32 %v9083_v37, %v8170_v35  ;;  %v7770_v48 = vld [vmem:[#allocation24 + $0x40] sm:$0xf]  ;;  %v8220_v35 = vld [vmem:[#allocation24 + $0x3d0] sm:$0xf0]  ;;  %v7867_v37 = vor.u32 %v9007_v22, %v7866_v36 }
 0x602   :  { %v8156_v36 = vld [vmem:[#allocation24 + $0x350] sm:$0xf0] }
 0x603   :  { %v4121_v52 = vadd.f32 %v4120_v51, %v10207_v49  ;;  %v7835_v49 = vor.u32 %v8999_v43, %v7834_v60  ;;  %v8983_v51 = vld [vmem:[#allocation24 + $0x4c] sm:$0xf0]  ;;  %v8026_v60 = vld [vmem:[#allocation24 + $0x240] sm:$0xf]  ;;  %5124 = vmatpush.bf16.msrb.mxu0 %v8171_v46  ;;  %v8092_v46 = vld [vmem:[#allocation24 + $0x2d0] sm:$0xf0] }
 0x604   :  { %v7771_v58 = vor.u32 %v8983_v51, %v7770_v48  ;;  %v9047_v43 = vld [vmem:[#allocation24 + $0x24c] sm:$0xf0]  ;;  %v7839_v48 = vor.u32 %v8997_v19, %v7836_v33  ;;  %v8223_v51 = vor.u32 %v9093_v34, %v8220_v35  ;;  %v9073_v19 = vld [vmem:[#allocation24 + $0x324] sm:$0xf]  ;;  %v8140_v33 = vld [vmem:[#allocation24 + $0x330] sm:$0xf0] }
 0x605   :  { %v4132_v53 = vpack.c.bf16 %v4121_v52, %v4121_v52  ;;  %v5791_v55 = vsel %vm4239_vm8, %v4121_v52, 0.0  ;;  %5082 = vmatpush.bf16.msra.mxu1 %v7835_v49  ;;  %v8154_v52 = vld [vmem:[#allocation24 + $0x340] sm:$0xf]  ;;  %v8027_v50 = vor.u32 %v9047_v43, %v8026_v60  ;;  %v9057_v60 = vld [vmem:[#allocation24 + $0x2a4] sm:$0xf]  ;;  %v8143_v34 = vor.u32 %v9073_v19, %v8140_v33 }
 0x606   :  { %5806 = vst [vmem:[#allocation27 + $0x8] sm:$0xff] %v5791_v55  ;;  %v7915_v55 = vor.u32 %v9019_v42, %v7914_v40  ;;  %v8138_v49 = vld [vmem:[#allocation24 + $0x320] sm:$0xf]  ;;  %v7983_v40 = vor.u32 %v9033_v26, %v7980_v29  ;;  %v9029_v42 = vld [vmem:[#allocation24 + $0x1c4] sm:$0xf] }
 0x607   :  { %7732 = vmatmul.msk.bf16.vlgmr.msrb.gmra.mxu1 %vm4239_vm8, %v4132_v53  ;;  %7733 = vmatmul.msk.bf16.vlgmr.msrb.gmra.mxu2 %vm4239_vm8, %v4132_v53  ;;  %v8139_v7 = vor.u32 %v9075_v3, %v8138_v49  ;;  %v7967_v62 = vor.u32 %v9029_v42, %v7964_v44  ;;  %v8076_v43 = vld [vmem:[#allocation24 + $0x2b0] sm:$0xf0]  ;;  %v9085_v49 = vld [vmem:[#allocation24 + $0x384] sm:$0xf]  ;;  %v7826_v33 = vld [vmem:[#allocation24 + $0xa8] sm:$0xf] }
 0x608   :  { %7734 = vmatmul.msk.bf16.vlgmr.msrb.gmra.mxu3 %vm4239_vm8, %v4132_v53  ;;  %7735 = vmatmul.msk.bf16.vlgmr.msra.gmra.mxu0 %vm4239_vm8, %v4132_v53  ;;  %v9079_v53 = vld [vmem:[#allocation24 + $0x34c] sm:$0xf0]  ;;  %v8188_v3 = vld [vmem:[#allocation24 + $0x390] sm:$0xf0]  ;;  %v9049_v26 = vld [vmem:[#allocation24 + $0x264] sm:$0xf] }
 0x609   :  { %5083 = vmatpush.bf16.msra.mxu1 %v7819_v15  ;;  %v8155_v59 = vor.u32 %v9079_v53, %v8154_v52  ;;  %5098 = vmatpush.bf16.msra.mxu2 %v7915_v55  ;;  %v7852_v15 = vld [vmem:[#allocation24 + $0xf0] sm:$0xf0]  ;;  %v8993_v52 = vld [vmem:[#allocation24 + $0xa4] sm:$0xf]  ;;  %v8191_v5 = vor.u32 %v9085_v49, %v8188_v3  ;;  %v4154_v49 = vperm.slane %v4149_v17, 3 }
 0x60a   :  { %5112 = vmatpush.bf16.msra.mxu3 %v8027_v50  ;;  %v7855_v14 = vor.u32 %v9001_v12, %v7852_v15  ;;  %v7820_v53 = vld [vmem:[#allocation24 + $0xb0] sm:$0xf0]  ;;  %v9089_v55 = vld [vmem:[#allocation24 + $0x3a4] sm:$0xf] }
 0x60b   :  { %5125 = vmatpush.bf16.msrb.mxu0 %v8155_v59  ;;  %v8207_v59 = vor.u32 %v9089_v55, %v8204_v56  ;;  %v9021_v50 = vld [vmem:[#allocation24 + $0x184] sm:$0xf]  ;;  %v8044_v29 = vld [vmem:[#allocation24 + $0x270] sm:$0xf0] }
 0x60c   :  { %v7935_v11 = vor.u32 %v9021_v50, %v7932_v63  ;;  %v9013_v35 = vld [vmem:[#allocation24 + $0x144] sm:$0xf]  ;;  %v7740_v44 = vld [vmem:[#allocation24 + $0x10] sm:$0xf0]  ;;  %v7858_v50 = vld [vmem:[#allocation24 + $0xe8] sm:$0xf] }
 0x60d   :  { %5084 = vmatpush.bf16.msra.mxu1 %v7803_v30  ;;  %5099 = vmatpush.bf16.msra.mxu2 %v7899_v61  ;;  %v8108_v30 = vld [vmem:[#allocation24 + $0x2f0] sm:$0xf0]  ;;  %v8079_v61 = vor.u32 %v9057_v60, %v8076_v43  ;;  %v8973_v42 = vld [vmem:[#allocation24 + $0x4] sm:$0xf]  ;;  %v9004_v63 = vld [vmem:[#allocation24 + $0xf4] sm:$0xf0] }
 0x60e   :  { %5113 = vmatpush.bf16.msra.mxu3 %v8011_v21  ;;  %v9077_v21 = vld [vmem:[#allocation24 + $0x344] sm:$0xf]  ;;  %v7859_v10 = vor.u32 %v9004_v63, %v7858_v50  ;;  %v8178_v50 = vld [vmem:[#allocation24 + $0x368] sm:$0xf]  ;;  %v9084_v63 = vld [vmem:[#allocation24 + $0x374] sm:$0xf0] }
 0x60f   :  { %5126 = vmatpush.bf16.msrb.mxu0 %v8139_v7  ;;  %v7788_v7 = vld [vmem:[#allocation24 + $0x70] sm:$0xf0]  ;;  %v9041_v55 = vld [vmem:[#allocation24 + $0x224] sm:$0xf] }
 0x610   :  { %v7791_v15 = vor.u32 %v8985_v6, %v7788_v7  ;;  %v9037_v43 = vld [vmem:[#allocation24 + $0x204] sm:$0xf]  ;;  %v4152_v6 = vperm.slane %v4149_v17, 1  ;;  %v8082_v17 = vld [vmem:[#allocation24 + $0x2a8] sm:$0xf] }
 0x611   :  { %5085 = vmatpush.bf16.msra.mxu1 %v7787_v41  ;;  %5100 = vmatpush.bf16.msra.mxu2 %v7883_v32  ;;  %v8111_v41 = vor.u32 %v9065_v9, %v8108_v30  ;;  %v7772_v32 = vld [vmem:[#allocation24 + $0x50] sm:$0xf0]  ;;  %v8047_v9 = vor.u32 %v9049_v26, %v8044_v29  ;;  %v8977_v30 = vld [vmem:[#allocation24 + $0x24] sm:$0xf] }
 0x612   :  { %5114 = vmatpush.bf16.msra.mxu3 %v7995_v38  ;;  %v7775_v22 = vor.u32 %v8981_v18, %v7772_v32  ;;  %v9045_v38 = vld [vmem:[#allocation24 + $0x244] sm:$0xf] }
 0x613   :  { %5127 = vmatpush.bf16.msrb.mxu0 %v8123_v27  ;;  %v7919_v27 = vor.u32 %v9017_v24, %v7916_v25  ;;  %v7986_v24 = vld [vmem:[#allocation24 + $0x1e8] sm:$0xf]  ;;  %v9036_v25 = vld [vmem:[#allocation24 + $0x1f4] sm:$0xf0] }
 0x615   :  { %5086 = vmatpush.bf16.msra.mxu1 %v7771_v58  ;;  %5101 = vmatpush.bf16.msra.mxu2 %v7867_v37  ;;  %v9025_v58 = vld [vmem:[#allocation24 + $0x1a4] sm:$0xf]  ;;  %v7900_v37 = vld [vmem:[#allocation24 + $0x150] sm:$0xf0] }
 0x616   :  { %5159 = vmatpush.bf16.msrb.mxu3 %v8111_v41 }
 0x617   :  { %5172 = vmatpush.bf16.msra.mxu0 %v8239_v31 }
 0x619   :  { %5087 = vmatpush.bf16.msra.mxu1 %v7755_v1  ;;  %5146 = vmatpush.bf16.msrb.mxu2 %v7983_v40  ;;  %v8060_v1 = vld [vmem:[#allocation24 + $0x290] sm:$0xf0] }
 0x61a   :  { %v8063_v12 = vor.u32 %v9053_v54, %v8060_v1  ;;  %v8028_v40 = vld [vmem:[#allocation24 + $0x250] sm:$0xf0]  ;;  %v8242_v1 = vld [vmem:[#allocation24 + $0x3e8] sm:$0xf] }
 0x61b   :  { %5173 = vmatpush.bf16.msra.mxu0 %v8223_v51  ;;  %v8031_v41 = vor.u32 %v9045_v38, %v8028_v40  ;;  %v8210_v38 = vld [vmem:[#allocation24 + $0x3a8] sm:$0xf] }
 0x61d   :  { %5088 = vmatpush.bf16.msra.mxu1 %v7739_v23  ;;  %5147 = vmatpush.bf16.msrb.mxu2 %v7967_v62  ;;  %v8159_v23 = vor.u32 %v9077_v21, %v8156_v36  ;;  %v8012_v62 = vld [vmem:[#allocation24 + $0x230] sm:$0xf0]  ;;  %v8226_v21 = vld [vmem:[#allocation24 + $0x3c8] sm:$0xf]  ;;  %v9096_v36 = vld [vmem:[#allocation24 + $0x3d4] sm:$0xf0] }
 0x61e   :  { %v8227_v19 = vor.u32 %v9096_v36, %v8226_v21  ;;  %v7922_v36 = vld [vmem:[#allocation24 + $0x168] sm:$0xf] }
 0x61f   :  { %5174 = vmatpush.bf16.msra.mxu0 %v8207_v59 }
 0x621   :  { %5133 = vmatpush.bf16.msrb.mxu1 %v7855_v14  ;;  %v7756_v14 = vld [vmem:[#allocation24 + $0x30] sm:$0xf0] }
 0x622   :  { %v7759_v31 = vor.u32 %v8977_v30, %v7756_v14  ;;  %v9068_v30 = vld [vmem:[#allocation24 + $0x2f4] sm:$0xf0] }
 0x623   :  { %5175 = vmatpush.bf16.msra.mxu0 %v8191_v5 }
 0x625   :  { %5134 = vmatpush.bf16.msrb.mxu1 %v7839_v48  ;;  %v8124_v48 = vld [vmem:[#allocation24 + $0x310] sm:$0xf0] }
 0x627   :  { %5176 = vmatpush.bf16.msra.mxu0 %v8175_v16  ;;  %v9000_v16 = vld [vmem:[#allocation24 + $0xd4] sm:$0xf0] }
 0x62b   :  { %v2608_v57 = vpop.xlane.xlu1 %2607  ;;  %5177 = vmatpush.bf16.msra.mxu0 %v8159_v23 }
 0x62c   :  { %v2609_v2 = vsub.f32 %v9999_v0, %v2608_v57  ;;  %v8095_v57 = vor.u32 %v9061_v45, %v8092_v46  ;;  %v9069_v45 = vld [vmem:[#allocation24 + $0x304] sm:$0xf]  ;;  %v7743_v46 = vor.u32 %v8973_v42, %v7740_v44  ;;  %v7970_v42 = vld [vmem:[#allocation24 + $0x1c8] sm:$0xf]  ;;  %v9032_v44 = vld [vmem:[#allocation24 + $0x1d4] sm:$0xf0] }
 0x62d   :  { %v8127_v51 = vor.u32 %v9069_v45, %v8124_v48  ;;  %v8098_v48 = vld [vmem:[#allocation24 + $0x2c8] sm:$0xf] }
 0x62e   :  { %v2610_v13 = vmul.f32 1.442695, %v2609_v2  ;;  %v7823_v2 = vor.u32 %v8993_v52, %v7820_v53  ;;  %5160 = vmatpush.bf16.msrb.mxu3 %v8095_v57  ;;  %v9009_v52 = vld [vmem:[#allocation24 + $0x124] sm:$0xf]  ;;  %v7884_v53 = vld [vmem:[#allocation24 + $0x130] sm:$0xf0]  ;;  %v8015_v57 = vor.u32 %v9041_v55, %v8012_v62  ;;  %v7971_v62 = vor.u32 %v9032_v44, %v7970_v42 }
 0x62f   :  { %5178 = vmatpush.bf16.msra.mxu0 %v8143_v34  ;;  %v7887_v56 = vor.u32 %v9009_v52, %v7884_v53  ;;  %v8996_v34 = vld [vmem:[#allocation24 + $0xb4] sm:$0xf0]  ;;  %v7810_v53 = vld [vmem:[#allocation24 + $0x88] sm:$0xf] }
 0x630   :  { %9205 = vpow2.f32 %v2610_v13  ;;  %v7951_v13 = vor.u32 %v9025_v58, %v7948_v28  ;;  %5135 = vmatpush.bf16.msrb.mxu1 %v7823_v2  ;;  %v9005_v58 = vld [vmem:[#allocation24 + $0x104] sm:$0xf]  ;;  %v7868_v28 = vld [vmem:[#allocation24 + $0x110] sm:$0xf0]  ;;  %v8992_v55 = vld [vmem:[#allocation24 + $0x94] sm:$0xf0] }
 0x631   :  { %v7871_v60 = vor.u32 %v9005_v58, %v7868_v28  ;;  %v7996_v2 = vld [vmem:[#allocation24 + $0x210] sm:$0xf0]  ;;  %v9088_v58 = vld [vmem:[#allocation24 + $0x394] sm:$0xf0]  ;;  %v8130_v42 = vld [vmem:[#allocation24 + $0x308] sm:$0xf] }
 0x632   :  { %5148 = vmatpush.bf16.msrb.mxu2 %v7951_v13  ;;  %5161 = vmatpush.bf16.msrb.mxu3 %v8079_v61  ;;  %v7999_v59 = vor.u32 %v9037_v43, %v7996_v2  ;;  %v7954_v43 = vld [vmem:[#allocation24 + $0x1a8] sm:$0xf]  ;;  %v9028_v2 = vld [vmem:[#allocation24 + $0x1b4] sm:$0xf0] }
 0x633   :  { %5179 = vmatpush.bf16.msra.mxu0 %v8127_v51  ;;  %v9064_v51 = vld [vmem:[#allocation24 + $0x2d4] sm:$0xf0] }
 0x634   :  { %5136 = vmatpush.bf16.msrb.mxu1 %v7807_v4  ;;  %v9100_v4 = vld [vmem:[#allocation24 + $0x3f4] sm:$0xf0] }
 0x635   :  { %v9072_v44 = vld [vmem:[#allocation24 + $0x314] sm:$0xf0] }
 0x636   :  { %v10215_v47 = vpop.eup %9205  ;;  %5149 = vmatpush.bf16.msrb.mxu2 %v7935_v11  ;;  %5162 = vmatpush.bf16.msrb.mxu3 %v8063_v12  ;;  %v8243_v12 = vor.u32 %v9100_v4, %v8242_v1  ;;  %v7938_v1 = vld [vmem:[#allocation24 + $0x188] sm:$0xf]  ;;  %v9024_v4 = vld [vmem:[#allocation24 + $0x194] sm:$0xf0] }
 0x637   :  { %v2612_v39 = vsel %vm2605_vm0, %v10215_v47, 0.0 }
 0x638   :  { %2613 = vadd.xlane.f32.xlu2 %v2612_v39  ;;  %5137 = vmatpush.bf16.msrb.mxu1 %v7791_v15  ;;  %v7903_v39 = vor.u32 %v9013_v35, %v7900_v37  ;;  %v7842_v15 = vld [vmem:[#allocation24 + $0xc8] sm:$0xf]  ;;  %v7987_v37 = vor.u32 %v9036_v25, %v7986_v24  ;;  %v9052_v25 = vld [vmem:[#allocation24 + $0x274] sm:$0xf0] }
 0x639   :  { %v7843_v29 = vor.u32 %v9000_v16, %v7842_v15  ;;  %v7939_v15 = vor.u32 %v9024_v4, %v7938_v1  ;;  %v8162_v16 = vld [vmem:[#allocation24 + $0x348] sm:$0xf]  ;;  %v9034_v1 = vld [vmem:[#allocation24 + $0x1ec] sm:$0xf]  ;;  %v7988_v4 = vld [vmem:[#allocation24 + $0x1f8] sm:$0xf0] }
 0x63a   :  { %5150 = vmatpush.bf16.msrb.mxu2 %v7919_v27  ;;  %5163 = vmatpush.bf16.msrb.mxu3 %v8047_v9  ;;  %v8114_v9 = vld [vmem:[#allocation24 + $0x2e8] sm:$0xf] }
 0x63b   :  { %v8050_v24 = vld [vmem:[#allocation24 + $0x268] sm:$0xf] }
 0x63c   :  { %5138 = vmatpush.bf16.msrb.mxu1 %v7775_v22 }
 0x63e   :  { %5151 = vmatpush.bf16.msrb.mxu2 %v7903_v39  ;;  %5164 = vmatpush.bf16.msrb.mxu3 %v8031_v41  ;;  %v9092_v39 = vld [vmem:[#allocation24 + $0x3b4] sm:$0xf0]  ;;  %v8115_v41 = vor.u32 %v9068_v30, %v8114_v9  ;;  %v8146_v30 = vld [vmem:[#allocation24 + $0x328] sm:$0xf] }
 0x63f   :  { %v8211_v52 = vor.u32 %v9092_v39, %v8210_v38  ;;  %v7746_v38 = vld [vmem:[#allocation24 + $0x8] sm:$0xf] }
 0x640   :  { %5139 = vmatpush.bf16.msrb.mxu1 %v7759_v31 }
 0x642   :  { %5152 = vmatpush.bf16.msrb.mxu2 %v7887_v56  ;;  %5165 = vmatpush.bf16.msrb.mxu3 %v8015_v57  ;;  %v8194_v57 = vld [vmem:[#allocation24 + $0x388] sm:$0xf] }
 0x644   :  { %5140 = vmatpush.bf16.msrb.mxu1 %v7743_v46  ;;  %v7827_v46 = vor.u32 %v8996_v34, %v7826_v33  ;;  %v9016_v33 = vld [vmem:[#allocation24 + $0x154] sm:$0xf0] }
 0x646   :  { %5153 = vmatpush.bf16.msrb.mxu2 %v7871_v60  ;;  %5166 = vmatpush.bf16.msrb.mxu3 %v7999_v59  ;;  %v8099_v60 = vor.u32 %v9064_v51, %v8098_v48  ;;  %v7811_v59 = vor.u32 %v8992_v55, %v7810_v53  ;;  %v9002_v48 = vld [vmem:[#allocation24 + $0xec] sm:$0xf]  ;;  %v7860_v51 = vld [vmem:[#allocation24 + $0xf8] sm:$0xf0] }
 0x647   :  { %v8244_v55 = vld [vmem:[#allocation24 + $0x3f8] sm:$0xf0] }
 0x684   :  { %v4252_v3 = vpop.f32.mrf.mxu1 }
 0x685   :  { %v4253_v13 = vadd.f32 %v4252_v3, %v4151_v20  ;;  %v4291_v61 = vpop.f32.mrf.mxu0  ;;  %v9060_v20 = vld [vmem:[#allocation24 + $0x2b4] sm:$0xf0]  ;;  %v7794_v3 = vld [vmem:[#allocation24 + $0x68] sm:$0xf] }
 0x686   :  { %v4292_v54 = vadd.f32 %v4291_v61, %v4154_v49  ;;  %v8195_v49 = vor.u32 %v9088_v58, %v8194_v57  ;;  %v7955_v61 = vor.u32 %v9028_v2, %v7954_v43  ;;  %v8018_v58 = vld [vmem:[#allocation24 + $0x228] sm:$0xf]  ;;  %v7863_v43 = vor.u32 %v9002_v48, %v7860_v51  ;;  %v8998_v2 = vld [vmem:[#allocation24 + $0xcc] sm:$0xf]  ;;  %v7796_v48 = vld [vmem:[#allocation24 + $0x78] sm:$0xf0] }
 0x687   :  { %v4295_v5 = vmax.f32 %v4253_v13, 0.0  ;;  %v8988_v13 = vld [vmem:[#allocation24 + $0x74] sm:$0xf0] }
 0x688   :  { %v4298_v7 = vmax.f32 %v4292_v54, 0.0  ;;  %v8083_v54 = vor.u32 %v9060_v20, %v8082_v17  ;;  %v7844_v20 = vld [vmem:[#allocation24 + $0xd8] sm:$0xf0] }
 0x689   :  { %v10219_v11 = vpack.c.bf16 %v4295_v5, %v4295_v5  ;;  %v7795_v5 = vor.u32 %v8988_v13, %v7794_v3  ;;  %v8228_v3 = vld [vmem:[#allocation24 + $0x3d8] sm:$0xf0] }
 0x68a   :  { %v10221_v18 = vpack.c.bf16 %v4298_v7, %v4298_v7  ;;  %v4265_v32 = vpop.f32.mrf.mxu2  ;;  %v9056_v7 = vld [vmem:[#allocation24 + $0x294] sm:$0xf0] }
 0x68b   :  { %v4266_v22 = vadd.f32 %v4265_v32, %v4152_v6  ;;  %v4278_v23 = vpop.f32.mrf.mxu3  ;;  %5089 = vmatmul.bf16.vlgmr.msra.gmra.mxu1 %v10219_v11  ;;  %v8066_v6 = vld [vmem:[#allocation24 + $0x288] sm:$0xf]  ;;  %v9080_v32 = vld [vmem:[#allocation24 + $0x354] sm:$0xf0] }
 0x68c   :  { %v4279_v26 = vadd.f32 %v4278_v23, %v4153_v8  ;;  %5128 = vmatmul.bf16.vlgmr.msrb.gmra.mxu0 %v10221_v18  ;;  %5185 = vmatpush.bf16.msra.mxu1 %v7859_v10  ;;  %v4254_v27 = vpop.f32.mrf.mxu1  ;;  %v8179_v8 = vor.u32 %v9084_v63, %v8178_v50  ;;  %v7778_v10 = vld [vmem:[#allocation24 + $0x48] sm:$0xf]  ;;  %v8067_v21 = vor.u32 %v9056_v7, %v8066_v6  ;;  %v9008_v50 = vld [vmem:[#allocation24 + $0x114] sm:$0xf0]  ;;  %v9066_v6 = vld [vmem:[#allocation24 + $0x2ec] sm:$0xf] }
 0x68d   :  { %v4296_v14 = vmax.f32 %v4266_v22, 0.0  ;;  %5224 = vmatpush.bf16.msrb.mxu0 %v8243_v12  ;;  %v4293_v31 = vpop.f32.mrf.mxu0  ;;  %v8984_v12 = vld [vmem:[#allocation24 + $0x54] sm:$0xf0]  ;;  %v7762_v27 = vld [vmem:[#allocation24 + $0x28] sm:$0xf] }
 0x68e   :  { %v4297_v35 = vmax.f32 %v4279_v26, 0.0  ;;  %v9020_v22 = vld [vmem:[#allocation24 + $0x174] sm:$0xf0]  ;;  %v7779_v23 = vor.u32 %v8984_v12, %v7778_v10  ;;  %v8163_v26 = vor.u32 %v9080_v32, %v8162_v16  ;;  %v8051_v31 = vor.u32 %v9052_v25, %v8050_v24  ;;  %v8002_v63 = vld [vmem:[#allocation24 + $0x208] sm:$0xf] }
 0x68f   :  { %v10225_v40 = vpack.c.bf16 %v4296_v14, %v4296_v14  ;;  %v7923_v9 = vor.u32 %v9020_v22, %v7922_v36  ;;  %v9076_v14 = vld [vmem:[#allocation24 + $0x334] sm:$0xf0]  ;;  %v8116_v7 = vld [vmem:[#allocation24 + $0x2f8] sm:$0xf0]  ;;  %v8994_v12 = vld [vmem:[#allocation24 + $0xac] sm:$0xf] }
 0x690   :  { %v10227_v45 = vpack.c.bf16 %v4297_v35, %v4297_v35  ;;  %5186 = vmatpush.bf16.msra.mxu1 %v7843_v29  ;;  %v8980_v29 = vld [vmem:[#allocation24 + $0x34] sm:$0xf0]  ;;  %v8034_v35 = vld [vmem:[#allocation24 + $0x248] sm:$0xf]  ;;  %v8147_v39 = vor.u32 %v9076_v14, %v8146_v30  ;;  %v9090_v36 = vld [vmem:[#allocation24 + $0x3ac] sm:$0xf] }
 0x691   :  { %5225 = vmatpush.bf16.msrb.mxu0 %v8227_v19  ;;  %5102 = vmatmul.bf16.vlgmr.msra.gmra.mxu2 %v10225_v40  ;;  %v7906_v19 = vld [vmem:[#allocation24 + $0x148] sm:$0xf]  ;;  %v7763_v34 = vor.u32 %v8980_v29, %v7762_v27  ;;  %v8212_v22 = vld [vmem:[#allocation24 + $0x3b8] sm:$0xf0]  ;;  %v9030_v24 = vld [vmem:[#allocation24 + $0x1cc] sm:$0xf] }
 0x692   :  { %5115 = vmatmul.bf16.vlgmr.msra.gmra.mxu3 %v10227_v45  ;;  %5198 = vmatpush.bf16.msra.mxu2 %v7987_v37  ;;  %v4267_v56 = vpop.f32.mrf.mxu2  ;;  %v9048_v37 = vld [vmem:[#allocation24 + $0x254] sm:$0xf0]  ;;  %v7972_v25 = vld [vmem:[#allocation24 + $0x1d8] sm:$0xf0]  ;;  %v9062_v27 = vld [vmem:[#allocation24 + $0x2cc] sm:$0xf] }
 0x693   :  { %5211 = vmatpush.bf16.msra.mxu3 %v8115_v41  ;;  %v4280_v28 = vpop.f32.mrf.mxu3  ;;  %v8976_v41 = vld [vmem:[#allocation24 + $0x14] sm:$0xf0]  ;;  %v8035_v53 = vor.u32 %v9048_v37, %v8034_v35  ;;  %v7890_v56 = vld [vmem:[#allocation24 + $0x128] sm:$0xf]  ;;  %v8100_v29 = vld [vmem:[#allocation24 + $0x2d8] sm:$0xf0] }
 0x694   :  { %5187 = vmatpush.bf16.msra.mxu1 %v7827_v46  ;;  %v7907_v46 = vor.u32 %v9016_v33, %v7906_v19  ;;  %v7747_v57 = vor.u32 %v8976_v41, %v7746_v38  ;;  %v9044_v28 = vld [vmem:[#allocation24 + $0x234] sm:$0xf0]  ;;  %v8990_v30 = vld [vmem:[#allocation24 + $0x8c] sm:$0xf]  ;;  %v7812_v14 = vld [vmem:[#allocation24 + $0x98] sm:$0xf0] }
 0x695   :  { %5226 = vmatpush.bf16.msrb.mxu0 %v8211_v52  ;;  %v9098_v52 = vld [vmem:[#allocation24 + $0x3ec] sm:$0xf]  ;;  %v8019_v13 = vor.u32 %v9044_v28, %v8018_v58  ;;  %v8196_v33 = vld [vmem:[#allocation24 + $0x398] sm:$0xf0]  ;;  %v7815_v38 = vor.u32 %v8990_v30, %v7812_v14 }
 0x696   :  { %5199 = vmatpush.bf16.msra.mxu2 %v7971_v62  ;;  %v9012_v62 = vld [vmem:[#allocation24 + $0x134] sm:$0xf0]  ;;  %v9086_v19 = vld [vmem:[#allocation24 + $0x38c] sm:$0xf]  ;;  %v7956_v37 = vld [vmem:[#allocation24 + $0x1b8] sm:$0xf0] }
 0x697   :  { %5212 = vmatpush.bf16.msra.mxu3 %v8099_v60  ;;  %v8131_v60 = vor.u32 %v9072_v44, %v8130_v42  ;;  %v7891_v17 = vor.u32 %v9012_v62, %v7890_v56  ;;  %v9026_v35 = vld [vmem:[#allocation24 + $0x1ac] sm:$0xf]  ;;  %v8084_v41 = vld [vmem:[#allocation24 + $0x2b8] sm:$0xf0]  ;;  %v8199_v44 = vor.u32 %v9086_v19, %v8196_v33 }
 0x698   :  { %5188 = vmatpush.bf16.msra.mxu1 %v7811_v59  ;;  %v8247_v59 = vor.u32 %v9098_v52, %v8244_v55  ;;  %v7959_v52 = vor.u32 %v9026_v35, %v7956_v37  ;;  %v8180_v55 = vld [vmem:[#allocation24 + $0x378] sm:$0xf0]  ;;  %v9022_v62 = vld [vmem:[#allocation24 + $0x18c] sm:$0xf]  ;;  %v8306_v35 = vld [vmem:[#allocation26 + $0x70] sm:$0xf] }
 0x699   :  { %5227 = vmatpush.bf16.msrb.mxu0 %v8195_v49  ;;  %v9094_v49 = vld [vmem:[#allocation24 + $0x3cc] sm:$0xf]  ;;  %v9116_v37 = vld [vmem:[#allocation26 + $0x74] sm:$0xf0] }
 0x69a   :  { %5200 = vmatpush.bf16.msra.mxu2 %v7955_v61  ;;  %v7874_v61 = vld [vmem:[#allocation24 + $0x108] sm:$0xf]  ;;  %v8974_v14 = vld [vmem:[#allocation24 + $0xc] sm:$0xf] }
 0x69b   :  { %5213 = vmatpush.bf16.msra.mxu3 %v8083_v54  ;;  %5141 = vmatmul.bf16.vlgmr.msrb.gmra.mxu1 %v10219_v11  ;;  %v9040_v54 = vld [vmem:[#allocation24 + $0x214] sm:$0xf0]  ;;  %v7875_v10 = vor.u32 %v9008_v50, %v7874_v61  ;;  %v8164_v61 = vld [vmem:[#allocation24 + $0x358] sm:$0xf0]  ;;  %v9070_v19 = vld [vmem:[#allocation24 + $0x30c] sm:$0xf] }
 0x69c   :  { %5180 = vmatmul.bf16.vlgmr.msra.gmra.mxu0 %v10221_v18  ;;  %5189 = vmatpush.bf16.msra.mxu1 %v7795_v5  ;;  %v7847_v5 = vor.u32 %v8998_v2, %v7844_v20  ;;  %v8003_v32 = vor.u32 %v9040_v54, %v8002_v63  ;;  %v9018_v54 = vld [vmem:[#allocation24 + $0x16c] sm:$0xf] }
 0x69d   :  { %5228 = vmatpush.bf16.msrb.mxu0 %v8179_v8  ;;  %v8231_v8 = vor.u32 %v9094_v49, %v8228_v3 }
 0x69e   :  { %5201 = vmatpush.bf16.msra.mxu2 %v7939_v15  ;;  %v7828_v15 = vld [vmem:[#allocation24 + $0xb8] sm:$0xf0] }
 0x69f   :  { %5214 = vmatpush.bf16.msra.mxu3 %v8067_v21  ;;  %v7991_v21 = vor.u32 %v9034_v1, %v7988_v4  ;;  %v7924_v1 = vld [vmem:[#allocation24 + $0x178] sm:$0xf0] }
 0x6a0   :  { %5190 = vmatpush.bf16.msra.mxu1 %v7779_v23  ;;  %v8119_v23 = vor.u32 %v9066_v6, %v8116_v7  ;;  %v8052_v6 = vld [vmem:[#allocation24 + $0x278] sm:$0xf0] }
 0x6a1   :  { %5229 = vmatpush.bf16.msrb.mxu0 %v8163_v26  ;;  %5154 = vmatmul.bf16.vlgmr.msrb.gmra.mxu2 %v10225_v40  ;;  %v7831_v26 = vor.u32 %v8994_v12, %v7828_v15  ;;  %v8978_v12 = vld [vmem:[#allocation24 + $0x2c] sm:$0xf]  ;;  %v7764_v15 = vld [vmem:[#allocation24 + $0x38] sm:$0xf0] }
 0x6a2   :  { %5167 = vmatmul.bf16.vlgmr.msrb.gmra.mxu3 %v10227_v45  ;;  %5202 = vmatpush.bf16.msra.mxu2 %v7923_v9  ;;  %v8215_v9 = vor.u32 %v9090_v36, %v8212_v22  ;;  %v9074_v36 = vld [vmem:[#allocation24 + $0x32c] sm:$0xf]  ;;  %v8148_v22 = vld [vmem:[#allocation24 + $0x338] sm:$0xf0] }
 0x6a3   :  { %5215 = vmatpush.bf16.msra.mxu3 %v8051_v31  ;;  %v7975_v31 = vor.u32 %v9030_v24, %v7972_v25  ;;  %v9014_v25 = vld [vmem:[#allocation24 + $0x14c] sm:$0xf]  ;;  %v8151_v30 = vor.u32 %v9074_v36, %v8148_v22  ;;  %v8346_v22 = vld [vmem:[#allocation26 + $0xc0] sm:$0xf] }
 0x6a4   :  { %5191 = vmatpush.bf16.msra.mxu1 %v7763_v34  ;;  %v8103_v34 = vor.u32 %v9062_v27, %v8100_v29  ;;  %v7767_v27 = vor.u32 %v8978_v12, %v7764_v15  ;;  %v9046_v29 = vld [vmem:[#allocation24 + $0x24c] sm:$0xf]  ;;  %v8354_v12 = vld [vmem:[#allocation26 + $0xd0] sm:$0xf] }
 0x6a5   :  { %5230 = vmatpush.bf16.msrb.mxu0 %v8147_v39  ;;  %v9058_v39 = vld [vmem:[#allocation24 + $0x2ac] sm:$0xf] }
 0x6a6   :  { %5203 = vmatpush.bf16.msra.mxu2 %v7907_v46  ;;  %v8986_v46 = vld [vmem:[#allocation24 + $0x6c] sm:$0xf]  ;;  %v8087_v56 = vor.u32 %v9058_v39, %v8084_v41  ;;  %v7892_v41 = vld [vmem:[#allocation24 + $0x138] sm:$0xf0] }
 0x6a7   :  { %5216 = vmatpush.bf16.msra.mxu3 %v8035_v53  ;;  %v9082_v53 = vld [vmem:[#allocation24 + $0x36c] sm:$0xf]  ;;  %v7799_v28 = vor.u32 %v8986_v46, %v7796_v48  ;;  %v8307_v48 = vor.u32 %v9116_v37, %v8306_v35  ;;  %v8330_v35 = vld [vmem:[#allocation26 + $0xa0] sm:$0xf]  ;;  %v9122_v37 = vld [vmem:[#allocation26 + $0xa4] sm:$0xf0] }
 0x6a8   :  { %5192 = vmatpush.bf16.msra.mxu1 %v7747_v57  ;;  %v7940_v57 = vld [vmem:[#allocation24 + $0x198] sm:$0xf0]  ;;  %v8183_v2 = vor.u32 %v9082_v53, %v8180_v55  ;;  %v9010_v39 = vld [vmem:[#allocation24 + $0x12c] sm:$0xf]  ;;  %v9114_v53 = vld [vmem:[#allocation26 + $0x64] sm:$0xf0] }
 0x6a9   :  { %5231 = vmatpush.bf16.msrb.mxu0 %v8131_v60  ;;  %v9054_v60 = vld [vmem:[#allocation24 + $0x28c] sm:$0xf]  ;;  %v7943_v3 = vor.u32 %v9022_v62, %v7940_v57  ;;  %v7876_v62 = vld [vmem:[#allocation24 + $0x118] sm:$0xf0] }
 0x6aa   :  { %5204 = vmatpush.bf16.msra.mxu2 %v7891_v17  ;;  %v7780_v17 = vld [vmem:[#allocation24 + $0x58] sm:$0xf0]  ;;  %v9038_v57 = vld [vmem:[#allocation24 + $0x20c] sm:$0xf] }
 0x6ab   :  { %5217 = vmatpush.bf16.msra.mxu3 %v8019_v13  ;;  %5193 = vmatmul.bf16.vlgmr.msra.gmra.mxu1 %v10219_v11  ;;  %v10236_v16 = vpop.xlane.xlu2 %2613  ;;  %v9078_v13 = vld [vmem:[#allocation24 + $0x34c] sm:$0xf] }
 0x6ac   :  { %5237 = vmatpush.bf16.msrb.mxu1 %v7863_v43  ;;  %5232 = vmatmul.bf16.vlgmr.msrb.gmra.mxu0 %v10221_v18  ;;  %9207 = vrcp.f32 %v10236_v16  ;;  %v8068_v43 = vld [vmem:[#allocation24 + $0x298] sm:$0xf0]  ;;  %v2626_v20 = vand.u32 2147483648, %v10236_v16  ;;  %v2624_v50 = vand.u32 2147483647, %v10236_v16  ;;  %vm2620_vm10 = vweird.f32 %v10236_v16 }
 0x6ad   :  { %5276 = vmatpush.bf16.msra.mxu0 %v8247_v59  ;;  %v8982_v59 = vld [vmem:[#allocation24 + $0x4c] sm:$0xf]  ;;  %v8071_v63 = vor.u32 %v9054_v60, %v8068_v43  ;;  %v9132_v60 = vld [vmem:[#allocation26 + $0xf4] sm:$0xf0] }
 0x6ae   :  { %5205 = vmatpush.bf16.msra.mxu2 %v7875_v10  ;;  %v7783_v4 = vor.u32 %v8982_v59, %v7780_v17  ;;  %v2627_v10 = vor.u32 1.1754944e-38, %v2626_v20  ;;  %vm2625_vm12 = vcmp.eq.f32.partialorder %v2624_v50, 8.507059e+37  ;;  %v8290_v59 = vld [vmem:[#allocation26 + $0x50] sm:$0xf]  ;;  %v9112_v17 = vld [vmem:[#allocation26 + $0x54] sm:$0xf0] }
 0x6af   :  { %5218 = vmatpush.bf16.msra.mxu3 %v8003_v32  ;;  %v7927_v32 = vor.u32 %v9018_v54, %v7924_v1  ;;  %v8282_v50 = vld [vmem:[#allocation26 + $0x40] sm:$0xf] }
 0x6b0   :  { %5238 = vmatpush.bf16.msrb.mxu1 %v7847_v5  ;;  %v9050_v5 = vld [vmem:[#allocation24 + $0x26c] sm:$0xf] }
 0x6b1   :  { %5277 = vmatpush.bf16.msra.mxu0 %v8231_v8  ;;  %5206 = vmatmul.bf16.vlgmr.msra.gmra.mxu2 %v10225_v40  ;;  %v8167_v8 = vor.u32 %v9078_v13, %v8164_v61  ;;  %v9130_v13 = vld [vmem:[#allocation26 + $0xe4] sm:$0xf0]  ;;  %v8291_v61 = vor.u32 %v9112_v17, %v8290_v59  ;;  %v9107_v17 = vld [vmem:[#allocation26 + $0x34] sm:$0xf] }
 0x6b2   :  { %5250 = vmatpush.bf16.msrb.mxu2 %v7991_v21  ;;  %v9208_v42 = vpop.eup %9207  ;;  %5219 = vmatmul.bf16.vlgmr.msra.gmra.mxu3 %v10227_v45  ;;  %v9142_v59 = vld [vmem:[#allocation26 + $0x144] sm:$0xf0] }
 0x6b3   :  { %5263 = vmatpush.bf16.msrb.mxu3 %v8119_v23  ;;  %v2616_v51 = vmul.f32 %v9208_v42, %v10236_v16  ;;  %vm2621_vm9 = vweird.f32 %v9208_v42  ;;  %v8055_v23 = vor.u32 %v9050_v5, %v8052_v6  ;;  %v8266_v5 = vld [vmem:[#allocation26 + $0x20] sm:$0xf]  ;;  %v9106_v6 = vld [vmem:[#allocation26 + $0x24] sm:$0xf0] }
 0x6b4   :  { %5239 = vmatpush.bf16.msrb.mxu1 %v7831_v26  ;;  %vm2622_vm11 = vmor %vm2620_vm10, %vm2621_vm9  ;;  %v7908_v26 = vld [vmem:[#allocation24 + $0x158] sm:$0xf0] }
 0x6b5   :  { %5278 = vmatpush.bf16.msra.mxu0 %v8215_v9  ;;  %v2617_v58 = vsub.f32 1.0, %v2616_v51  ;;  %v8036_v9 = vld [vmem:[#allocation24 + $0x258] sm:$0xf0]  ;;  %v7911_v33 = vor.u32 %v9014_v25, %v7908_v26  ;;  %v7895_v51 = vor.u32 %v9010_v39, %v7892_v41  ;;  %v9115_v25 = vld [vmem:[#allocation26 + $0x74] sm:$0xf]  ;;  %v8331_v39 = vor.u32 %v9122_v37, %v8330_v35 }
 0x6b6   :  { %5251 = vmatpush.bf16.msrb.mxu2 %v7975_v31  ;;  %v7748_v31 = vld [vmem:[#allocation24 + $0x18] sm:$0xf0]  ;;  %v9146_v41 = vld [vmem:[#allocation26 + $0x164] sm:$0xf0]  ;;  %v8498_v35 = vld [vmem:[#allocation26 + $0x1f0] sm:$0xf] }
 0x6b7   :  { %5264 = vmatpush.bf16.msrb.mxu3 %v8103_v34  ;;  %v2618_v49 = vmul.f32 %v9208_v42, %v2617_v58  ;;  %v8132_v34 = vld [vmem:[#allocation24 + $0x318] sm:$0xf0] }
 0x6b8   :  { %5240 = vmatpush.bf16.msrb.mxu1 %v7815_v38  ;;  %v8039_v38 = vor.u32 %v9046_v29, %v8036_v9  ;;  %v8135_v46 = vor.u32 %v9070_v19, %v8132_v34  ;;  %v8004_v58 = vld [vmem:[#allocation24 + $0x218] sm:$0xf0]  ;;  %v9124_v29 = vld [vmem:[#allocation26 + $0xb4] sm:$0xf0]  ;;  %v8434_v9 = vld [vmem:[#allocation26 + $0x170] sm:$0xf] }
 0x6b9   :  { %5279 = vmatpush.bf16.msra.mxu0 %v8199_v44  ;;  %v2619_v7 = vadd.f32 %v9208_v42, %v2618_v49  ;;  %v8020_v44 = vld [vmem:[#allocation24 + $0x238] sm:$0xf0]  ;;  %v8007_v20 = vor.u32 %v9038_v57, %v8004_v58  ;;  %v9113_v19 = vld [vmem:[#allocation26 + $0x64] sm:$0xf] }
 0x6ba   :  { %5252 = vmatpush.bf16.msrb.mxu2 %v7959_v52  ;;  %v8298_v52 = vld [vmem:[#allocation26 + $0x60] sm:$0xf]  ;;  %v8308_v26 = vld [vmem:[#allocation26 + $0x78] sm:$0xf0] }
 0x6bb   :  { %5265 = vmatpush.bf16.msrb.mxu3 %v8087_v56  ;;  %v2623_v21 = vsel %vm2622_vm11, %v9208_v42, %v2619_v7  ;;  %v9042_v42 = vld [vmem:[#allocation24 + $0x22c] sm:$0xf]  ;;  %v8299_v43 = vor.u32 %v9114_v53, %v8298_v52  ;;  %v8267_v7 = vor.u32 %v9106_v6, %v8266_v5  ;;  %v8418_v52 = vld [vmem:[#allocation26 + $0x150] sm:$0xf] }
 0x6bc   :  { %5241 = vmatpush.bf16.msrb.mxu1 %v7799_v28  ;;  %v2628_v24 = vsel %vm2625_vm12, %v2627_v10, %v2623_v21  ;;  %v8023_v55 = vor.u32 %v9042_v42, %v8020_v44  ;;  %v9006_v56 = vld [vmem:[#allocation24 + $0x10c] sm:$0xf]  ;;  %v8370_v28 = vld [vmem:[#allocation26 + $0xf0] sm:$0xf]  ;;  %v9104_v10 = vld [vmem:[#allocation26 + $0x14] sm:$0xf0] }
 0x6bd   :  { %5280 = vmatpush.bf16.msra.mxu0 %v8183_v2  ;;  %v2629_v16 = vmul.f32 %v10215_v47, %v2628_v24  ;;  %v7751_v47 = vor.u32 %v8974_v14, %v7748_v31  ;;  %v7879_v2 = vor.u32 %v9006_v56, %v7876_v62  ;;  %v8371_v49 = vor.u32 %v9132_v60, %v8370_v28  ;;  %v9102_v21 = vld [vmem:[#allocation26 + $0x4] sm:$0xf0]  ;;  %v9148_v14 = vld [vmem:[#allocation26 + $0x174] sm:$0xf0]  ;;  %v8292_v42 = vld [vmem:[#allocation26 + $0x58] sm:$0xf0] }
 0x6be   :  { %5253 = vmatpush.bf16.msrb.mxu2 %v7943_v3  ;;  %v8362_v3 = vld [vmem:[#allocation26 + $0xe0] sm:$0xf]  ;;  %v8435_v31 = vor.u32 %v9148_v14, %v8434_v9  ;;  %v9109_v56 = vld [vmem:[#allocation26 + $0x44] sm:$0xf]  ;;  %v8284_v62 = vld [vmem:[#allocation26 + $0x48] sm:$0xf0] }
 0x6bf   :  { %5266 = vmatpush.bf16.msrb.mxu3 %v8071_v63  ;;  %5793 = vrot.lane.b32.xlu2 %v2629_v16, %s9643_s2  ;;  %v9110_v63 = vld [vmem:[#allocation26 + $0x44] sm:$0xf0]  ;;  %v8363_v54 = vor.u32 %v9130_v13, %v8362_v3  ;;  %v8311_v16 = vor.u32 %v9115_v25, %v8308_v26  ;;  %v8287_v58 = vor.u32 %v9109_v56, %v8284_v62  ;;  %v8314_v28 = vld [vmem:[#allocation26 + $0x80] sm:$0xf]  ;;  %v9131_v13 = vld [vmem:[#allocation26 + $0xf4] sm:$0xf] }
 0x6c0   :  { %5242 = vmatpush.bf16.msrb.mxu1 %v7783_v4  ;;  %v8283_v1 = vor.u32 %v9110_v63, %v8282_v50  ;;  %v9108_v4 = vld [vmem:[#allocation26 + $0x34] sm:$0xf0]  ;;  %v9118_v60 = vld [vmem:[#allocation26 + $0x84] sm:$0xf0]  ;;  %v8402_v63 = vld [vmem:[#allocation26 + $0x130] sm:$0xf] }
 0x6c1   :  { %5281 = vmatpush.bf16.msra.mxu0 %v8167_v8  ;;  %v8258_v8 = vld [vmem:[#allocation26 + $0x10] sm:$0xf]  ;;  %v8364_v6 = vld [vmem:[#allocation26 + $0xe8] sm:$0xf0]  ;;  %v9136_v26 = vld [vmem:[#allocation26 + $0x114] sm:$0xf0] }
 0x6c2   :  { %5254 = vmatpush.bf16.msrb.mxu2 %v7927_v32  ;;  %v8259_v15 = vor.u32 %v9104_v10, %v8258_v8  ;;  %v9128_v32 = vld [vmem:[#allocation26 + $0xd4] sm:$0xf0]  ;;  %v8394_v8 = vld [vmem:[#allocation26 + $0x120] sm:$0xf]  ;;  %v9138_v10 = vld [vmem:[#allocation26 + $0x124] sm:$0xf0] }
 0x6c3   :  { %5267 = vmatpush.bf16.msrb.mxu3 %v8055_v23  ;;  %v8355_v36 = vor.u32 %v9128_v32, %v8354_v12  ;;  %v8395_v12 = vor.u32 %v9138_v10, %v8394_v8  ;;  %v8260_v32 = vld [vmem:[#allocation26 + $0x18] sm:$0xf0]  ;;  %v8386_v25 = vld [vmem:[#allocation26 + $0x110] sm:$0xf]  ;;  %v9125_v9 = vld [vmem:[#allocation26 + $0xc4] sm:$0xf]  ;;  %v5798_v8 = vpop.permute.xlu0 %5797 }
 0x6c4   :  { %5243 = vmatpush.bf16.msrb.mxu1 %v7767_v27  ;;  %v8338_v27 = vld [vmem:[#allocation26 + $0xb0] sm:$0xf]  ;;  %v8348_v14 = vld [vmem:[#allocation26 + $0xc8] sm:$0xf0] }
 0x6c5   :  { %5282 = vmatpush.bf16.msra.mxu0 %v8151_v30  ;;  %v8339_v30 = vor.u32 %v9124_v29, %v8338_v27  ;;  %v9101_v27 = vld [vmem:[#allocation26 + $0x4] sm:$0xf]  ;;  %v8252_v29 = vld [vmem:[#allocation26 + $0x8] sm:$0xf0] }
 0x6c6   :  { %5255 = vmatpush.bf16.msrb.mxu2 %v7911_v33  ;;  %v8300_v33 = vld [vmem:[#allocation26 + $0x68] sm:$0xf0] }
 0x6c7   :  { %5268 = vmatpush.bf16.msrb.mxu3 %v8039_v38  ;;  %v8303_v34 = vor.u32 %v9113_v19, %v8300_v33  ;;  %v8426_v38 = vld [vmem:[#allocation26 + $0x160] sm:$0xf]  ;;  %v8351_v19 = vor.u32 %v9125_v9, %v8348_v14  ;;  %v9156_v14 = vld [vmem:[#allocation26 + $0x1b4] sm:$0xf0] }
 0x6c8   :  { %5244 = vmatpush.bf16.msrb.mxu1 %v7751_v47  ;;  %v9111_v47 = vld [vmem:[#allocation26 + $0x54] sm:$0xf]  ;;  %v8427_v44 = vor.u32 %v9146_v41, %v8426_v38  ;;  %v8378_v33 = vld [vmem:[#allocation26 + $0x100] sm:$0xf]  ;;  %v9164_v38 = vld [vmem:[#allocation26 + $0x1f4] sm:$0xf0] }
 0x6c9   :  { %5283 = vmatpush.bf16.msra.mxu0 %v8135_v46  ;;  %v8295_v46 = vor.u32 %v9111_v47, %v8292_v42  ;;  %v8340_v41 = vld [vmem:[#allocation26 + $0xb8] sm:$0xf0]  ;;  %v8499_v42 = vor.u32 %v9164_v38, %v8498_v35  ;;  %v9154_v38 = vld [vmem:[#allocation26 + $0x1a4] sm:$0xf0] }
 0x6ca   :  { %5256 = vmatpush.bf16.msrb.mxu2 %v7895_v51  ;;  %v9120_v51 = vld [vmem:[#allocation26 + $0x94] sm:$0xf0] }
 0x6cb   :  { %5269 = vmatpush.bf16.msrb.mxu3 %v8023_v55  ;;  %5245 = vmatmul.bf16.vlgmr.msrb.gmra.mxu1 %v10219_v11  ;;  %v8274_v11 = vld [vmem:[#allocation26 + $0x30] sm:$0xf]  ;;  %v9144_v55 = vld [vmem:[#allocation26 + $0x154] sm:$0xf0] }
 0x6cc   :  { %5687 = vmatpush.bf16.msra.mxu1 %v8307_v48  ;;  %5284 = vmatmul.bf16.vlgmr.msra.gmra.mxu0 %v10221_v18  ;;  %v8275_v18 = vor.u32 %v9108_v4, %v8274_v11  ;;  %v8322_v48 = vld [vmem:[#allocation26 + $0x90] sm:$0xf]  ;;  %v8419_v57 = vor.u32 %v9144_v55, %v8418_v52  ;;  %v9105_v11 = vld [vmem:[#allocation26 + $0x24] sm:$0xf]  ;;  %v8268_v4 = vld [vmem:[#allocation26 + $0x28] sm:$0xf0] }
 0x6cd   :  { %v8323_v53 = vor.u32 %v9120_v51, %v8322_v48  ;;  %v8271_v5 = vor.u32 %v9105_v11, %v8268_v4  ;;  %v8436_v48 = vld [vmem:[#allocation26 + $0x178] sm:$0xf0]  ;;  %v9162_v55 = vld [vmem:[#allocation26 + $0x1e4] sm:$0xf0]  ;;  %5726 = vmatpush.bf16.msrb.mxu0 %v8499_v42  ;;  %v9137_v42 = vld [vmem:[#allocation26 + $0x124] sm:$0xf] }
 0x6ce   :  { %5257 = vmatpush.bf16.msrb.mxu2 %v7879_v2  ;;  %v8315_v2 = vor.u32 %v9118_v60, %v8314_v28  ;;  %v9145_v28 = vld [vmem:[#allocation26 + $0x164] sm:$0xf]  ;;  %v8420_v4 = vld [vmem:[#allocation26 + $0x158] sm:$0xf0] }
 0x6cf   :  { %5270 = vmatpush.bf16.msrb.mxu3 %v8007_v20  ;;  %v8276_v20 = vld [vmem:[#allocation26 + $0x38] sm:$0xf0] }
 0x6d0   :  { %5688 = vmatpush.bf16.msra.mxu1 %v8299_v43  ;;  %v8410_v43 = vld [vmem:[#allocation26 + $0x140] sm:$0xf]  ;;  %v8279_v3 = vor.u32 %v9107_v17, %v8276_v20 }
 0x6d1   :  { %5258 = vmatmul.bf16.vlgmr.msrb.gmra.mxu2 %v10225_v40  ;;  %v8250_v40 = vld [vmem:[#allocation26] sm:$0xf] }
 0x6d2   :  { %5700 = vmatpush.bf16.msra.mxu2 %v8371_v49  ;;  %5271 = vmatmul.bf16.vlgmr.msrb.gmra.mxu3 %v10227_v45  ;;  %v9126_v45 = vld [vmem:[#allocation26 + $0xc4] sm:$0xf0]  ;;  %v8251_v23 = vor.u32 %v9102_v21, %v8250_v40  ;;  %v8411_v49 = vor.u32 %v9142_v59, %v8410_v43  ;;  %v9127_v40 = vld [vmem:[#allocation26 + $0xd4] sm:$0xf] }
 0x6d3   :  { %v8347_v24 = vor.u32 %v9126_v45, %v8346_v22  ;;  %5713 = vmatpush.bf16.msra.mxu3 %v8435_v31  ;;  %v8356_v22 = vld [vmem:[#allocation26 + $0xd8] sm:$0xf0] }
 0x6d4   :  { %5689 = vmatpush.bf16.msra.mxu1 %v8291_v61  ;;  %v8372_v61 = vld [vmem:[#allocation26 + $0xf8] sm:$0xf0] }
 0x6d5   :  { %v8375_v50 = vor.u32 %v9131_v13, %v8372_v61 }
 0x6d6   :  { %5701 = vmatpush.bf16.msra.mxu2 %v8363_v54  ;;  %v9140_v54 = vld [vmem:[#allocation26 + $0x134] sm:$0xf0] }
 0x6d7   :  { %5714 = vmatpush.bf16.msra.mxu3 %v8427_v44 }
 0x6d8   :  { %5690 = vmatpush.bf16.msra.mxu1 %v8283_v1  ;;  %v8403_v1 = vor.u32 %v9140_v54, %v8402_v63  ;;  %v8324_v63 = vld [vmem:[#allocation26 + $0x98] sm:$0xf0]  ;;  %v9143_v54 = vld [vmem:[#allocation26 + $0x154] sm:$0xf] }
 0x6da   :  { %5702 = vmatpush.bf16.msra.mxu2 %v8355_v36 }
 0x6db   :  { %5715 = vmatpush.bf16.msra.mxu3 %v8419_v57  ;;  %v9121_v57 = vld [vmem:[#allocation26 + $0xa4] sm:$0xf] }
 0x6dc   :  { %5691 = vmatpush.bf16.msra.mxu1 %v8275_v18  ;;  %v9129_v18 = vld [vmem:[#allocation26 + $0xe4] sm:$0xf] }
 0x6de   :  { %5703 = vmatpush.bf16.msra.mxu2 %v8347_v24  ;;  %v10257_v24 = vld [vmem:[%s10294_s19] sm:$0xf]  ;;  %s9659_s19 = smov [#allocation27]  }
 0x6df   :  { %5716 = vmatpush.bf16.msra.mxu3 %v8411_v49  ;;  %v4433_v31 = vperm.slane %v10257_v24, 0  ;;  %v8482_v49 = vld [vmem:[#allocation26 + $0x1d0] sm:$0xf]  ;;  %s5816_s21 = sshll.u32 %s9659_s19, 4  ;;  %s5817_s21 = int_to_ptr.vmem [resolvable:$true] %s5816_s21 }
 0x6e0   :  { %5692 = vmatpush.bf16.msra.mxu1 %v8267_v7  ;;  %v8367_v7 = vor.u32 %v9129_v18, %v8364_v6 }
 0x6e2   :  { %5704 = vmatpush.bf16.msra.mxu2 %v8339_v30  ;;  %v8255_v30 = vor.u32 %v9101_v27, %v8252_v29 }
 0x6e3   :  { %5717 = vmatpush.bf16.msra.mxu3 %v8403_v1 }
 0x6e4   :  { %5693 = vmatpush.bf16.msra.mxu1 %v8259_v15  ;;  %v9103_v15 = vld [vmem:[#allocation26 + $0x14] sm:$0xf] }
 0x6e5   :  { %v8263_v36 = vor.u32 %v9103_v15, %v8260_v32  ;;  %v9158_v15 = vld [vmem:[#allocation26 + $0x1c4] sm:$0xf0] }
 0x6e6   :  { %5705 = vmatpush.bf16.msra.mxu2 %v8331_v39  ;;  %v9123_v39 = vld [vmem:[#allocation26 + $0xb4] sm:$0xf] }
 0x6e7   :  { %5718 = vmatpush.bf16.msra.mxu3 %v8395_v12  ;;  %v8343_v44 = vor.u32 %v9123_v39, %v8340_v41  ;;  %v8474_v12 = vld [vmem:[#allocation26 + $0x1c0] sm:$0xf] }
 0x6e8   :  { %5694 = vmatpush.bf16.msra.mxu1 %v8251_v23  ;;  %v8359_v23 = vor.u32 %v9127_v40, %v8356_v22  ;;  %v8316_v22 = vld [vmem:[#allocation26 + $0x88] sm:$0xf0] }
 0x6ea   :  { %5706 = vmatpush.bf16.msra.mxu2 %v8323_v53  ;;  %v8490_v53 = vld [vmem:[#allocation26 + $0x1e0] sm:$0xf] }
 0x6eb   :  { %v8491_v56 = vor.u32 %v9162_v55, %v8490_v53  ;;  %v8450_v53 = vld [vmem:[#allocation26 + $0x190] sm:$0xf]  ;;  %v9152_v55 = vld [vmem:[#allocation26 + $0x194] sm:$0xf0] }
 0x6ec   :  { %5739 = vmatpush.bf16.msrb.mxu1 %v8311_v16  ;;  %v8387_v16 = vor.u32 %v9136_v26, %v8386_v25  ;;  %v9141_v26 = vld [vmem:[#allocation26 + $0x144] sm:$0xf] }
 0x6ed   :  { %5727 = vmatpush.bf16.msrb.mxu0 %v8491_v56  ;;  %v9135_v56 = vld [vmem:[#allocation26 + $0x114] sm:$0xf] }
 0x6ee   :  { %5707 = vmatpush.bf16.msra.mxu2 %v8315_v2  ;;  %5719 = vmatpush.bf16.msra.mxu3 %v8387_v16  ;;  %v8428_v2 = vld [vmem:[#allocation26 + $0x168] sm:$0xf0] }
 0x6ef   :  { %v8431_v20 = vor.u32 %v9145_v28, %v8428_v2  ;;  %v8412_v16 = vld [vmem:[#allocation26 + $0x148] sm:$0xf0]  ;;  %v8442_v28 = vld [vmem:[#allocation26 + $0x180] sm:$0xf] }
 0x6f0   :  { %5740 = vmatpush.bf16.msrb.mxu1 %v8303_v34  ;;  %v9134_v34 = vld [vmem:[#allocation26 + $0x104] sm:$0xf0]  ;;  %v8415_v9 = vor.u32 %v9141_v26, %v8412_v16 }
 0x6f1   :  { %v8379_v37 = vor.u32 %v9134_v34, %v8378_v33  ;;  %v8404_v33 = vld [vmem:[#allocation26 + $0x138] sm:$0xf0]  ;;  %v8458_v34 = vld [vmem:[#allocation26 + $0x1a0] sm:$0xf] }
 0x6f2   :  { %5752 = vmatpush.bf16.msrb.mxu2 %v8375_v50  ;;  %v9119_v50 = vld [vmem:[#allocation26 + $0x94] sm:$0xf]  ;;  %v8459_v41 = vor.u32 %v9154_v38, %v8458_v34 }
 0x6f3   :  { %5720 = vmatpush.bf16.msra.mxu3 %v8379_v37  ;;  %v8327_v11 = vor.u32 %v9119_v50, %v8324_v63  ;;  %v9163_v63 = vld [vmem:[#allocation26 + $0x1f4] sm:$0xf] }
 0x6f4   :  { %5741 = vmatpush.bf16.msrb.mxu1 %v8295_v46  ;;  %v9147_v46 = vld [vmem:[#allocation26 + $0x174] sm:$0xf] }
 0x6f5   :  { %v8439_v52 = vor.u32 %v9147_v46, %v8436_v48 }
 0x6f6   :  { %5753 = vmatpush.bf16.msrb.mxu2 %v8367_v7  ;;  %v8423_v7 = vor.u32 %v9143_v54, %v8420_v4  ;;  %v8500_v54 = vld [vmem:[#allocation26 + $0x1f8] sm:$0xf0] }
 0x6f7   :  { %5765 = vmatpush.bf16.msrb.mxu3 %v8439_v52  ;;  %v8503_v4 = vor.u32 %v9163_v63, %v8500_v54 }
 0x6f8   :  { %5742 = vmatpush.bf16.msrb.mxu1 %v8287_v58  ;;  %v8332_v58 = vld [vmem:[#allocation26 + $0xa8] sm:$0xf0] }
 0x6f9   :  { %v8335_v43 = vor.u32 %v9121_v57, %v8332_v58  ;;  %v8451_v57 = vor.u32 %v9152_v55, %v8450_v53  ;;  %v8388_v58 = vld [vmem:[#allocation26 + $0x118] sm:$0xf0] }
 0x6fa   :  { %5754 = vmatpush.bf16.msrb.mxu2 %v8359_v23  ;;  %v8391_v2 = vor.u32 %v9135_v56, %v8388_v58 }
 0x6fb   :  { %5766 = vmatpush.bf16.msrb.mxu3 %v8431_v20 }
 0x6fc   :  { %5743 = vmatpush.bf16.msrb.mxu1 %v8279_v3  ;;  %v9160_v3 = vld [vmem:[#allocation26 + $0x1d4] sm:$0xf0] }
 0x6fd   :  { %v8483_v61 = vor.u32 %v9160_v3, %v8482_v49  ;;  %v9133_v3 = vld [vmem:[#allocation26 + $0x104] sm:$0xf] }
 0x6fe   :  { %5755 = vmatpush.bf16.msrb.mxu2 %v8351_v19  ;;  %v9139_v19 = vld [vmem:[#allocation26 + $0x134] sm:$0xf] }
 0x6ff   :  { %5728 = vmatpush.bf16.msrb.mxu0 %v8483_v61  ;;  %5767 = vmatpush.bf16.msrb.mxu3 %v8423_v7  ;;  %v8407_v37 = vor.u32 %v9139_v19, %v8404_v33  ;;  %v9153_v19 = vld [vmem:[#allocation26 + $0x1a4] sm:$0xf]  ;;  %v8460_v33 = vld [vmem:[#allocation26 + $0x1a8] sm:$0xf0] }
 0x700   :  { %5744 = vmatpush.bf16.msrb.mxu1 %v8271_v5  ;;  %v8463_v34 = vor.u32 %v9153_v19, %v8460_v33 }
 0x702   :  { %5756 = vmatpush.bf16.msrb.mxu2 %v8343_v44  ;;  %v8396_v44 = vld [vmem:[#allocation26 + $0x128] sm:$0xf0] }
 0x703   :  { %5768 = vmatpush.bf16.msrb.mxu3 %v8415_v9  ;;  %v8399_v48 = vor.u32 %v9137_v42, %v8396_v44  ;;  %v8468_v9 = vld [vmem:[#allocation26 + $0x1b8] sm:$0xf0] }
 0x704   :  { %5745 = vmatpush.bf16.msrb.mxu1 %v8263_v36  ;;  %v9117_v36 = vld [vmem:[#allocation26 + $0x84] sm:$0xf] }
 0x705   :  { %v8319_v25 = vor.u32 %v9117_v36, %v8316_v22 }
 0x706   :  { %5757 = vmatpush.bf16.msrb.mxu2 %v8335_v43 }
 0x707   :  { %5769 = vmatpush.bf16.msrb.mxu3 %v8407_v37  ;;  %v8452_v37 = vld [vmem:[#allocation26 + $0x198] sm:$0xf0] }
 0x708   :  { %v5090_v21 = vpop.f32.mrf.mxu1  ;;  %5746 = vmatpush.bf16.msrb.mxu1 %v8255_v30  ;;  %v8466_v30 = vld [vmem:[#allocation26 + $0x1b0] sm:$0xf] }
 0x709   :  { %v10252_v45 = vpop.f32.mrf.mxu0  ;;  %v5091_v62 = vadd.f32 %v5090_v21, %v4433_v31  ;;  %v8475_v21 = vor.u32 %v9158_v15, %v8474_v12  ;;  %v8467_v31 = vor.u32 %v9156_v14, %v8466_v30  ;;  %v9159_v15 = vld [vmem:[#allocation26 + $0x1d4] sm:$0xf] }
 0x70a   :  { %5758 = vmatpush.bf16.msrb.mxu2 %v8327_v11 }
 0x70b   :  { %5729 = vmatpush.bf16.msrb.mxu0 %v8475_v21  ;;  %5770 = vmatpush.bf16.msrb.mxu3 %v8399_v48 }
 0x70e   :  { %5759 = vmatpush.bf16.msrb.mxu2 %v8319_v25  ;;  %v8476_v25 = vld [vmem:[#allocation26 + $0x1c8] sm:$0xf0] }
 0x70f   :  { %5730 = vmatpush.bf16.msrb.mxu0 %v8467_v31  ;;  %5771 = vmatpush.bf16.msrb.mxu3 %v8391_v2 }
 0x710   :  { %v5092_v47 = vpop.f32.mrf.mxu1 }
 0x711   :  { %v5131_v51 = vpop.f32.mrf.mxu0 }
 0x713   :  { %5731 = vmatpush.bf16.msrb.mxu0 %v8459_v41  ;;  %v9149_v41 = vld [vmem:[#allocation26 + $0x184] sm:$0xf] }
 0x714   :  { %v5103_v60 = vpop.f32.mrf.mxu2 }
 0x715   :  { %v5104_v59 = vadd.f32 %v5103_v60, %v5091_v62  ;;  %v5116_v17 = vpop.f32.mrf.mxu3  ;;  %v9150_v60 = vld [vmem:[#allocation26 + $0x184] sm:$0xf0] }
 0x716   :  { %v8443_v20 = vor.u32 %v9150_v60, %v8442_v28 }
 0x717   :  { %v5117_v13 = vadd.f32 %v5116_v17, %v5104_v59  ;;  %5732 = vmatpush.bf16.msrb.mxu0 %v8451_v57 }
 0x718   :  { %v5142_v1 = vpop.f32.mrf.mxu1 }
 0x719   :  { %v5130_v18 = vadd.f32 %v10252_v45, %v5117_v13  ;;  %v5181_v5 = vpop.f32.mrf.mxu0  ;;  %v5794_v6 = vpop.permute.xlu2 %5793  ;;  %v8380_v13 = vld [vmem:[#allocation26 + $0x108] sm:$0xf0] }
 0x71a   :  { %v5800_v10 = vsel %vm2605_vm0, %v9999_v0, %v5794_v6  ;;  %v4434_v0 = vperm.slane %v10257_v24, 1  ;;  %v8383_v50 = vor.u32 %v9133_v3, %v8380_v13  ;;  %v8492_v6 = vld [vmem:[#allocation26 + $0x1e8] sm:$0xf0] }
 0x71b   :  { %v5289_v32 = vmax.f32 %v5130_v18, 0.0  ;;  %v5802_v40 = vsel %vm5801_vm13, %v5800_v10, %v5798_v8  ;;  %5733 = vmatpush.bf16.msrb.mxu0 %v8443_v20  ;;  %v4435_v18 = vperm.slane %v10257_v24, 2 }
 0x71c   :  { %v5804_v23 = vsel %vm5803_vm14, %v5802_v40, 0.0  ;;  %v5105_v45 = vpop.f32.mrf.mxu2  ;;  %v5143_v47 = vadd.f32 %v5142_v1, %v4434_v0  ;;  %5772 = vmatpush.bf16.msrb.mxu3 %v8383_v50 }
 0x71d   :  { %v5293_v27 = vpack.c.bf16 %v5289_v32, %v5289_v32  ;;  %5808 = vst [vmem:[#allocation27 + $0x18] sm:$0xff] %v5804_v23  ;;  %v5118_v29 = vpop.f32.mrf.mxu3  ;;  %v8484_v32 = vld [vmem:[#allocation26 + $0x1d8] sm:$0xf0]  ;;  %v9157_v45 = vld [vmem:[#allocation26 + $0x1c4] sm:$0xf] }
 0x71e   :  { %v8487_v21 = vor.u32 %v9159_v15, %v8484_v32  ;;  %v8479_v26 = vor.u32 %v9157_v45, %v8476_v25  ;;  %v9155_v29 = vld [vmem:[#allocation26 + $0x1b4] sm:$0xf]  ;;  %5821 = dma.vmem_to_hbm [thread:$0]  %s5817_s21, 512, %s5819_s23, [#allocation5]  }
 0x71f   :  { %5695 = vmatmul.bf16.vlgmr.msra.gmra.mxu1 %v5293_v27  ;;  %5778 = vmatpush.bf16.msra.mxu0 %v8503_v4  ;;  %v8471_v30 = vor.u32 %v9155_v29, %v8468_v9 }
 0x720   :  { %v5144_v35 = vpop.f32.mrf.mxu1 }
 0x721   :  { %v5183_v39 = vpop.f32.mrf.mxu0  ;;  %v9151_v35 = vld [vmem:[#allocation26 + $0x194] sm:$0xf] }
 0x722   :  { %v8455_v38 = vor.u32 %v9151_v35, %v8452_v37 }
 0x724   :  { %v5155_v46 = vpop.f32.mrf.mxu2 }
 0x725   :  { %v5156_v51 = vadd.f32 %v5155_v46, %v5143_v47  ;;  %v5168_v52 = vpop.f32.mrf.mxu3  ;;  %v8444_v47 = vld [vmem:[#allocation26 + $0x188] sm:$0xf0]  ;;  %v4436_v46 = vperm.slane %v10257_v24, 3 }
 0x726   :  { %v8447_v44 = vor.u32 %v9149_v41, %v8444_v47 }
 0x727   :  { %v5169_v62 = vadd.f32 %v5168_v52, %v5156_v51 }
 0x728   :  { %v5194_v43 = vpop.f32.mrf.mxu1 }
 0x729   :  { %v5182_v59 = vadd.f32 %v5181_v5, %v5169_v62  ;;  %v5233_v17 = vpop.f32.mrf.mxu0  ;;  %v9161_v5 = vld [vmem:[#allocation26 + $0x1e4] sm:$0xf]  ;;  %v5195_v12 = vadd.f32 %v5194_v43, %v4435_v18 }
 0x72a   :  { %v8495_v8 = vor.u32 %v9161_v5, %v8492_v6 }
 0x72b   :  { %v5290_v49 = vmax.f32 %v5182_v59, 0.0 }
 0x72c   :  { %v5157_v61 = vpop.f32.mrf.mxu2  ;;  %5779 = vmatpush.bf16.msra.mxu0 %v8495_v8 }
 0x72d   :  { %v5294_v1 = vpack.c.bf16 %v5290_v49, %v5290_v49  ;;  %v5170_v11 = vpop.f32.mrf.mxu3 }
 0x72e   :  { %v5361_v11 = vld [vmem:[%s10317_s5] sm:$0x3] }
 0x72f   :  { %5708 = vmatmul.bf16.vlgmr.msra.gmra.mxu2 %v5294_v1  ;;  %5747 = vmatmul.bf16.vlgmr.msrb.gmra.mxu1 %v5293_v27  ;;  %v5363_v4 = vperm.slane %v5361_v11, 0  ;;  %v5364_v18 = vperm.slane %v5361_v11, 1 }
 0x730   :  { %v5196_v7 = vpop.f32.mrf.mxu1  ;;  %5780 = vmatpush.bf16.msra.mxu0 %v8487_v21 }
 0x731   :  { %v5235_v10 = vpop.f32.mrf.mxu0 }
 0x734   :  { %v5207_v40 = vpop.f32.mrf.mxu2  ;;  %5781 = vmatpush.bf16.msra.mxu0 %v8479_v26 }
 0x735   :  { %v5208_v36 = vadd.f32 %v5207_v40, %v5195_v12  ;;  %v5220_v22 = vpop.f32.mrf.mxu3 }
 0x737   :  { %v5221_v23 = vadd.f32 %v5220_v22, %v5208_v36 }
 0x738   :  { %5782 = vmatpush.bf16.msra.mxu0 %v8471_v30 }
 0x739   :  { %v5234_v16 = vadd.f32 %v5233_v17, %v5221_v23 }
 0x73b   :  { %v5291_v27 = vmax.f32 %v5234_v16, 0.0 }
 0x73c   :  { %v5209_v0 = vpop.f32.mrf.mxu2  ;;  %5783 = vmatpush.bf16.msra.mxu0 %v8463_v34 }
 0x73d   :  { %v5295_v14 = vpack.c.bf16 %v5291_v27, %v5291_v27  ;;  %v5222_v31 = vpop.f32.mrf.mxu3 }
 0x73f   :  { %5721 = vmatmul.bf16.vlgmr.msra.gmra.mxu3 %v5295_v14  ;;  %5760 = vmatmul.bf16.vlgmr.msrb.gmra.mxu2 %v5294_v1 }
 0x740   :  { %5784 = vmatpush.bf16.msra.mxu0 %v8455_v38 }
 0x744   :  { %5785 = vmatpush.bf16.msra.mxu0 %v8447_v44 }
 0x748   :  { %v5246_v39 = vpop.f32.mrf.mxu1 }
 0x749   :  { %v5285_v42 = vpop.f32.mrf.mxu0  ;;  %v5247_v52 = vadd.f32 %v5246_v39, %v4436_v46 }
 0x74f   :  { %5773 = vmatmul.bf16.vlgmr.msrb.gmra.mxu3 %v5295_v14 }
 0x750   :  { %v5248_v48 = vpop.f32.mrf.mxu1 }
 0x751   :  { %v5287_v51 = vpop.f32.mrf.mxu0 }
 0x754   :  { %v5259_v53 = vpop.f32.mrf.mxu2 }
 0x755   :  { %v5260_v55 = vadd.f32 %v5259_v53, %v5247_v52  ;;  %v5272_v56 = vpop.f32.mrf.mxu3 }
 0x757   :  { %v5273_v62 = vadd.f32 %v5272_v56, %v5260_v55 }
 0x759   :  { %v5286_v57 = vadd.f32 %v5285_v42, %v5273_v62 }
 0x75b   :  { %v5292_v58 = vmax.f32 %v5286_v57, 0.0 }
 0x75c   :  { %v5261_v28 = vpop.f32.mrf.mxu2 }
 0x75d   :  { %v5296_v60 = vpack.c.bf16 %v5292_v58, %v5292_v58  ;;  %v5274_v43 = vpop.f32.mrf.mxu3 }
 0x75f   :  { %5734 = vmatmul.bf16.vlgmr.msrb.gmra.mxu0 %v5296_v60 }
 0x76f   :  { %5786 = vmatmul.bf16.vlgmr.msra.gmra.mxu0 %v5296_v60 }
 0x79c   :  { %v5696_v24 = vpop.f32.mrf.mxu1 }
 0x79d   :  { %v5697_v6 = vadd.f32 %v5696_v24, %v5363_v4 }
 0x7a4   :  { %v5698_v2 = vpop.f32.mrf.mxu1 }
 0x7ac   :  { %v5748_v59 = vpop.f32.mrf.mxu1 }
 0x7ad   :  { %v5749_v7 = vadd.f32 %v5748_v59, %v5364_v18 }
 0x7b2   :  { %v5709_v17 = vpop.f32.mrf.mxu2 }
 0x7b3   :  { %v5710_v8 = vadd.f32 %v5709_v17, %v5697_v6 }
 0x7b4   :  { %v5750_v20 = vpop.f32.mrf.mxu1 }
 0x7ba   :  { %v5711_v49 = vpop.f32.mrf.mxu2 }
 0x7c2   :  { %v5722_v3 = vpop.f32.mrf.mxu3  ;;  %v5761_v13 = vpop.f32.mrf.mxu2 }
 0x7c3   :  { %v5762_v10 = vadd.f32 %v5761_v13, %v5749_v7  ;;  %v5723_v12 = vadd.f32 %v5722_v3, %v5710_v8 }
 0x7ca   :  { %v5724_v61 = vpop.f32.mrf.mxu3  ;;  %v5763_v50 = vpop.f32.mrf.mxu2 }
 0x7d2   :  { %v5774_v63 = vpop.f32.mrf.mxu3 }
 0x7d3   :  { %v5775_v15 = vadd.f32 %v5774_v63, %v5762_v10 }
 0x7da   :  { %v5776_v1 = vpop.f32.mrf.mxu3 }
 0x7dc   :  { %v5735_v54 = vpop.f32.mrf.mxu0 }
 0x7dd   :  { %v5736_v40 = vadd.f32 %v5735_v54, %v5723_v12 }
 0x7e4   :  { %v5737_v5 = vpop.f32.mrf.mxu0 }
 0x7ec   :  { %v5787_v32 = vpop.f32.mrf.mxu0 }
 0x7ed   :  { %v5788_v21 = vadd.f32 %v5787_v32, %v5775_v15 }
 0x7ef   :  { %v5809_v36 = vpack.c.bf16 %v5788_v21, %v5736_v40 }
 0x7f1   :  { %5810 = vst [vmem:[#allocation28] sm:$0xff] %v5809_v36 }
 0x7f2   :  { %5832 = dma.vmem_to_hbm [thread:$0]  %s5828_s13, 128, %s5830_s16, [#allocation29]  }
 0x7f4   :  { %v5789_v22 = vpop.f32.mrf.mxu0 }
 0x7f5   :  { %9633 = dma.done.wait [#allocation5], 512  }
 0x7f6   :  { %9634 = vsyncadd [#allocation5], 4294966784 }
 0x7f7   :  { %9635 = dma.done.wait [#allocation29], 128  }
 0x7f8   :  { %9636 = vsyncadd [#allocation29], 4294967168 }
 0x7f9   :  { %5841 = vsyncpa [#allocation4], 1 }
 0x7fa   :  { %5842 = vsyncpa [#allocation7], 1 }
 0x7fb   :  { %5843 = vsyncpa [#allocation10], 1 }
 0x7fc   :  { %5844 = vsyncpa [#allocation13], 1 }
 0x7fd   :  { %5845 = vsyncpa [#allocation16], 1 }
 0x7fe   :  { %5846 = vsyncpa [#allocation19], 1 }
 0x7ff   :  { %5847 = vsyncpa [#allocation22], 1 }
 0x800   :  { %5848 = vsyncpa [#allocation25], 1 }
 0x801   :  { %5849 = vsyncpa [#allocation5], 1 }
 0x802   :  { %5850 = vsyncpa [#allocation29], 1 }

</bundles_post_ra>
